<compile_context>
chip_gen: v5e
topology: v5e:2x2
jax: 0.10.0
libtpu: 0.0.40
codegen_flags: <defaults>
</compile_context>

<pallas_src>
import functools

import jax
import jax.numpy as jnp
from jax import lax
from jax.experimental import pallas as pl
from jax.experimental.pallas import tpu as pltpu

LANE = 128


def _round_up(x, m):
    return (x + m - 1) // m * m


def _vmem_limit_bytes():
    # Use most of whatever the chip actually has (v5e/v6e: 128 MiB, v7x: 64 MiB),
    # with headroom for Mosaic-internal scratch.  Fall back to a v7x-safe value.
    try:
        cap = pltpu.get_tpu_info().vmem_capacity_bytes
        return min(int(cap) * 7 // 8, 112 * 1024 * 1024)
    except Exception:
        return 48 * 1024 * 1024


def _down_kernel(x_hbm, w1_ref, b1_ref, w2_ref, b2_ref, o_ref,
                 xbuf, p1buf, p2buf, sem,
                 *, th, wp, cin_p, cmid_p, cout_p):
    n = pl.program_id(0)
    s = pl.program_id(1)
    n_strips = pl.num_programs(1)
    slot = s % 2

    def strip_copy(pooled_row0, slt):
        # window = pooled rows r0-2 .. r0+th+1 (in the wrapper's +2-row padded coords)
        return pltpu.make_async_copy(
            x_hbm.at[n, pl.ds(pooled_row0, th + 4)], xbuf.at[slt], sem.at[slt])

    # ---- once per core: zero-padding columns of the conv scratch bufs persist
    # across grid steps, and the first strip of each image has no earlier step to
    # have prefetched it.
    @pl.when(s == 0)
    def _():
        p1buf[:, 0, :] = jnp.zeros((th + 4, cin_p), jnp.bfloat16)
        p1buf[:, wp + 1, :] = jnp.zeros((th + 4, cin_p), jnp.bfloat16)
        p2buf[:, 0, :] = jnp.zeros((th + 2, cmid_p), jnp.bfloat16)
        p2buf[:, wp + 1, :] = jnp.zeros((th + 2, cmid_p), jnp.bfloat16)
        strip_copy(0, 0).start()

    # ---- wait for this strip's window (started by the previous step, or just above)
    strip_copy(0, slot).wait()

    # ---- prefetch the next strip of this image while we compute the current one
    @pl.when(s + 1 < n_strips)
    def _():
        nxt = pl.multiple_of((s + 1) * th, th)
        strip_copy(nxt, 1 - slot).start()

    # ---- 2x2 max pool: H-pair is dim 2 of xbuf, W-pair is packed into the lane dim.
    xb = xbuf[slot]                                              # (th+4, 2, wp, 2*cin_p)
    m = jnp.maximum(xb[:, 0, :, :], xb[:, 1, :, :])              # (th+4, wp, 2*cin_p)
    pooled = jnp.maximum(m[:, :, :cin_p], m[:, :, cin_p:])       # (th+4, wp, cin_p)
    p1buf[:, 1:wp + 1, :] = pooled

    def conv3x3_bias_relu(src_ref, nrows, w_ref, b_ref):
        # src_ref: (nrows+2, wp+2, cin) zero-padded activation (bf16 VMEM scratch)
        # w_ref:   (9*cin, cout) bf16, tap order (dy, dx); b_ref: (1, cout) f32
        cin = src_ref.shape[-1]
        cout = w_ref.shape[-1]
        acc = None
        t = 0
        for dy in range(3):
            for dx in range(3):
                tap = src_ref[dy:dy + nrows, dx:dx + wp, :].reshape(nrows * wp, cin)
                w_t = w_ref[t * cin:(t + 1) * cin, :]            # static, lane-aligned
                d = jnp.dot(tap, w_t, preferred_element_type=jnp.float32)
                acc = d if acc is None else acc + d
                t += 1
        y = jnp.maximum(acc + b_ref[...], 0.0)                   # bias + BN + ReLU
        return y.reshape(nrows, wp, cout)

    # ---- conv1 over th+2 rows (1-row halo each side for conv2)
    y1 = conv3x3_bias_relu(p1buf, th + 2, w1_ref, b1_ref)        # (th+2, wp, cmid_p) f32
    p2buf[:, 1:wp + 1, :] = y1.astype(jnp.bfloat16)

    # halo rows that fall outside the image must be 0 (== conv2's zero padding);
    # only the first / last strip needs it.
    @pl.when(s == 0)
    def _():
        p2buf[0] = jnp.zeros((wp + 2, cmid_p), jnp.bfloat16)

    @pl.when(s == n_strips - 1)
    def _():
        p2buf[th + 1] = jnp.zeros((wp + 2, cmid_p), jnp.bfloat16)

    # ---- conv2 -> th output rows
    y2 = conv3x3_bias_relu(p2buf, th, w2_ref, b2_ref)            # (th, wp, cout_p) f32
    o_ref[0] = y2.astype(o_ref.dtype)


def down_forward(x_nchw, p, tile_h=16):
    N, Cin, H, W = x_nchw.shape
    # PyTorch MaxPool2d(2) would floor-truncate odd sizes; guard explicitly here.
    assert H % 2 == 0 and W % 2 == 0, "H and W must be even"
    Hp, Wp = H // 2, W // 2
    Cmid = p["w1"].shape[3]
    Cout = p["w2"].shape[3]

    cin_p = _round_up(Cin, LANE)
    cmid_p = _round_up(Cmid, LANE)
    cout_p = _round_up(Cout, LANE)

    # largest divisor of Hp that is <= tile_h (strips must divide Hp exactly)
    th = max(1, min(tile_h, Hp))
    while Hp % th:
        th -= 1
    n_strips = Hp // th

    # ---- glue: NCHW -> NHWC, lane-pad channels, zero-pad H by 2 pooled rows per
    # side (out-of-image halo rows then pool to exactly 0 == conv zero padding),
    # and a row-major metadata reshape so the 2x2 pool is lane/row-pair aligned.
    x = jnp.transpose(x_nchw, (0, 2, 3, 1)).astype(jnp.bfloat16)
    x = jnp.pad(x, ((0, 0), (4, 4), (0, 0), (0, cin_p - Cin)))
    x = x.reshape(N, Hp + 4, 2, Wp, 2 * cin_p)

    # ---- fold BN scale into weights, pad channels, HWIO -> (9*cin, cout), cast bf16
    def prep(w, s, b, ci_p, co_p):
        ci, co = w.shape[2], w.shape[3]
        w = w * s.reshape(1, 1, 1, co)                           # fold BN scale
        w = jnp.pad(w, ((0, 0), (0, 0), (0, ci_p - ci), (0, co_p - co)))
        w = w.reshape(9 * ci_p, co_p).astype(jnp.bfloat16)       # tap order (dy, dx)
        b = jnp.pad(b, ((0, 0), (0, co_p - co))).astype(jnp.float32)
        return w, b

    w1, b1 = prep(p["w1"], p["s1"], p["b1"], cin_p, cmid_p)
    w2, b2 = prep(p["w2"], p["s2"], p["b2"], cmid_p, cout_p)

    kernel = functools.partial(_down_kernel, th=th, wp=Wp,
                               cin_p=cin_p, cmid_p=cmid_p, cout_p=cout_p)

    out = pl.pallas_call(
        kernel,
        out_shape=jax.ShapeDtypeStruct((N, Hp, Wp, cout_p), jnp.bfloat16),
        grid=(N, n_strips),
        in_specs=[
            pl.BlockSpec(memory_space=pl.ANY),                   # x: manual halo DMA
            pl.BlockSpec((9 * cin_p, cmid_p), lambda n, s: (0, 0)),
            pl.BlockSpec((1, cmid_p), lambda n, s: (0, 0)),
            pl.BlockSpec((9 * cmid_p, cout_p), lambda n, s: (0, 0)),
            pl.BlockSpec((1, cout_p), lambda n, s: (0, 0)),
        ],
        out_specs=pl.BlockSpec((1, th, Wp, cout_p), lambda n, s: (n, s, 0, 0)),
        scratch_shapes=[
            pltpu.VMEM((2, th + 4, 2, Wp, 2 * cin_p), jnp.bfloat16),  # double-buffered strip
            pltpu.VMEM((th + 4, Wp + 2, cin_p), jnp.bfloat16),        # padded pooled act
            pltpu.VMEM((th + 2, Wp + 2, cmid_p), jnp.bfloat16),       # padded y1 act
            pltpu.SemaphoreType.DMA((2,)),
        ],
        compiler_params=pltpu.CompilerParams(
            # strip axis must iterate sequentially (cross-strip DMA prefetch);
            # the batch axis still gives v7x megacore its 2-way split.
            dimension_semantics=("parallel", "arbitrary"),
            vmem_limit_bytes=_vmem_limit_bytes(),
        ),
    )(x, w1, b1, w2, b2)

    # Keep PyTorch semantics: drop channel padding, NHWC -> NCHW, f32.
    out = out[:, :, :, :Cout].astype(jnp.float32)
    return jnp.transpose(out, (0, 3, 1, 2))


def make_params(key, in_channels, out_channels, eps=1e-5):
    ks = jax.random.split(key, 12)

    def fold(gamma, beta, mean, var, conv_bias):
        scale = gamma / jnp.sqrt(var + eps)
        bias = beta + scale * (conv_bias - mean)
        return scale.reshape(1, -1), bias.reshape(1, -1)

    # layer 1: Conv(in->out) + BN(out)
    w1 = 0.2 * jax.random.normal(ks[0], (3, 3, in_channels, out_channels), jnp.float32)
    cb1 = 0.1 * jax.random.normal(ks[1], (out_channels,), jnp.float32)
    g1 = 1.0 + 0.1 * jax.random.normal(ks[2], (out_channels,), jnp.float32)
    be1 = 0.1 * jax.random.normal(ks[3], (out_channels,), jnp.float32)
    m1 = 0.1 * jax.random.normal(ks[4], (out_channels,), jnp.float32)
    v1 = jax.random.uniform(ks[5], (out_channels,), jnp.float32, 0.5, 1.5)
    s1, b1 = fold(g1, be1, m1, v1, cb1)

    # layer 2: Conv(out->out) + BN(out)
    w2 = 0.2 * jax.random.normal(ks[6], (3, 3, out_channels, out_channels), jnp.float32)
    cb2 = 0.1 * jax.random.normal(ks[7], (out_channels,), jnp.float32)
    g2 = 1.0 + 0.1 * jax.random.normal(ks[8], (out_channels,), jnp.float32)
    be2 = 0.1 * jax.random.normal(ks[9], (out_channels,), jnp.float32)
    m2 = 0.1 * jax.random.normal(ks[10], (out_channels,), jnp.float32)
    v2 = jax.random.uniform(ks[11], (out_channels,), jnp.float32, 0.5, 1.5)
    s2, b2 = fold(g2, be2, m2, v2, cb2)

    return {"w1": w1, "s1": s1, "b1": b1, "w2": w2, "s2": s2, "b2": b2}


def down_reference(x_nchw, p):
    """Pure-JAX f32 reference (same folded-BN semantics) for validation."""
    x = jnp.transpose(x_nchw, (0, 2, 3, 1))  # NHWC
    x = lax.reduce_window(x, -jnp.inf, lax.max, (1, 2, 2, 1), (1, 2, 2, 1), "VALID")

    def block(inp, w, s, b):
        y = lax.conv_general_dilated(
            inp, w, (1, 1), "SAME", dimension_numbers=("NHWC", "HWIO", "NHWC"))
        y = y * s.reshape(1, 1, 1, -1) + b.reshape(1, 1, 1, -1)
        return jnp.maximum(y, 0.0)

    y = block(x, p["w1"], p["s1"], p["b1"])
    y = block(y, p["w2"], p["s2"], p["b2"])
    return jnp.transpose(y, (0, 3, 1, 2))


if __name__ == "__main__":
    key = jax.random.PRNGKey(0)
    k_x, k_p = jax.random.split(key)

    N, Cin, H, W = 2, 4, 16, 16
    Cout = 8
    x = jax.random.normal(k_x, (N, Cin, H, W), jnp.float32)
    params = make_params(k_p, Cin, Cout)

    # tile_h=4 -> 2 row strips per image: exercises the halo DMA double-buffering,
    # cross-strip prefetch and the first/last-strip boundary handling.
    fwd = jax.jit(functools.partial(down_forward, tile_h=4))
    out = jax.block_until_ready(fwd(x, params))
    ref = jax.block_until_ready(down_reference(x, params))

    assert out.shape == (N, Cout, H // 2, W // 2), out.shape
    # bf16 MXU operands / bf16 output (f32 accumulate) -> loosen tolerance vs f32 ref.
    assert jnp.allclose(out, ref, rtol=5e-2, atol=5e-2), float(jnp.max(jnp.abs(out - ref)))
    print("KERNEL_OK")
</pallas_src>

<mosaic_0001>
module attributes {stable_mosaic.version = 11 : i64} {
  func.func @_down_kernel(%arg0: i32, %arg1: i32, %arg2: memref<2x12x2x8x256xbf16, #tpu.memory_space<any>>, %arg3: memref<1152x128xbf16, #tpu.memory_space<vmem>>, %arg4: memref<1x128xf32, #tpu.memory_space<vmem>>, %arg5: memref<1152x128xbf16, #tpu.memory_space<vmem>>, %arg6: memref<1x128xf32, #tpu.memory_space<vmem>>, %arg7: memref<1x4x8x128xbf16, #tpu.memory_space<vmem>>, %arg8: memref<2x8x2x8x256xbf16, #tpu.memory_space<vmem>>, %arg9: memref<8x10x128xbf16, #tpu.memory_space<vmem>>, %arg10: memref<6x10x128xbf16, #tpu.memory_space<vmem>>, %arg11: memref<2x!tpu.dma_semaphore, #tpu.memory_space<semaphore_mem>>) attributes {dimension_semantics = [#tpu.dimension_semantics<parallel>, #tpu.dimension_semantics<arbitrary>], iteration_bounds = array<i64: 2, 2>, scalar_prefetch = 0 : i64, scratch_operands = 4 : i64, tpu.core_type = #tpu.core_type<tc>, window_params = [{}, {pipeline_mode = #tpu.pipeline_mode<synchronous>, transform_indices = @transform_1, window_bounds = array<i64: 1152, 128>}, {pipeline_mode = #tpu.pipeline_mode<synchronous>, transform_indices = @transform_2, window_bounds = array<i64: 1, 128>}, {pipeline_mode = #tpu.pipeline_mode<synchronous>, transform_indices = @transform_3, window_bounds = array<i64: 1152, 128>}, {pipeline_mode = #tpu.pipeline_mode<synchronous>, transform_indices = @transform_4, window_bounds = array<i64: 1, 128>}, {transform_indices = @transform_5, window_bounds = array<i64: 1, 4, 8, 128>}]} {
    %c2_i32 = arith.constant 2 : i32
    %c0_i32 = arith.constant 0 : i32
    %0 = arith.cmpi eq, %c2_i32, %c0_i32 : i32
    %c1_i32 = arith.constant 1 : i32
    %1 = arith.select %0, %c1_i32, %c2_i32 : i32
    %2 = arith.remsi %arg1, %1 : i32
    %c0_i32_0 = arith.constant 0 : i32
    %3 = arith.cmpi ne, %2, %c0_i32_0 : i32
    %c0_i32_1 = arith.constant 0 : i32
    %4 = arith.cmpi slt, %2, %c0_i32_1 : i32
    %c0_i32_2 = arith.constant 0 : i32
    %5 = arith.cmpi slt, %1, %c0_i32_2 : i32
    %6 = arith.xori %4, %5 : i1
    %7 = arith.andi %6, %3 : i1
    %8 = arith.addi %2, %1 : i32
    %9 = arith.select %7, %8, %2 : i32
    %c0_i32_3 = arith.constant 0 : i32
    %10 = arith.cmpi eq, %arg1, %c0_i32_3 : i32
    %11 = arith.extui %10 : i1 to i32
    %c0_i32_4 = arith.constant 0 : i32
    %12 = arith.cmpi ne, %11, %c0_i32_4 : i32
    scf.if %12 {
      %cst_136 = arith.constant 0.000000e+00 : bf16
      %147 = vector.broadcast %cst_136 : bf16 to vector<8x128xbf16>
      %c0_137 = arith.constant 0 : index
      %c0_138 = arith.constant 0 : index
      %c0_139 = arith.constant 0 : index
      %148 = vector.load %arg9[%c0_137, %c0_138, %c0_139] : memref<8x10x128xbf16, #tpu.memory_space<vmem>>, vector<8x1x128xbf16>
      %149 = vector.shape_cast %148 : vector<8x1x128xbf16> to vector<8x128xbf16>
      %150 = vector.shape_cast %147 : vector<8x128xbf16> to vector<8x1x128xbf16>
      tpu.vector_store %arg9[%c0_137, %c0_138, %c0_139], %150 {strides = array<i32>} : memref<8x10x128xbf16, #tpu.memory_space<vmem>>, vector<8x1x128xbf16>,
      %cst_140 = arith.constant 0.000000e+00 : bf16
      %151 = vector.broadcast %cst_140 : bf16 to vector<8x128xbf16>
      %c0_141 = arith.constant 0 : index
      %c9 = arith.constant 9 : index
      %c0_142 = arith.constant 0 : index
      %152 = vector.load %arg9[%c0_141, %c9, %c0_142] : memref<8x10x128xbf16, #tpu.memory_space<vmem>>, vector<8x1x128xbf16>
      %153 = vector.shape_cast %152 : vector<8x1x128xbf16> to vector<8x128xbf16>
      %154 = vector.shape_cast %151 : vector<8x128xbf16> to vector<8x1x128xbf16>
      tpu.vector_store %arg9[%c0_141, %c9, %c0_142], %154 {strides = array<i32>} : memref<8x10x128xbf16, #tpu.memory_space<vmem>>, vector<8x1x128xbf16>,
      %cst_143 = arith.constant 0.000000e+00 : bf16
      %155 = vector.broadcast %cst_143 : bf16 to vector<6x128xbf16>
      %c0_144 = arith.constant 0 : index
      %c0_145 = arith.constant 0 : index
      %c0_146 = arith.constant 0 : index
      %156 = vector.load %arg10[%c0_144, %c0_145, %c0_146] : memref<6x10x128xbf16, #tpu.memory_space<vmem>>, vector<6x1x128xbf16>
      %157 = vector.shape_cast %156 : vector<6x1x128xbf16> to vector<6x128xbf16>
      %158 = vector.shape_cast %155 : vector<6x128xbf16> to vector<6x1x128xbf16>
      tpu.vector_store %arg10[%c0_144, %c0_145, %c0_146], %158 {strides = array<i32>} : memref<6x10x128xbf16, #tpu.memory_space<vmem>>, vector<6x1x128xbf16>,
      %cst_147 = arith.constant 0.000000e+00 : bf16
      %159 = vector.broadcast %cst_147 : bf16 to vector<6x128xbf16>
      %c0_148 = arith.constant 0 : index
      %c9_149 = arith.constant 9 : index
      %c0_150 = arith.constant 0 : index
      %160 = vector.load %arg10[%c0_148, %c9_149, %c0_150] : memref<6x10x128xbf16, #tpu.memory_space<vmem>>, vector<6x1x128xbf16>
      %161 = vector.shape_cast %160 : vector<6x1x128xbf16> to vector<6x128xbf16>
      %162 = vector.shape_cast %159 : vector<6x128xbf16> to vector<6x1x128xbf16>
      tpu.vector_store %arg10[%c0_148, %c9_149, %c0_150], %162 {strides = array<i32>} : memref<6x10x128xbf16, #tpu.memory_space<vmem>>, vector<6x1x128xbf16>,
      %c0_i32_151 = arith.constant 0 : i32
      %c0_i32_152 = arith.constant 0 : i32
      %c0_i32_153 = arith.constant 0 : i32
      %c0_i32_154 = arith.constant 0 : i32
      %c0_i32_155 = arith.constant 0 : i32
      %c0_i32_156 = arith.constant 0 : i32
      %163 = tpu.memref_slice %arg2[%arg0, %c0_i32_153, %c0_i32_154, %c0_i32_155, %c0_i32_156] : memref<2x12x2x8x256xbf16, #tpu.memory_space<any>> -> memref<1x8x2x8x256xbf16, #tpu.memory_space<any>>
      %164 = tpu.memref_squeeze %163 : memref<1x8x2x8x256xbf16, #tpu.memory_space<any>> -> memref<8x2x8x256xbf16, #tpu.memory_space<any>>
      %c0_i32_157 = arith.constant 0 : i32
      %c0_i32_158 = arith.constant 0 : i32
      %c0_i32_159 = arith.constant 0 : i32
      %c0_i32_160 = arith.constant 0 : i32
      %165 = tpu.memref_slice %arg8[%c0_i32_151, %c0_i32_157, %c0_i32_158, %c0_i32_159, %c0_i32_160] : memref<2x8x2x8x256xbf16, #tpu.memory_space<vmem>> -> memref<1x8x2x8x256xbf16, #tpu.memory_space<vmem>>
      %166 = tpu.memref_squeeze %165 : memref<1x8x2x8x256xbf16, #tpu.memory_space<vmem>> -> memref<8x2x8x256xbf16, #tpu.memory_space<vmem>>
      %167 = tpu.memref_slice %arg11[%c0_i32_152] : memref<2x!tpu.dma_semaphore, #tpu.memory_space<semaphore_mem>> -> memref<1x!tpu.dma_semaphore, #tpu.memory_space<semaphore_mem>>
      %168 = tpu.memref_squeeze %167 : memref<1x!tpu.dma_semaphore, #tpu.memory_space<semaphore_mem>> -> memref<!tpu.dma_semaphore, #tpu.memory_space<semaphore_mem>>
      tpu.enqueue_dma source(%164 : memref<8x2x8x256xbf16, #tpu.memory_space<any>>) target(%166 : memref<8x2x8x256xbf16, #tpu.memory_space<vmem>>) target_semaphore(%168 : memref<!tpu.dma_semaphore, #tpu.memory_space<semaphore_mem>>)
    } else {
    }
    %c0_i32_5 = arith.constant 0 : i32
    %c0_i32_6 = arith.constant 0 : i32
    %c0_i32_7 = arith.constant 0 : i32
    %c0_i32_8 = arith.constant 0 : i32
    %13 = tpu.memref_slice %arg2[%arg0, %c0_i32_5, %c0_i32_6, %c0_i32_7, %c0_i32_8] : memref<2x12x2x8x256xbf16, #tpu.memory_space<any>> -> memref<1x8x2x8x256xbf16, #tpu.memory_space<any>>
    %14 = tpu.memref_squeeze %13 : memref<1x8x2x8x256xbf16, #tpu.memory_space<any>> -> memref<8x2x8x256xbf16, #tpu.memory_space<any>>
    %c0_i32_9 = arith.constant 0 : i32
    %c0_i32_10 = arith.constant 0 : i32
    %c0_i32_11 = arith.constant 0 : i32
    %c0_i32_12 = arith.constant 0 : i32
    %15 = tpu.memref_slice %arg8[%9, %c0_i32_9, %c0_i32_10, %c0_i32_11, %c0_i32_12] : memref<2x8x2x8x256xbf16, #tpu.memory_space<vmem>> -> memref<1x8x2x8x256xbf16, #tpu.memory_space<vmem>>
    %16 = tpu.memref_squeeze %15 : memref<1x8x2x8x256xbf16, #tpu.memory_space<vmem>> -> memref<8x2x8x256xbf16, #tpu.memory_space<vmem>>
    %17 = tpu.memref_slice %arg11[%9] : memref<2x!tpu.dma_semaphore, #tpu.memory_space<semaphore_mem>> -> memref<1x!tpu.dma_semaphore, #tpu.memory_space<semaphore_mem>>
    %18 = tpu.memref_squeeze %17 : memref<1x!tpu.dma_semaphore, #tpu.memory_space<semaphore_mem>> -> memref<!tpu.dma_semaphore, #tpu.memory_space<semaphore_mem>>
    tpu.wait_dma2 semaphore(%18 : memref<!tpu.dma_semaphore, #tpu.memory_space<semaphore_mem>>) src(%14 : memref<8x2x8x256xbf16, #tpu.memory_space<any>>) dst(%16 : memref<8x2x8x256xbf16, #tpu.memory_space<vmem>>)
    %c1_i32_13 = arith.constant 1 : i32
    %19 = arith.addi %arg1, %c1_i32_13 : i32
    %c2_i32_14 = arith.constant 2 : i32
    %20 = arith.cmpi slt, %19, %c2_i32_14 : i32
    %21 = arith.extui %20 : i1 to i32
    %c0_i32_15 = arith.constant 0 : i32
    %22 = arith.cmpi ne, %21, %c0_i32_15 : i32
    scf.if %22 {
      %c1_i32_136 = arith.constant 1 : i32
      %147 = arith.addi %arg1, %c1_i32_136 : i32
      %c4_i32 = arith.constant 4 : i32
      %148 = arith.muli %147, %c4_i32 : i32
      %149 = tpu.assume_multiple %148, 4 : i32
      %c1_i32_137 = arith.constant 1 : i32
      %150 = arith.subi %c1_i32_137, %9 : i32
      %c0_i32_138 = arith.constant 0 : i32
      %c0_i32_139 = arith.constant 0 : i32
      %c0_i32_140 = arith.constant 0 : i32
      %151 = tpu.memref_slice %arg2[%arg0, %149, %c0_i32_138, %c0_i32_139, %c0_i32_140] : memref<2x12x2x8x256xbf16, #tpu.memory_space<any>> -> memref<1x8x2x8x256xbf16, #tpu.memory_space<any>>
      %152 = tpu.memref_squeeze %151 : memref<1x8x2x8x256xbf16, #tpu.memory_space<any>> -> memref<8x2x8x256xbf16, #tpu.memory_space<any>>
      %c0_i32_141 = arith.constant 0 : i32
      %c0_i32_142 = arith.constant 0 : i32
      %c0_i32_143 = arith.constant 0 : i32
      %c0_i32_144 = arith.constant 0 : i32
      %153 = tpu.memref_slice %arg8[%150, %c0_i32_141, %c0_i32_142, %c0_i32_143, %c0_i32_144] : memref<2x8x2x8x256xbf16, #tpu.memory_space<vmem>> -> memref<1x8x2x8x256xbf16, #tpu.memory_space<vmem>>
      %154 = tpu.memref_squeeze %153 : memref<1x8x2x8x256xbf16, #tpu.memory_space<vmem>> -> memref<8x2x8x256xbf16, #tpu.memory_space<vmem>>
      %155 = tpu.memref_slice %arg11[%150] : memref<2x!tpu.dma_semaphore, #tpu.memory_space<semaphore_mem>> -> memref<1x!tpu.dma_semaphore, #tpu.memory_space<semaphore_mem>>
      %156 = tpu.memref_squeeze %155 : memref<1x!tpu.dma_semaphore, #tpu.memory_space<semaphore_mem>> -> memref<!tpu.dma_semaphore, #tpu.memory_space<semaphore_mem>>
      tpu.enqueue_dma source(%152 : memref<8x2x8x256xbf16, #tpu.memory_space<any>>) target(%154 : memref<8x2x8x256xbf16, #tpu.memory_space<vmem>>) target_semaphore(%156 : memref<!tpu.dma_semaphore, #tpu.memory_space<semaphore_mem>>)
    } else {
    }
    %23 = arith.index_cast %9 : i32 to index
    %c0 = arith.constant 0 : index
    %c0_16 = arith.constant 0 : index
    %c0_17 = arith.constant 0 : index
    %c0_18 = arith.constant 0 : index
    %24 = vector.load %arg8[%23, %c0, %c0_16, %c0_17, %c0_18] : memref<2x8x2x8x256xbf16, #tpu.memory_space<vmem>>, vector<1x8x2x8x256xbf16>
    %25 = vector.shape_cast %24 : vector<1x8x2x8x256xbf16> to vector<8x2x8x256xbf16>
    %26 = vector.extract_strided_slice %25 {offsets = [0, 0, 0, 0], sizes = [8, 1, 8, 256], strides = [1, 1, 1, 1]} : vector<8x2x8x256xbf16> to vector<8x1x8x256xbf16>
    %27 = vector.shape_cast %26 : vector<8x1x8x256xbf16> to vector<8x8x256xbf16>
    %28 = vector.extract_strided_slice %25 {offsets = [0, 1, 0, 0], sizes = [8, 1, 8, 256], strides = [1, 1, 1, 1]} : vector<8x2x8x256xbf16> to vector<8x1x8x256xbf16>
    %29 = vector.shape_cast %28 : vector<8x1x8x256xbf16> to vector<8x8x256xbf16>
    %30 = arith.maximumf %27, %29 : vector<8x8x256xbf16>
    %31 = vector.extract_strided_slice %30 {offsets = [0, 0, 0], sizes = [8, 8, 128], strides = [1, 1, 1]} : vector<8x8x256xbf16> to vector<8x8x128xbf16>
    %32 = vector.extract_strided_slice %30 {offsets = [0, 0, 128], sizes = [8, 8, 128], strides = [1, 1, 1]} : vector<8x8x256xbf16> to vector<8x8x128xbf16>
    %33 = arith.maximumf %31, %32 : vector<8x8x128xbf16>
    %c0_19 = arith.constant 0 : index
    %c1 = arith.constant 1 : index
    %c0_20 = arith.constant 0 : index
    %34 = vector.load %arg9[%c0_19, %c1, %c0_20] : memref<8x10x128xbf16, #tpu.memory_space<vmem>>, vector<8x8x128xbf16>
    tpu.vector_store %arg9[%c0_19, %c1, %c0_20], %33 {strides = array<i32>} : memref<8x10x128xbf16, #tpu.memory_space<vmem>>, vector<8x8x128xbf16>,
    %c0_21 = arith.constant 0 : index
    %c0_22 = arith.constant 0 : index
    %c0_23 = arith.constant 0 : index
    %35 = vector.load %arg9[%c0_21, %c0_22, %c0_23] : memref<8x10x128xbf16, #tpu.memory_space<vmem>>, vector<6x8x128xbf16>
    %36 = vector.shape_cast %35 : vector<6x8x128xbf16> to vector<48x128xbf16>
    %c0_24 = arith.constant 0 : index
    %c0_25 = arith.constant 0 : index
    %37 = vector.load %arg3[%c0_24, %c0_25] : memref<1152x128xbf16, #tpu.memory_space<vmem>>, vector<128x128xbf16>
    %cst = arith.constant dense<0.000000e+00> : vector<48x128xf32>
    %38 = tpu.matmul %36, %37, %cst {dimension_numbers = #tpu.dot_dimension_numbers<[1], [0], [0], [1], [0, 0, 1, 1], [], []>} : vector<48x128xbf16>, vector<128x128xbf16>, vector<48x128xf32> -> vector<48x128xf32>
    %c0_26 = arith.constant 0 : index
    %c1_27 = arith.constant 1 : index
    %c0_28 = arith.constant 0 : index
    %39 = vector.load %arg9[%c0_26, %c1_27, %c0_28] : memref<8x10x128xbf16, #tpu.memory_space<vmem>>, vector<6x8x128xbf16>
    %40 = vector.shape_cast %39 : vector<6x8x128xbf16> to vector<48x128xbf16>
    %c128 = arith.constant 128 : index
    %c0_29 = arith.constant 0 : index
    %41 = vector.load %arg3[%c128, %c0_29] : memref<1152x128xbf16, #tpu.memory_space<vmem>>, vector<128x128xbf16>
    %cst_30 = arith.constant dense<0.000000e+00> : vector<48x128xf32>
    %42 = tpu.matmul %40, %41, %cst_30 {dimension_numbers = #tpu.dot_dimension_numbers<[1], [0], [0], [1], [0, 0, 1, 1], [], []>} : vector<48x128xbf16>, vector<128x128xbf16>, vector<48x128xf32> -> vector<48x128xf32>
    %43 = arith.addf %38, %42 : vector<48x128xf32>
    %c0_31 = arith.constant 0 : index
    %c2 = arith.constant 2 : index
    %c0_32 = arith.constant 0 : index
    %44 = vector.load %arg9[%c0_31, %c2, %c0_32] : memref<8x10x128xbf16, #tpu.memory_space<vmem>>, vector<6x8x128xbf16>
    %45 = vector.shape_cast %44 : vector<6x8x128xbf16> to vector<48x128xbf16>
    %c256 = arith.constant 256 : index
    %c0_33 = arith.constant 0 : index
    %46 = vector.load %arg3[%c256, %c0_33] : memref<1152x128xbf16, #tpu.memory_space<vmem>>, vector<128x128xbf16>
    %cst_34 = arith.constant dense<0.000000e+00> : vector<48x128xf32>
    %47 = tpu.matmul %45, %46, %cst_34 {dimension_numbers = #tpu.dot_dimension_numbers<[1], [0], [0], [1], [0, 0, 1, 1], [], []>} : vector<48x128xbf16>, vector<128x128xbf16>, vector<48x128xf32> -> vector<48x128xf32>
    %48 = arith.addf %43, %47 : vector<48x128xf32>
    %c1_35 = arith.constant 1 : index
    %c0_36 = arith.constant 0 : index
    %c0_37 = arith.constant 0 : index
    %49 = vector.load %arg9[%c1_35, %c0_36, %c0_37] : memref<8x10x128xbf16, #tpu.memory_space<vmem>>, vector<6x8x128xbf16>
    %50 = vector.shape_cast %49 : vector<6x8x128xbf16> to vector<48x128xbf16>
    %c384 = arith.constant 384 : index
    %c0_38 = arith.constant 0 : index
    %51 = vector.load %arg3[%c384, %c0_38] : memref<1152x128xbf16, #tpu.memory_space<vmem>>, vector<128x128xbf16>
    %cst_39 = arith.constant dense<0.000000e+00> : vector<48x128xf32>
    %52 = tpu.matmul %50, %51, %cst_39 {dimension_numbers = #tpu.dot_dimension_numbers<[1], [0], [0], [1], [0, 0, 1, 1], [], []>} : vector<48x128xbf16>, vector<128x128xbf16>, vector<48x128xf32> -> vector<48x128xf32>
    %53 = arith.addf %48, %52 : vector<48x128xf32>
    %c1_40 = arith.constant 1 : index
    %c1_41 = arith.constant 1 : index
    %c0_42 = arith.constant 0 : index
    %54 = vector.load %arg9[%c1_40, %c1_41, %c0_42] : memref<8x10x128xbf16, #tpu.memory_space<vmem>>, vector<6x8x128xbf16>
    %55 = vector.shape_cast %54 : vector<6x8x128xbf16> to vector<48x128xbf16>
    %c512 = arith.constant 512 : index
    %c0_43 = arith.constant 0 : index
    %56 = vector.load %arg3[%c512, %c0_43] : memref<1152x128xbf16, #tpu.memory_space<vmem>>, vector<128x128xbf16>
    %cst_44 = arith.constant dense<0.000000e+00> : vector<48x128xf32>
    %57 = tpu.matmul %55, %56, %cst_44 {dimension_numbers = #tpu.dot_dimension_numbers<[1], [0], [0], [1], [0, 0, 1, 1], [], []>} : vector<48x128xbf16>, vector<128x128xbf16>, vector<48x128xf32> -> vector<48x128xf32>
    %58 = arith.addf %53, %57 : vector<48x128xf32>
    %c1_45 = arith.constant 1 : index
    %c2_46 = arith.constant 2 : index
    %c0_47 = arith.constant 0 : index
    %59 = vector.load %arg9[%c1_45, %c2_46, %c0_47] : memref<8x10x128xbf16, #tpu.memory_space<vmem>>, vector<6x8x128xbf16>
    %60 = vector.shape_cast %59 : vector<6x8x128xbf16> to vector<48x128xbf16>
    %c640 = arith.constant 640 : index
    %c0_48 = arith.constant 0 : index
    %61 = vector.load %arg3[%c640, %c0_48] : memref<1152x128xbf16, #tpu.memory_space<vmem>>, vector<128x128xbf16>
    %cst_49 = arith.constant dense<0.000000e+00> : vector<48x128xf32>
    %62 = tpu.matmul %60, %61, %cst_49 {dimension_numbers = #tpu.dot_dimension_numbers<[1], [0], [0], [1], [0, 0, 1, 1], [], []>} : vector<48x128xbf16>, vector<128x128xbf16>, vector<48x128xf32> -> vector<48x128xf32>
    %63 = arith.addf %58, %62 : vector<48x128xf32>
    %c2_50 = arith.constant 2 : index
    %c0_51 = arith.constant 0 : index
    %c0_52 = arith.constant 0 : index
    %64 = vector.load %arg9[%c2_50, %c0_51, %c0_52] : memref<8x10x128xbf16, #tpu.memory_space<vmem>>, vector<6x8x128xbf16>
    %65 = vector.shape_cast %64 : vector<6x8x128xbf16> to vector<48x128xbf16>
    %c768 = arith.constant 768 : index
    %c0_53 = arith.constant 0 : index
    %66 = vector.load %arg3[%c768, %c0_53] : memref<1152x128xbf16, #tpu.memory_space<vmem>>, vector<128x128xbf16>
    %cst_54 = arith.constant dense<0.000000e+00> : vector<48x128xf32>
    %67 = tpu.matmul %65, %66, %cst_54 {dimension_numbers = #tpu.dot_dimension_numbers<[1], [0], [0], [1], [0, 0, 1, 1], [], []>} : vector<48x128xbf16>, vector<128x128xbf16>, vector<48x128xf32> -> vector<48x128xf32>
    %68 = arith.addf %63, %67 : vector<48x128xf32>
    %c2_55 = arith.constant 2 : index
    %c1_56 = arith.constant 1 : index
    %c0_57 = arith.constant 0 : index
    %69 = vector.load %arg9[%c2_55, %c1_56, %c0_57] : memref<8x10x128xbf16, #tpu.memory_space<vmem>>, vector<6x8x128xbf16>
    %70 = vector.shape_cast %69 : vector<6x8x128xbf16> to vector<48x128xbf16>
    %c896 = arith.constant 896 : index
    %c0_58 = arith.constant 0 : index
    %71 = vector.load %arg3[%c896, %c0_58] : memref<1152x128xbf16, #tpu.memory_space<vmem>>, vector<128x128xbf16>
    %cst_59 = arith.constant dense<0.000000e+00> : vector<48x128xf32>
    %72 = tpu.matmul %70, %71, %cst_59 {dimension_numbers = #tpu.dot_dimension_numbers<[1], [0], [0], [1], [0, 0, 1, 1], [], []>} : vector<48x128xbf16>, vector<128x128xbf16>, vector<48x128xf32> -> vector<48x128xf32>
    %73 = arith.addf %68, %72 : vector<48x128xf32>
    %c2_60 = arith.constant 2 : index
    %c2_61 = arith.constant 2 : index
    %c0_62 = arith.constant 0 : index
    %74 = vector.load %arg9[%c2_60, %c2_61, %c0_62] : memref<8x10x128xbf16, #tpu.memory_space<vmem>>, vector<6x8x128xbf16>
    %75 = vector.shape_cast %74 : vector<6x8x128xbf16> to vector<48x128xbf16>
    %c1024 = arith.constant 1024 : index
    %c0_63 = arith.constant 0 : index
    %76 = vector.load %arg3[%c1024, %c0_63] : memref<1152x128xbf16, #tpu.memory_space<vmem>>, vector<128x128xbf16>
    %cst_64 = arith.constant dense<0.000000e+00> : vector<48x128xf32>
    %77 = tpu.matmul %75, %76, %cst_64 {dimension_numbers = #tpu.dot_dimension_numbers<[1], [0], [0], [1], [0, 0, 1, 1], [], []>} : vector<48x128xbf16>, vector<128x128xbf16>, vector<48x128xf32> -> vector<48x128xf32>
    %78 = arith.addf %73, %77 : vector<48x128xf32>
    %c0_65 = arith.constant 0 : index
    %c0_66 = arith.constant 0 : index
    %79 = vector.load %arg4[%c0_65, %c0_66] : memref<1x128xf32, #tpu.memory_space<vmem>>, vector<1x128xf32>
    %80 = vector.broadcast %79 : vector<1x128xf32> to vector<48x128xf32>
    %81 = arith.addf %78, %80 : vector<48x128xf32>
    %cst_67 = arith.constant 0.000000e+00 : f32
    %82 = vector.broadcast %cst_67 : f32 to vector<48x128xf32>
    %83 = arith.maximumf %81, %82 : vector<48x128xf32>
    %84 = vector.shape_cast %83 : vector<48x128xf32> to vector<6x8x128xf32>
    %85 = arith.truncf %84 : vector<6x8x128xf32> to vector<6x8x128xbf16>
    %c0_68 = arith.constant 0 : index
    %c1_69 = arith.constant 1 : index
    %c0_70 = arith.constant 0 : index
    %86 = vector.load %arg10[%c0_68, %c1_69, %c0_70] : memref<6x10x128xbf16, #tpu.memory_space<vmem>>, vector<6x8x128xbf16>
    tpu.vector_store %arg10[%c0_68, %c1_69, %c0_70], %85 {strides = array<i32>} : memref<6x10x128xbf16, #tpu.memory_space<vmem>>, vector<6x8x128xbf16>,
    %c0_i32_71 = arith.constant 0 : i32
    %87 = arith.cmpi eq, %arg1, %c0_i32_71 : i32
    %88 = arith.extui %87 : i1 to i32
    %c0_i32_72 = arith.constant 0 : i32
    %89 = arith.cmpi ne, %88, %c0_i32_72 : i32
    scf.if %89 {
      %cst_136 = arith.constant 0.000000e+00 : bf16
      %147 = vector.broadcast %cst_136 : bf16 to vector<10x128xbf16>
      %c0_137 = arith.constant 0 : index
      %c0_138 = arith.constant 0 : index
      %c0_139 = arith.constant 0 : index
      %148 = vector.load %arg10[%c0_137, %c0_138, %c0_139] : memref<6x10x128xbf16, #tpu.memory_space<vmem>>, vector<1x10x128xbf16>
      %149 = vector.shape_cast %148 : vector<1x10x128xbf16> to vector<10x128xbf16>
      %150 = vector.shape_cast %147 : vector<10x128xbf16> to vector<1x10x128xbf16>
      tpu.vector_store %arg10[%c0_137, %c0_138, %c0_139], %150 {strides = array<i32>} : memref<6x10x128xbf16, #tpu.memory_space<vmem>>, vector<1x10x128xbf16>,
    } else {
    }
    %c1_i32_73 = arith.constant 1 : i32
    %90 = arith.cmpi eq, %arg1, %c1_i32_73 : i32
    %91 = arith.extui %90 : i1 to i32
    %c0_i32_74 = arith.constant 0 : i32
    %92 = arith.cmpi ne, %91, %c0_i32_74 : i32
    scf.if %92 {
      %cst_136 = arith.constant 0.000000e+00 : bf16
      %147 = vector.broadcast %cst_136 : bf16 to vector<10x128xbf16>
      %c5 = arith.constant 5 : index
      %c0_137 = arith.constant 0 : index
      %c0_138 = arith.constant 0 : index
      %148 = vector.load %arg10[%c5, %c0_137, %c0_138] : memref<6x10x128xbf16, #tpu.memory_space<vmem>>, vector<1x10x128xbf16>
      %149 = vector.shape_cast %148 : vector<1x10x128xbf16> to vector<10x128xbf16>
      %150 = vector.shape_cast %147 : vector<10x128xbf16> to vector<1x10x128xbf16>
      tpu.vector_store %arg10[%c5, %c0_137, %c0_138], %150 {strides = array<i32>} : memref<6x10x128xbf16, #tpu.memory_space<vmem>>, vector<1x10x128xbf16>,
    } else {
    }
    %c0_75 = arith.constant 0 : index
    %c0_76 = arith.constant 0 : index
    %c0_77 = arith.constant 0 : index
    %93 = vector.load %arg10[%c0_75, %c0_76, %c0_77] : memref<6x10x128xbf16, #tpu.memory_space<vmem>>, vector<4x8x128xbf16>
    %94 = vector.shape_cast %93 : vector<4x8x128xbf16> to vector<32x128xbf16>
    %c0_78 = arith.constant 0 : index
    %c0_79 = arith.constant 0 : index
    %95 = vector.load %arg5[%c0_78, %c0_79] : memref<1152x128xbf16, #tpu.memory_space<vmem>>, vector<128x128xbf16>
    %cst_80 = arith.constant dense<0.000000e+00> : vector<32x128xf32>
    %96 = tpu.matmul %94, %95, %cst_80 {dimension_numbers = #tpu.dot_dimension_numbers<[1], [0], [0], [1], [0, 0, 1, 1], [], []>} : vector<32x128xbf16>, vector<128x128xbf16>, vector<32x128xf32> -> vector<32x128xf32>
    %c0_81 = arith.constant 0 : index
    %c1_82 = arith.constant 1 : index
    %c0_83 = arith.constant 0 : index
    %97 = vector.load %arg10[%c0_81, %c1_82, %c0_83] : memref<6x10x128xbf16, #tpu.memory_space<vmem>>, vector<4x8x128xbf16>
    %98 = vector.shape_cast %97 : vector<4x8x128xbf16> to vector<32x128xbf16>
    %c128_84 = arith.constant 128 : index
    %c0_85 = arith.constant 0 : index
    %99 = vector.load %arg5[%c128_84, %c0_85] : memref<1152x128xbf16, #tpu.memory_space<vmem>>, vector<128x128xbf16>
    %cst_86 = arith.constant dense<0.000000e+00> : vector<32x128xf32>
    %100 = tpu.matmul %98, %99, %cst_86 {dimension_numbers = #tpu.dot_dimension_numbers<[1], [0], [0], [1], [0, 0, 1, 1], [], []>} : vector<32x128xbf16>, vector<128x128xbf16>, vector<32x128xf32> -> vector<32x128xf32>
    %101 = arith.addf %96, %100 : vector<32x128xf32>
    %c0_87 = arith.constant 0 : index
    %c2_88 = arith.constant 2 : index
    %c0_89 = arith.constant 0 : index
    %102 = vector.load %arg10[%c0_87, %c2_88, %c0_89] : memref<6x10x128xbf16, #tpu.memory_space<vmem>>, vector<4x8x128xbf16>
    %103 = vector.shape_cast %102 : vector<4x8x128xbf16> to vector<32x128xbf16>
    %c256_90 = arith.constant 256 : index
    %c0_91 = arith.constant 0 : index
    %104 = vector.load %arg5[%c256_90, %c0_91] : memref<1152x128xbf16, #tpu.memory_space<vmem>>, vector<128x128xbf16>
    %cst_92 = arith.constant dense<0.000000e+00> : vector<32x128xf32>
    %105 = tpu.matmul %103, %104, %cst_92 {dimension_numbers = #tpu.dot_dimension_numbers<[1], [0], [0], [1], [0, 0, 1, 1], [], []>} : vector<32x128xbf16>, vector<128x128xbf16>, vector<32x128xf32> -> vector<32x128xf32>
    %106 = arith.addf %101, %105 : vector<32x128xf32>
    %c1_93 = arith.constant 1 : index
    %c0_94 = arith.constant 0 : index
    %c0_95 = arith.constant 0 : index
    %107 = vector.load %arg10[%c1_93, %c0_94, %c0_95] : memref<6x10x128xbf16, #tpu.memory_space<vmem>>, vector<4x8x128xbf16>
    %108 = vector.shape_cast %107 : vector<4x8x128xbf16> to vector<32x128xbf16>
    %c384_96 = arith.constant 384 : index
    %c0_97 = arith.constant 0 : index
    %109 = vector.load %arg5[%c384_96, %c0_97] : memref<1152x128xbf16, #tpu.memory_space<vmem>>, vector<128x128xbf16>
    %cst_98 = arith.constant dense<0.000000e+00> : vector<32x128xf32>
    %110 = tpu.matmul %108, %109, %cst_98 {dimension_numbers = #tpu.dot_dimension_numbers<[1], [0], [0], [1], [0, 0, 1, 1], [], []>} : vector<32x128xbf16>, vector<128x128xbf16>, vector<32x128xf32> -> vector<32x128xf32>
    %111 = arith.addf %106, %110 : vector<32x128xf32>
    %c1_99 = arith.constant 1 : index
    %c1_100 = arith.constant 1 : index
    %c0_101 = arith.constant 0 : index
    %112 = vector.load %arg10[%c1_99, %c1_100, %c0_101] : memref<6x10x128xbf16, #tpu.memory_space<vmem>>, vector<4x8x128xbf16>
    %113 = vector.shape_cast %112 : vector<4x8x128xbf16> to vector<32x128xbf16>
    %c512_102 = arith.constant 512 : index
    %c0_103 = arith.constant 0 : index
    %114 = vector.load %arg5[%c512_102, %c0_103] : memref<1152x128xbf16, #tpu.memory_space<vmem>>, vector<128x128xbf16>
    %cst_104 = arith.constant dense<0.000000e+00> : vector<32x128xf32>
    %115 = tpu.matmul %113, %114, %cst_104 {dimension_numbers = #tpu.dot_dimension_numbers<[1], [0], [0], [1], [0, 0, 1, 1], [], []>} : vector<32x128xbf16>, vector<128x128xbf16>, vector<32x128xf32> -> vector<32x128xf32>
    %116 = arith.addf %111, %115 : vector<32x128xf32>
    %c1_105 = arith.constant 1 : index
    %c2_106 = arith.constant 2 : index
    %c0_107 = arith.constant 0 : index
    %117 = vector.load %arg10[%c1_105, %c2_106, %c0_107] : memref<6x10x128xbf16, #tpu.memory_space<vmem>>, vector<4x8x128xbf16>
    %118 = vector.shape_cast %117 : vector<4x8x128xbf16> to vector<32x128xbf16>
    %c640_108 = arith.constant 640 : index
    %c0_109 = arith.constant 0 : index
    %119 = vector.load %arg5[%c640_108, %c0_109] : memref<1152x128xbf16, #tpu.memory_space<vmem>>, vector<128x128xbf16>
    %cst_110 = arith.constant dense<0.000000e+00> : vector<32x128xf32>
    %120 = tpu.matmul %118, %119, %cst_110 {dimension_numbers = #tpu.dot_dimension_numbers<[1], [0], [0], [1], [0, 0, 1, 1], [], []>} : vector<32x128xbf16>, vector<128x128xbf16>, vector<32x128xf32> -> vector<32x128xf32>
    %121 = arith.addf %116, %120 : vector<32x128xf32>
    %c2_111 = arith.constant 2 : index
    %c0_112 = arith.constant 0 : index
    %c0_113 = arith.constant 0 : index
    %122 = vector.load %arg10[%c2_111, %c0_112, %c0_113] : memref<6x10x128xbf16, #tpu.memory_space<vmem>>, vector<4x8x128xbf16>
    %123 = vector.shape_cast %122 : vector<4x8x128xbf16> to vector<32x128xbf16>
    %c768_114 = arith.constant 768 : index
    %c0_115 = arith.constant 0 : index
    %124 = vector.load %arg5[%c768_114, %c0_115] : memref<1152x128xbf16, #tpu.memory_space<vmem>>, vector<128x128xbf16>
    %cst_116 = arith.constant dense<0.000000e+00> : vector<32x128xf32>
    %125 = tpu.matmul %123, %124, %cst_116 {dimension_numbers = #tpu.dot_dimension_numbers<[1], [0], [0], [1], [0, 0, 1, 1], [], []>} : vector<32x128xbf16>, vector<128x128xbf16>, vector<32x128xf32> -> vector<32x128xf32>
    %126 = arith.addf %121, %125 : vector<32x128xf32>
    %c2_117 = arith.constant 2 : index
    %c1_118 = arith.constant 1 : index
    %c0_119 = arith.constant 0 : index
    %127 = vector.load %arg10[%c2_117, %c1_118, %c0_119] : memref<6x10x128xbf16, #tpu.memory_space<vmem>>, vector<4x8x128xbf16>
    %128 = vector.shape_cast %127 : vector<4x8x128xbf16> to vector<32x128xbf16>
    %c896_120 = arith.constant 896 : index
    %c0_121 = arith.constant 0 : index
    %129 = vector.load %arg5[%c896_120, %c0_121] : memref<1152x128xbf16, #tpu.memory_space<vmem>>, vector<128x128xbf16>
    %cst_122 = arith.constant dense<0.000000e+00> : vector<32x128xf32>
    %130 = tpu.matmul %128, %129, %cst_122 {dimension_numbers = #tpu.dot_dimension_numbers<[1], [0], [0], [1], [0, 0, 1, 1], [], []>} : vector<32x128xbf16>, vector<128x128xbf16>, vector<32x128xf32> -> vector<32x128xf32>
    %131 = arith.addf %126, %130 : vector<32x128xf32>
    %c2_123 = arith.constant 2 : index
    %c2_124 = arith.constant 2 : index
    %c0_125 = arith.constant 0 : index
    %132 = vector.load %arg10[%c2_123, %c2_124, %c0_125] : memref<6x10x128xbf16, #tpu.memory_space<vmem>>, vector<4x8x128xbf16>
    %133 = vector.shape_cast %132 : vector<4x8x128xbf16> to vector<32x128xbf16>
    %c1024_126 = arith.constant 1024 : index
    %c0_127 = arith.constant 0 : index
    %134 = vector.load %arg5[%c1024_126, %c0_127] : memref<1152x128xbf16, #tpu.memory_space<vmem>>, vector<128x128xbf16>
    %cst_128 = arith.constant dense<0.000000e+00> : vector<32x128xf32>
    %135 = tpu.matmul %133, %134, %cst_128 {dimension_numbers = #tpu.dot_dimension_numbers<[1], [0], [0], [1], [0, 0, 1, 1], [], []>} : vector<32x128xbf16>, vector<128x128xbf16>, vector<32x128xf32> -> vector<32x128xf32>
    %136 = arith.addf %131, %135 : vector<32x128xf32>
    %c0_129 = arith.constant 0 : index
    %c0_130 = arith.constant 0 : index
    %137 = vector.load %arg6[%c0_129, %c0_130] : memref<1x128xf32, #tpu.memory_space<vmem>>, vector<1x128xf32>
    %138 = vector.broadcast %137 : vector<1x128xf32> to vector<32x128xf32>
    %139 = arith.addf %136, %138 : vector<32x128xf32>
    %cst_131 = arith.constant 0.000000e+00 : f32
    %140 = vector.broadcast %cst_131 : f32 to vector<32x128xf32>
    %141 = arith.maximumf %139, %140 : vector<32x128xf32>
    %142 = vector.shape_cast %141 : vector<32x128xf32> to vector<4x8x128xf32>
    %143 = arith.truncf %142 : vector<4x8x128xf32> to vector<4x8x128xbf16>
    %c0_132 = arith.constant 0 : index
    %c0_133 = arith.constant 0 : index
    %c0_134 = arith.constant 0 : index
    %c0_135 = arith.constant 0 : index
    %144 = vector.load %arg7[%c0_132, %c0_133, %c0_134, %c0_135] : memref<1x4x8x128xbf16, #tpu.memory_space<vmem>>, vector<1x4x8x128xbf16>
    %145 = vector.shape_cast %144 : vector<1x4x8x128xbf16> to vector<4x8x128xbf16>
    %146 = vector.shape_cast %143 : vector<4x8x128xbf16> to vector<1x4x8x128xbf16>
    tpu.vector_store %arg7[%c0_132, %c0_133, %c0_134, %c0_135], %146 {strides = array<i32>} : memref<1x4x8x128xbf16, #tpu.memory_space<vmem>>, vector<1x4x8x128xbf16>,
    return
  }
  func.func @transform_1(%arg0: i32, %arg1: i32) -> (i32, i32) {
    %c0_i32 = arith.constant 0 : i32
    %c0_i32_0 = arith.constant 0 : i32
    %c0_i32_1 = arith.constant 0 : i32
    return %c0_i32, %c0_i32_0 : i32, i32
  }
  func.func @transform_2(%arg0: i32, %arg1: i32) -> (i32, i32) {
    %c0_i32 = arith.constant 0 : i32
    %c0_i32_0 = arith.constant 0 : i32
    %c0_i32_1 = arith.constant 0 : i32
    return %c0_i32, %c0_i32_0 : i32, i32
  }
  func.func @transform_3(%arg0: i32, %arg1: i32) -> (i32, i32) {
    %c0_i32 = arith.constant 0 : i32
    %c0_i32_0 = arith.constant 0 : i32
    %c0_i32_1 = arith.constant 0 : i32
    return %c0_i32, %c0_i32_0 : i32, i32
  }
  func.func @transform_4(%arg0: i32, %arg1: i32) -> (i32, i32) {
    %c0_i32 = arith.constant 0 : i32
    %c0_i32_0 = arith.constant 0 : i32
    %c0_i32_1 = arith.constant 0 : i32
    return %c0_i32, %c0_i32_0 : i32, i32
  }
  func.func @transform_5(%arg0: i32, %arg1: i32) -> (i32, i32, i32, i32) {
    %c0_i32 = arith.constant 0 : i32
    %c0_i32_0 = arith.constant 0 : i32
    %c0_i32_1 = arith.constant 0 : i32
    return %arg0, %arg1, %c0_i32, %c0_i32_0 : i32, i32, i32, i32
  }
}

</mosaic_0001>

<bundles_post_ra>
// kernel: down_forward.1
= control target key start
LH: loop header
LB: loop body
LE: loop exit
PB: predicated region body
PF: predicated region fallthrough
CT: control target
= control target key end

     0   :  { %s4497_s18 = smov 0   ;;  %s4499_s19 = smov 0   ;;  %s5459_s0 = inlined_call_operand.vmem [shape: bf16[2,12,2,8,256], index: 0, kind: input, shape index: {}]   ;;  %s5460_s1 = inlined_call_operand.vmem [shape: bf16[1152,128], index: 1, kind: input, shape index: {}]   ;;  %s5461_s2 = inlined_call_operand.vmem [shape: f32[1,128], index: 2, kind: input, shape index: {}]   ;;  %s5462_s3 = inlined_call_operand.vmem [shape: bf16[1152,128], index: 3, kind: input, shape index: {}]   ;;  %s5463_s4 = inlined_call_operand.vmem [shape: f32[1,128], index: 4, kind: input, shape index: {}]   ;;  %s5464_s5 = inlined_call_operand.vmem [shape: bf16[2,8,8,128], index: 5, kind: output, shape index: {}]  }
   0x1   :  { %s4501_s20 = smov 0   ;;  %s4503_s21 = smov 0  }
   0x2   :  { %s4505_s22 = smov 0  }
   0x3 LB: > { %s24_s23 = sadd.s32 1, %s4455_s20  ;;  %s27_s24 = sadd.s32 1, %s4459_s21  ;;  %s4463_s22 = sphi %s4505_s22, %s15_s22   ;;  %s4459_s21 = sphi %s4503_s21, %s5480_s21   ;;  %s4455_s20 = sphi %s4501_s20, %s5479_s20   ;;  %s4451_s19 = sphi %s4499_s19, %s5478_s19   ;;  %s4447_s18 = sphi %s4497_s18, %s5477_s18  }
   0x4   : > { %p25_p0 = scmp.ge.s32.totalorder %s24_s23, 2  ;;  %p3494_p1 = scmp.ge.s32.totalorder %s4463_s22, 1 }
   0x5   : > { %p167_p2 = scmp.lt.s32.totalorder %s4463_s22, 5 }
   0x6   : > { %s5482_s23 = smov (%p25_p0, %s24_s23), 0  ;;  %s5484_s24 = smov (!%p25_p0, %s27_s24), %s4459_s21 }
   0x7   : > { %p168_p3 = pnand %p3494_p1, %p167_p2  ;;  %p29_p4 = scmp.ge.s32.totalorder %s5484_s24, 2 }
   0x8   : > { %s3495_s25 = sshll.u32 (!%p168_p3), %s4447_s18, 2  ;;  %p193_p5 = scmp.lt.s32.totalorder (!%p168_p3), %s4451_s19, 1 }
   0x9   : > { %s5486_s24 = smov (%p29_p4, %s5484_s24), 0  ;;  %171 = sbr.rel (%p168_p3) target bundleno = 711 (0x2c7), region = 36 }
   0xa   : > { %p195_p6 = scmp.lt.s32.totalorder (!%p168_p3), %s3495_s25, 7  ;;  %p203_p7 = scmp.lt.s32.totalorder (!%p168_p3), %s4447_s18, 0 }
   0xb   : > { %s204_s28 = ssub.s32 (!%p168_p3), 0, %s4447_s18  ;;  %p3501_p9 = scmp.ne.s32.totalorder (!%p168_p3), %s4447_s18, 0 }
   0xc   : > { %s3498_s30 = smin.u32 (!%p168_p3), %s4447_s18, %s204_s28 }
   0xd   : > { %s206_s7 = sand.u32 (!%p168_p3), 1, %s3498_s30  }
   0xe   : > { %s194_s26 = scalar_select %p193_p5, %s4451_s19, 1 }
   0xf   : > { %s5488_s25 = smov (!%p195_p6, %s3495_s25), 7  ;;  %s207_s11 = ssub.s32 0, %s206_s7 }
  0x10   : > { %s3496_s27 = sshll.u32 %s194_s26, 3  ;;  %s5490_s11 = smov (!%p203_p7, %s207_s11), %s206_s7 }
  0x11   : > { %s198_s29 = sadd.s32 %s3496_s27, %s5488_s25  ;;  %p3500_p8 = scmp.lt.s32.totalorder %s5490_s11, 0 }
  0x12   : > { %s3497_s6 = sshll.u32 %s198_s29, 2  ;;  %s213_s12 = sadd.s32 2, %s5490_s11 }
  0x13   : > { %s4540_s10 = scalar_lea.vmem %s5464_s5, %s3497_s6  ;;  %s5492_s12 = smov (!%p3500_p8, %s213_s12), %s5490_s11 }
  0x14   : > { %218 = sbr.rel (%p3501_p9) target bundleno = 73 (0x49), region = 40 }
  0x15   : > { %s4198_s13 = smul.u32 (!%p3501_p9), 192, %s4451_s19 }
  0x17   : > { %s4613_s16 = scalar_lea.vmem (!%p3501_p9), %s5459_s0, %s4198_s13 }
  0x19   : > { %vm219_vm0 = vcmask 1040384   ;;  %vm220_vm1 = vsmask.f32 256  ;;  %v222_v0 = vld [vmem:[#allocation3] sm:$0x1]  ;;  %v323_v59 = vld [vmem:[%s4613_s16 + $0x8] sm:$0xff] }
  0x1a   : > { %vm4548_vm2 = vmand %vm219_vm0, %vm220_vm1  ;;  %v225_v2 = vld [vmem:[#allocation3 + $0x8] sm:$0x1]  ;;  %v228_v3 = vld [vmem:[#allocation3 + $0x10] sm:$0x1]  ;;  %vm246_vm3 = vsmask.f32 7938 }
  0x1b   : > { %v223_v4 = vsel %vm4548_vm2, 0, %v222_v0  ;;  %v226_v5 = vsel %vm4548_vm2, 0, %v225_v2  ;;  %v229_v6 = vsel %vm4548_vm2, 0, %v228_v3  ;;  %v231_v7 = vld [vmem:[#allocation3 + $0x18] sm:$0x1]  ;;  %vm4565_vm4 = vmand %vm219_vm0, %vm246_vm3  ;;  %v321_v58 = vld [vmem:[%s4613_s16] sm:$0xff] }
  0x1c   : > { %224 = vst [vmem:[#allocation3] sm:$0x1] %v223_v4  ;;  %v232_v8 = vsel %vm4548_vm2, 0, %v231_v7  ;;  %v234_v9 = vld [vmem:[#allocation3 + $0x20] sm:$0x1]  ;;  %v325_v60 = vld [vmem:[%s4613_s16 + $0x10] sm:$0xff] }
  0x1d   : > { %227 = vst [vmem:[#allocation3 + $0x8] sm:$0x1] %v226_v5  ;;  %v235_v10 = vsel %vm4548_vm2, 0, %v234_v9  ;;  %v237_v11 = vld [vmem:[#allocation3 + $0x28] sm:$0x1]  ;;  %v327_v61 = vld [vmem:[%s4613_s16 + $0x18] sm:$0xff] }
  0x1e   : > { %230 = vst [vmem:[#allocation3 + $0x10] sm:$0x1] %v229_v6  ;;  %v238_v12 = vsel %vm4548_vm2, 0, %v237_v11  ;;  %v240_v13 = vld [vmem:[#allocation3 + $0x30] sm:$0x1]  ;;  %v329_v62 = vld [vmem:[%s4613_s16 + $0x20] sm:$0xff] }
  0x1f   : > { %233 = vst [vmem:[#allocation3 + $0x18] sm:$0x1] %v232_v8  ;;  %v241_v15 = vsel %vm4548_vm2, 0, %v240_v13  ;;  %v243_v16 = vld [vmem:[#allocation3 + $0x38] sm:$0x1]  ;;  %v331_v63 = vld [vmem:[%s4613_s16 + $0x28] sm:$0xff] }
  0x20   : > { %236 = vst [vmem:[#allocation3 + $0x20] sm:$0x1] %v235_v10  ;;  %v244_v17 = vsel %vm4548_vm2, 0, %v243_v16  ;;  %v248_v18 = vld [vmem:[#allocation3 + $0x4] sm:$0x1]  ;;  %v333_v0 = vld [vmem:[%s4613_s16 + $0x30] sm:$0xff] }
  0x21   : > { %239 = vst [vmem:[#allocation3 + $0x28] sm:$0x1] %v238_v12  ;;  %v249_v19 = vsel %vm4565_vm4, 0, %v248_v18  ;;  %v251_v20 = vld [vmem:[#allocation3 + $0xc] sm:$0x1]  ;;  %v335_v1 = vld [vmem:[%s4613_s16 + $0x38] sm:$0xff] }
  0x22   : > { %242 = vst [vmem:[#allocation3 + $0x30] sm:$0x1] %v241_v15  ;;  %v252_v21 = vsel %vm4565_vm4, 0, %v251_v20  ;;  %v254_v22 = vld [vmem:[#allocation3 + $0x14] sm:$0x1]  ;;  %v337_v2 = vld [vmem:[%s4613_s16 + $0x40] sm:$0xff] }
  0x23   : > { %245 = vst [vmem:[#allocation3 + $0x38] sm:$0x1] %v244_v17  ;;  %v255_v23 = vsel %vm4565_vm4, 0, %v254_v22  ;;  %v257_v24 = vld [vmem:[#allocation3 + $0x1c] sm:$0x1]  ;;  %v339_v3 = vld [vmem:[%s4613_s16 + $0x48] sm:$0xff] }
  0x24   : > { %250 = vst [vmem:[#allocation3 + $0x4] sm:$0x1] %v249_v19  ;;  %v258_v25 = vsel %vm4565_vm4, 0, %v257_v24  ;;  %v260_v26 = vld [vmem:[#allocation3 + $0x24] sm:$0x1]  ;;  %v341_v4 = vld [vmem:[%s4613_s16 + $0x50] sm:$0xff] }
  0x25   : > { %253 = vst [vmem:[#allocation3 + $0xc] sm:$0x1] %v252_v21  ;;  %v261_v27 = vsel %vm4565_vm4, 0, %v260_v26  ;;  %v263_v28 = vld [vmem:[#allocation3 + $0x2c] sm:$0x1]  ;;  %v343_v5 = vld [vmem:[%s4613_s16 + $0x58] sm:$0xff] }
  0x26   : > { %256 = vst [vmem:[#allocation3 + $0x14] sm:$0x1] %v255_v23  ;;  %v264_v29 = vsel %vm4565_vm4, 0, %v263_v28  ;;  %v266_v30 = vld [vmem:[#allocation3 + $0x34] sm:$0x1]  ;;  %v345_v6 = vld [vmem:[%s4613_s16 + $0x60] sm:$0xff] }
  0x27   : > { %259 = vst [vmem:[#allocation3 + $0x1c] sm:$0x1] %v258_v25  ;;  %v267_v31 = vsel %vm4565_vm4, 0, %v266_v30  ;;  %v269_v32 = vld [vmem:[#allocation3 + $0x3c] sm:$0x1]  ;;  %v347_v7 = vld [vmem:[%s4613_s16 + $0x68] sm:$0xff] }
  0x28   : > { %262 = vst [vmem:[#allocation3 + $0x24] sm:$0x1] %v261_v27  ;;  %v270_v33 = vsel %vm4565_vm4, 0, %v269_v32  ;;  %v272_v34 = vld [vmem:[#allocation4] sm:$0x1]  ;;  %v349_v8 = vld [vmem:[%s4613_s16 + $0x70] sm:$0xff] }
  0x29   : > { %265 = vst [vmem:[#allocation3 + $0x2c] sm:$0x1] %v264_v29  ;;  %v273_v35 = vsel %vm4548_vm2, 0, %v272_v34  ;;  %v275_v36 = vld [vmem:[#allocation4 + $0x8] sm:$0x1]  ;;  %v351_v9 = vld [vmem:[%s4613_s16 + $0x78] sm:$0xff] }
  0x2a   : > { %268 = vst [vmem:[#allocation3 + $0x34] sm:$0x1] %v267_v31  ;;  %v276_v37 = vsel %vm4548_vm2, 0, %v275_v36  ;;  %v278_v38 = vld [vmem:[#allocation4 + $0x10] sm:$0x1] }
  0x2b   : > { %271 = vst [vmem:[#allocation3 + $0x3c] sm:$0x1] %v270_v33  ;;  %v279_v39 = vsel %vm4548_vm2, 0, %v278_v38  ;;  %v281_v40 = vld [vmem:[#allocation4 + $0x18] sm:$0x1] }
  0x2c   : > { %274 = vst [vmem:[#allocation4] sm:$0x1] %v273_v35  ;;  %v282_v41 = vsel %vm4548_vm2, 0, %v281_v40  ;;  %v284_v42 = vld [vmem:[#allocation4 + $0x20] sm:$0x1] }
  0x2d   : > { %277 = vst [vmem:[#allocation4 + $0x8] sm:$0x1] %v276_v37  ;;  %v285_v43 = vsel %vm4548_vm2, 0, %v284_v42  ;;  %v287_v44 = vld [vmem:[#allocation4 + $0x28] sm:$0x1] }
  0x2e   : > { %280 = vst [vmem:[#allocation4 + $0x10] sm:$0x1] %v279_v39  ;;  %v288_v45 = vsel %vm4548_vm2, 0, %v287_v44  ;;  %v290_v46 = vld [vmem:[#allocation4 + $0x4] sm:$0x1] }
  0x2f   : > { %283 = vst [vmem:[#allocation4 + $0x18] sm:$0x1] %v282_v41  ;;  %v291_v47 = vsel %vm4565_vm4, 0, %v290_v46  ;;  %v293_v48 = vld [vmem:[#allocation4 + $0xc] sm:$0x1] }
  0x30   : > { %286 = vst [vmem:[#allocation4 + $0x20] sm:$0x1] %v285_v43  ;;  %v294_v49 = vsel %vm4565_vm4, 0, %v293_v48  ;;  %v296_v50 = vld [vmem:[#allocation4 + $0x14] sm:$0x1] }
  0x31   : > { %289 = vst [vmem:[#allocation4 + $0x28] sm:$0x1] %v288_v45  ;;  %v297_v51 = vsel %vm4565_vm4, 0, %v296_v50  ;;  %v299_v52 = vld [vmem:[#allocation4 + $0x1c] sm:$0x1] }
  0x32   : > { %292 = vst [vmem:[#allocation4 + $0x4] sm:$0x1] %v291_v47  ;;  %v300_v53 = vsel %vm4565_vm4, 0, %v299_v52  ;;  %v302_v54 = vld [vmem:[#allocation4 + $0x24] sm:$0x1] }
  0x33   : > { %295 = vst [vmem:[#allocation4 + $0xc] sm:$0x1] %v294_v49  ;;  %v303_v55 = vsel %vm4565_vm4, 0, %v302_v54  ;;  %v305_v56 = vld [vmem:[#allocation4 + $0x2c] sm:$0x1] }
  0x34   : > { %298 = vst [vmem:[#allocation4 + $0x14] sm:$0x1] %v297_v51  ;;  %v306_v57 = vsel %vm4565_vm4, 0, %v305_v56 }
  0x35   : > { %301 = vst [vmem:[#allocation4 + $0x1c] sm:$0x1] %v300_v53 }
  0x36   : > { %304 = vst [vmem:[#allocation4 + $0x24] sm:$0x1] %v303_v55 }
  0x37   : > { %307 = vst [vmem:[#allocation4 + $0x2c] sm:$0x1] %v306_v57 }
  0x38   : > { %322 = vst [vmem:[#allocation2] sm:$0xff] %v321_v58 }
  0x39   : > { %324 = vst [vmem:[#allocation2 + $0x8] sm:$0xff] %v323_v59 }
  0x3a   : > { %326 = vst [vmem:[#allocation2 + $0x10] sm:$0xff] %v325_v60 }
  0x3b   : > { %328 = vst [vmem:[#allocation2 + $0x18] sm:$0xff] %v327_v61 }
  0x3c   : > { %330 = vst [vmem:[#allocation2 + $0x20] sm:$0xff] %v329_v62 }
  0x3d   : > { %332 = vst [vmem:[#allocation2 + $0x28] sm:$0xff] %v331_v63 }
  0x3e   : > { %334 = vst [vmem:[#allocation2 + $0x30] sm:$0xff] %v333_v0 }
  0x3f   : > { %336 = vst [vmem:[#allocation2 + $0x38] sm:$0xff] %v335_v1 }
  0x40   : > { %338 = vst [vmem:[#allocation2 + $0x40] sm:$0xff] %v337_v2 }
  0x41   : > { %340 = vst [vmem:[#allocation2 + $0x48] sm:$0xff] %v339_v3 }
  0x42   : > { %342 = vst [vmem:[#allocation2 + $0x50] sm:$0xff] %v341_v4 }
  0x43   : > { %344 = vst [vmem:[#allocation2 + $0x58] sm:$0xff] %v343_v5 }
  0x44   : > { %346 = vst [vmem:[#allocation2 + $0x60] sm:$0xff] %v345_v6 }
  0x45   : > { %348 = vst [vmem:[#allocation2 + $0x68] sm:$0xff] %v347_v7 }
  0x46   : > { %350 = vst [vmem:[#allocation2 + $0x70] sm:$0xff] %v349_v8 }
  0x47   : > { %352 = vst [vmem:[#allocation2 + $0x78] sm:$0xff] %v351_v9 }
  0x48   : > { %358 = vsyncadd [#allocation5], 2048 }
  0x49 PF: > { %s4199_s17 = sshll.u32 %s5492_s12, 7  ;;  %s362_s26 = scalar_lea.sflag [#allocation5], %s5492_s12 }
  0x4a   : > { %s4636_s25 = scalar_lea.vmem [#allocation2], %s4199_s17 }
  0x4b   : > { %4443 = dma.done.wait %s362_s26, 2048 }
  0x4c   : > { %4444 = vsyncadd %s362_s26, 4294965248  ;;  %s369_s27 = sadd.s32 1, %s4447_s18 }
  0x4d   : > { %p3505_p10 = scmp.ge.s32.totalorder %s369_s27, 2 }
  0x4e   : > { %s375_s28 = ssub.s32 (!%p3505_p10), 1, %s5492_s12  ;;  %s3506_s29 = sshll.u32 (!%p3505_p10), %s4447_s18, 4 }
  0x4f   : > { %373 = sbr.rel (%p3505_p10) target bundleno = 103 (0x67), region = 63  ;;  %s4200_s6 = sshll.u32 (!%p3505_p10), %s375_s28, 7 }
  0x50   : > { %s3441_s30 = smul.u32 (!%p3505_p10), 48, %s4451_s19  ;;  %s383_s19 = scalar_lea.vmem (!%p3505_p10), [#allocation2], %s4200_s6 }
  0x51   : > { %s384_s14 = scalar_lea.sflag (!%p3505_p10), [#allocation5], %s375_s28 }
  0x52   : > { %s3442_s7 = sadd.s32 (!%p3505_p10), %s3506_s29, %s3441_s30 }
  0x53   : > { %s3507_s8 = sshll.u32 (!%p3505_p10), %s3442_s7, 2 }
  0x54   : > { %s4648_s13 = scalar_lea.vmem %s5459_s0, %s3507_s8 }
  0x55   : > { %v3510_v10 = vld [vmem:[%s4648_s13 + $0x40] sm:$0xff]  ;;  %v3511_v11 = vld [vmem:[%s4648_s13 + $0x48] sm:$0xff]  ;;  %v3512_v12 = vld [vmem:[%s4648_s13 + $0x50] sm:$0xff] }
  0x56   : > { %396 = vst [vmem:[%s383_s19] sm:$0xff] %v3510_v10  ;;  %v3513_v13 = vld [vmem:[%s4648_s13 + $0x58] sm:$0xff]  ;;  %v3514_v14 = vld [vmem:[%s4648_s13 + $0x60] sm:$0xff]  ;;  %v3515_v15 = vld [vmem:[%s4648_s13 + $0x68] sm:$0xff] }
  0x57   : > { %398 = vst [vmem:[%s383_s19 + $0x8] sm:$0xff] %v3511_v11  ;;  %v3516_v16 = vld [vmem:[%s4648_s13 + $0x70] sm:$0xff]  ;;  %v3517_v17 = vld [vmem:[%s4648_s13 + $0x78] sm:$0xff]  ;;  %v3518_v18 = vld [vmem:[%s4648_s13 + $0x80] sm:$0xff] }
  0x58   : > { %400 = vst [vmem:[%s383_s19 + $0x10] sm:$0xff] %v3512_v12  ;;  %v3519_v19 = vld [vmem:[%s4648_s13 + $0x88] sm:$0xff]  ;;  %v3520_v20 = vld [vmem:[%s4648_s13 + $0x90] sm:$0xff]  ;;  %v3521_v21 = vld [vmem:[%s4648_s13 + $0x98] sm:$0xff] }
  0x59   : > { %402 = vst [vmem:[%s383_s19 + $0x18] sm:$0xff] %v3513_v13  ;;  %v3522_v22 = vld [vmem:[%s4648_s13 + $0xa0] sm:$0xff]  ;;  %v3523_v23 = vld [vmem:[%s4648_s13 + $0xa8] sm:$0xff]  ;;  %v3524_v24 = vld [vmem:[%s4648_s13 + $0xb0] sm:$0xff] }
  0x5a   : > { %404 = vst [vmem:[%s383_s19 + $0x20] sm:$0xff] %v3514_v14  ;;  %v3525_v25 = vld [vmem:[%s4648_s13 + $0xb8] sm:$0xff] }
  0x5b   : > { %406 = vst [vmem:[%s383_s19 + $0x28] sm:$0xff] %v3515_v15 }
  0x5c   : > { %408 = vst [vmem:[%s383_s19 + $0x30] sm:$0xff] %v3516_v16 }
  0x5d   : > { %410 = vst [vmem:[%s383_s19 + $0x38] sm:$0xff] %v3517_v17 }
  0x5e   : > { %412 = vst [vmem:[%s383_s19 + $0x40] sm:$0xff] %v3518_v18 }
  0x5f   : > { %414 = vst [vmem:[%s383_s19 + $0x48] sm:$0xff] %v3519_v19 }
  0x60   : > { %416 = vst [vmem:[%s383_s19 + $0x50] sm:$0xff] %v3520_v20 }
  0x61   : > { %418 = vst [vmem:[%s383_s19 + $0x58] sm:$0xff] %v3521_v21 }
  0x62   : > { %420 = vst [vmem:[%s383_s19 + $0x60] sm:$0xff] %v3522_v22 }
  0x63   : > { %422 = vst [vmem:[%s383_s19 + $0x68] sm:$0xff] %v3523_v23 }
  0x64   : > { %424 = vst [vmem:[%s383_s19 + $0x70] sm:$0xff] %v3524_v24 }
  0x65   : > { %426 = vst [vmem:[%s383_s19 + $0x78] sm:$0xff] %v3525_v25 }
  0x66   : > { %432 = vsyncadd %s384_s14, 2048 }
  0x67 PF: > { %v4227_v26 = vld [vmem:[%s5460_s1 + $0xb8] sm:$0xff]  ;;  %v4226_v30 = vld [vmem:[%s5460_s1 + $0xb0] sm:$0xff]  ;;  %v4225_v34 = vld [vmem:[%s5460_s1 + $0xa8] sm:$0xff]  ;;  %vm642_vm5 = vsmask.f32 7938  ;;  %vm641_vm6 = vcmask 1043456  }
  0x68   : > { %v4238_v27 = vld [vmem:[%s5460_s1 + $0xf8] sm:$0xff]  ;;  %1121 = vmatpush.bf16.msra.mxu2 %v4227_v26  ;;  %v4237_v31 = vld [vmem:[%s5460_s1 + $0xf0] sm:$0xff]  ;;  %v4236_v35 = vld [vmem:[%s5460_s1 + $0xe8] sm:$0xff]  ;;  %vm647_vm7 = vcmask 1040384   ;;  %vm648_vm8 = vsmask.f32 256 }
  0x69   : > { %v4219_v28 = vld [vmem:[%s5460_s1 + $0x78] sm:$0xff]  ;;  %1240 = vmatpush.bf16.msra.mxu3 %v4238_v27  ;;  %v4218_v32 = vld [vmem:[%s5460_s1 + $0x70] sm:$0xff]  ;;  %v4217_v36 = vld [vmem:[%s5460_s1 + $0x68] sm:$0xff]  ;;  %vm1018_vm11 = vcmask 1042432   ;;  %vm1019_vm12 = vcmask 1046532  }
  0x6a   : > { %v4211_v29 = vld [vmem:[%s5460_s1 + $0x38] sm:$0xff]  ;;  %886 = vmatpush.bf16.msra.mxu0 %v4219_v28  ;;  %v4210_v33 = vld [vmem:[%s5460_s1 + $0x30] sm:$0xff]  ;;  %v4209_v37 = vld [vmem:[%s5460_s1 + $0x28] sm:$0xff]  ;;  %vm723_vm13 = vsmask.f32 3328 }
  0x6b   : > { %976 = vmatpush.bf16.msra.mxu1 %v4211_v29  ;;  %v4224_v38 = vld [vmem:[%s5460_s1 + $0xa0] sm:$0xff]  ;;  %v4223_v56 = vld [vmem:[%s5460_s1 + $0x98] sm:$0xff]  ;;  %v4222_v16 = vld [vmem:[%s5460_s1 + $0x90] sm:$0xff]  ;;  %vm724_vm14 = vsmask.f32 7440 }
  0x6c   : > { %1122 = vmatpush.bf16.msra.mxu2 %v4226_v30  ;;  %v4235_v39 = vld [vmem:[%s5460_s1 + $0xe0] sm:$0xff]  ;;  %v434_v41 = vld [vmem:[%s4636_s25 + $0x8] sm:$0xff]  ;;  %v435_v42 = vld [vmem:[%s4636_s25 + $0x10] sm:$0xff] }
  0x6d   : > { %1241 = vmatpush.bf16.msra.mxu3 %v4237_v31  ;;  %v433_v40 = vld [vmem:[%s4636_s25] sm:$0xff]  ;;  %v436_v45 = vld [vmem:[%s4636_s25 + $0x18] sm:$0xff]  ;;  %v451_v48 = vunpack.c.l.bf16 %v435_v42  ;;  %v452_v49 = vunpack.c.h.bf16 %v435_v42  ;;  %v465_v50 = vunpack.c.l.bf16 %v434_v41  ;;  %v466_v51 = vunpack.c.h.bf16 %v434_v41  ;;  %v438_v55 = vld [vmem:[%s4636_s25 + $0x28] sm:$0xff] }
  0x6e   : > { %887 = vmatpush.bf16.msra.mxu0 %v4218_v32  ;;  %v4216_v43 = vld [vmem:[%s5460_s1 + $0x60] sm:$0xff]  ;;  %v449_v46 = vunpack.c.l.bf16 %v433_v40  ;;  %v450_v47 = vunpack.c.h.bf16 %v433_v40  ;;  %v467_v52 = vunpack.c.l.bf16 %v436_v45  ;;  %v468_v53 = vunpack.c.h.bf16 %v436_v45  ;;  %v4234_v57 = vld [vmem:[%s5460_s1 + $0xd8] sm:$0xff]  ;;  %v439_v62 = vld [vmem:[%s4636_s25 + $0x30] sm:$0xff] }
  0x6f   : > { %977 = vmatpush.bf16.msra.mxu1 %v4210_v33  ;;  %v4208_v44 = vld [vmem:[%s5460_s1 + $0x20] sm:$0xff]  ;;  %v4215_v63 = vld [vmem:[%s5460_s1 + $0x58] sm:$0xff]  ;;  %v469_v3 = vunpack.c.l.bf16 %v438_v55  ;;  %v470_v4 = vunpack.c.h.bf16 %v438_v55  ;;  %v455_v7 = vunpack.c.l.bf16 %v439_v62  ;;  %v456_v8 = vunpack.c.h.bf16 %v439_v62  ;;  %v442_v15 = vld [vmem:[%s4636_s25 + $0x48] sm:$0xff] }
  0x70   : > { %1123 = vmatpush.bf16.msra.mxu2 %v4225_v34  ;;  %v437_v54 = vld [vmem:[%s4636_s25 + $0x20] sm:$0xff]  ;;  %v481_v58 = vmax.f32 %v449_v46, %v465_v50  ;;  %v482_v59 = vmax.f32 %v450_v47, %v466_v51  ;;  %v483_v60 = vmax.f32 %v451_v48, %v467_v52  ;;  %v4207_v0 = vld [vmem:[%s5460_s1 + $0x18] sm:$0xff]  ;;  %v484_v1 = vmax.f32 %v452_v49, %v468_v53  ;;  %v4233_v17 = vld [vmem:[%s5460_s1 + $0xd0] sm:$0xff] }
  0x71   : > { %1242 = vmatpush.bf16.msra.mxu3 %v4236_v35  ;;  %v453_v61 = vunpack.c.l.bf16 %v437_v54  ;;  %v454_v2 = vunpack.c.h.bf16 %v437_v54  ;;  %v440_v5 = vld [vmem:[%s4636_s25 + $0x38] sm:$0xff]  ;;  %v441_v10 = vld [vmem:[%s4636_s25 + $0x40] sm:$0xff]  ;;  %v443_v20 = vld [vmem:[%s4636_s25 + $0x50] sm:$0xff]  ;;  %v473_v29 = vunpack.c.l.bf16 %v442_v15  ;;  %v474_v30 = vunpack.c.h.bf16 %v442_v15 }
  0x72   : > { %888 = vmatpush.bf16.msra.mxu0 %v4217_v36  ;;  %v497_v6 = vpack.c.bf16 %v482_v59, %v481_v58  ;;  %v471_v9 = vunpack.c.l.bf16 %v440_v5  ;;  %v498_v11 = vpack.c.bf16 %v484_v1, %v483_v60  ;;  %v472_v14 = vunpack.c.h.bf16 %v440_v5  ;;  %v4214_v21 = vld [vmem:[%s5460_s1 + $0x50] sm:$0xff]  ;;  %v444_v31 = vld [vmem:[%s4636_s25 + $0x58] sm:$0xff]  ;;  %v4221_v36 = vld [vmem:[%s5460_s1 + $0x88] sm:$0xff] }
  0x73   : > { %978 = vmatpush.bf16.msra.mxu1 %v4209_v37  ;;  %v485_v12 = vmax.f32 %v453_v61, %v469_v3  ;;  %v486_v13 = vmax.f32 %v454_v2, %v470_v4  ;;  %v4206_v22 = vld [vmem:[%s5460_s1 + $0x10] sm:$0xff]  ;;  %v457_v26 = vunpack.c.l.bf16 %v441_v10  ;;  %v458_v28 = vunpack.c.h.bf16 %v441_v10  ;;  %v4232_v37 = vld [vmem:[%s5460_s1 + $0xc8] sm:$0xff]  ;;  %v4220_v55 = vld [vmem:[%s5460_s1 + $0x80] sm:$0xff] }
  0x74   : > { %1124 = vmatpush.bf16.msra.mxu2 %v4224_v38  ;;  %v521_v18 = vrot.slane %v497_v6, 4  ;;  %v487_v19 = vmax.f32 %v455_v7, %v471_v9  ;;  %v522_v23 = vrot.slane %v498_v11, 4  ;;  %v488_v25 = vmax.f32 %v456_v8, %v472_v14  ;;  %v4213_v42 = vld [vmem:[%s5460_s1 + $0x48] sm:$0xff]  ;;  %vm4780_vm9 = vmand %vm641_vm6, %vm642_vm5  ;;  %v644_v5 = vld [vmem:[#allocation3] sm:$0xf] }
  0x75   : > { %1243 = vmatpush.bf16.msra.mxu3 %v4235_v39  ;;  %v499_v24 = vpack.c.bf16 %v486_v13, %v485_v12  ;;  %v459_v35 = vunpack.c.l.bf16 %v443_v20  ;;  %v489_v39 = vmax.f32 %v457_v26, %v473_v29  ;;  %v490_v40 = vmax.f32 %v458_v28, %v474_v30  ;;  %v4246_v6 = vld [vmem:[%s5460_s1 + $0x138] sm:$0xff]  ;;  %vm4790_vm10 = vmand %vm647_vm7, %vm648_vm8  ;;  %v650_v11 = vld [vmem:[#allocation3 + $0x4] sm:$0x1] }
  0x76   : > { %889 = vmatpush.bf16.msra.mxu0 %v4216_v43  ;;  %v537_v27 = vunpack.c.l.bf16 %v521_v18  ;;  %v538_v32 = vunpack.c.l.bf16 %v522_v23  ;;  %v500_v34 = vpack.c.bf16 %v488_v25, %v487_v19  ;;  %v460_v41 = vunpack.c.h.bf16 %v443_v20  ;;  %v4205_v43 = vld [vmem:[%s5460_s1 + $0x8] sm:$0xff]  ;;  %v4245_v28 = vld [vmem:[%s5460_s1 + $0x130] sm:$0xff]  ;;  %vm4828_vm15 = vmor %vm1018_vm11, %vm1019_vm12 }
  0x77   : > { %979 = vmatpush.bf16.msra.mxu1 %v4208_v44  ;;  %v523_v33 = vrot.slane %v499_v24, 4  ;;  %v475_v47 = vunpack.c.l.bf16 %v444_v31  ;;  %v501_v49 = vpack.c.bf16 %v490_v40, %v489_v39  ;;  %v476_v50 = vunpack.c.h.bf16 %v444_v31  ;;  %v656_v18 = vld [vmem:[#allocation3 + $0xc] sm:$0x1]  ;;  %v662_v30 = vld [vmem:[#allocation3 + $0x14] sm:$0x1]  ;;  %vm4858_vm0 = vmor %vm723_vm13, %vm724_vm14 }
  0x78   : > { %1125 = vmatpush.bf16.msra.mxu2 %v4223_v56  ;;  %v545_v38 = vmax.f32 %v481_v58, %v537_v27  ;;  %v546_v44 = vmax.f32 %v483_v60, %v538_v32  ;;  %v524_v46 = vrot.slane %v500_v34, 4  ;;  %v4231_v56 = vld [vmem:[%s5460_s1 + $0xc0] sm:$0xff]  ;;  %v659_v27 = vld [vmem:[#allocation3 + $0x10] sm:$0xf] }
  0x79   : > { %1244 = vmatpush.bf16.msra.mxu3 %v4234_v57  ;;  %v539_v45 = vunpack.c.l.bf16 %v523_v33  ;;  %v4764_v54 = vmax.f32 %v459_v35, %v475_v47  ;;  %v525_v59 = vrot.slane %v501_v49, 4  ;;  %v492_v60 = vmax.f32 %v460_v41, %v476_v50 }
  0x7a   : > { %890 = vmatpush.bf16.msra.mxu0 %v4215_v63  ;;  %v553_v48 = vpack.c.bf16 %v545_v38, %v545_v38  ;;  %v554_v51 = vpack.c.bf16 %v546_v44, %v546_v44  ;;  %v540_v53 = vunpack.c.l.bf16 %v524_v46  ;;  %v4212_v63 = vld [vmem:[%s5460_s1 + $0x40] sm:$0xff]  ;;  %v446_v44 = vld [vmem:[%s4636_s25 + $0x68] sm:$0xff] }
  0x7b   : > { %980 = vmatpush.bf16.msra.mxu1 %v4207_v0  ;;  %v547_v52 = vmax.f32 %v485_v12, %v539_v45  ;;  %v4204_v0 = vld [vmem:[%s5460_s1] sm:$0xff]  ;;  %v541_v7 = vunpack.c.l.bf16 %v525_v59  ;;  %v502_v8 = vpack.c.bf16 %v492_v60, %v4764_v54  ;;  %v4244_v46 = vld [vmem:[%s5460_s1 + $0x128] sm:$0xff] }
  0x7c   : > { %1126 = vmatpush.bf16.msra.mxu2 %v4222_v16  ;;  %v562_v57 = vshrl.u32 %v553_v48, 16  ;;  %v565_v58 = vshll.u32 %v553_v48, 16  ;;  %v570_v61 = vshrl.u32 %v554_v51, 16  ;;  %v573_v62 = vshll.u32 %v554_v51, 16 }
  0x7d   : > { %1245 = vmatpush.bf16.msra.mxu3 %v4233_v17  ;;  %v555_v1 = vpack.c.bf16 %v547_v52, %v547_v52  ;;  %v548_v2 = vmax.f32 %v487_v19, %v540_v53  ;;  %v653_v17 = vld [vmem:[#allocation3 + $0x8] sm:$0xf]  ;;  %v549_v19 = vmax.f32 %v489_v39, %v541_v7  ;;  %v4794_v20 = vrot.slane %v502_v8, 4  ;;  %v668_v53 = vld [vmem:[#allocation3 + $0x1c] sm:$0x1] }
  0x7e   : > { %891 = vmatpush.bf16.msra.mxu0 %v4214_v21  ;;  %v564_v3 = vrot.slane %v562_v57, 7  ;;  %v572_v9 = vrot.slane %v570_v61, 7  ;;  %v477_v52 = vunpack.c.l.bf16 %v446_v44 }
  0x7f   : > { %981 = vmatpush.bf16.msra.mxu1 %v4206_v22  ;;  %v578_v12 = vshrl.u32 %v555_v1, 16  ;;  %v581_v13 = vshll.u32 %v555_v1, 16  ;;  %v556_v14 = vpack.c.bf16 %v548_v2, %v548_v2  ;;  %v557_v31 = vpack.c.bf16 %v549_v19, %v549_v19 }
  0x80   : > { %1127 = vmatpush.bf16.msra.mxu2 %v4221_v36  ;;  %v567_v15 = vor.u32 %v565_v58, %v564_v3  ;;  %v568_v16 = vrot.slane %v564_v3, 4  ;;  %v575_v21 = vor.u32 %v573_v62, %v572_v9  ;;  %v576_v22 = vrot.slane %v572_v9, 4 }
  0x81   : > { %1246 = vmatpush.bf16.msra.mxu3 %v4232_v37  ;;  %v580_v23 = vrot.slane %v578_v12, 7  ;;  %v586_v24 = vshrl.u32 %v556_v14, 16  ;;  %v589_v29 = vshll.u32 %v556_v14, 16  ;;  %v665_v37 = vld [vmem:[#allocation3 + $0x18] sm:$0xf]  ;;  %v594_v38 = vshrl.u32 %v557_v31, 16 }
  0x82   : > { %892 = vmatpush.bf16.msra.mxu0 %v4213_v42  ;;  %v645_v25 = vsel %vm4780_vm9, %v567_v15, %v644_v5  ;;  %v651_v26 = vsel %vm4790_vm10, %v568_v16, %v650_v11  ;;  %v654_v32 = vsel %vm4780_vm9, %v575_v21, %v653_v17  ;;  %v657_v33 = vsel %vm4790_vm10, %v576_v22, %v656_v18  ;;  %v4265_v42 = vld [vmem:[%s5460_s1 + $0x1b8] sm:$0xff] }
  0x83   : > { %982 = vmatpush.bf16.msra.mxu1 %v4205_v43  ;;  %646 = vst [vmem:[#allocation3] sm:$0xf] %v645_v25  ;;  %v583_v34 = vor.u32 %v581_v13, %v580_v23  ;;  %v584_v35 = vrot.slane %v580_v23, 4  ;;  %v588_v36 = vrot.slane %v586_v24, 7  ;;  %v597_v41 = vshll.u32 %v557_v31, 16  ;;  %v445_v43 = vld [vmem:[%s4636_s25 + $0x60] sm:$0xff] }
  0x84   : > { %1128 = vmatpush.bf16.msra.mxu2 %v4220_v55  ;;  %652 = vst [vmem:[#allocation3 + $0x4] sm:$0x1] %v651_v26  ;;  %v4819_v47 = vrot.slane %v594_v38, 7  ;;  %v542_v48 = vunpack.c.l.bf16 %v4794_v20  ;;  %v461_v51 = vunpack.c.l.bf16 %v445_v43  ;;  %v462_v57 = vunpack.c.h.bf16 %v445_v43  ;;  %v4273_v5 = vld [vmem:[%s5460_s1 + $0x1f8] sm:$0xff]  ;;  %v4243_v24 = vld [vmem:[%s5460_s1 + $0x120] sm:$0xff]  ;;  %v4264_v43 = vld [vmem:[%s5460_s1 + $0x1b0] sm:$0xff] }
  0x85   : > { %1247 = vmatpush.bf16.msra.mxu3 %v4231_v56  ;;  %655 = vst [vmem:[#allocation3 + $0x8] sm:$0xf] %v654_v32  ;;  %v660_v39 = vsel %vm4780_vm9, %v583_v34, %v659_v27  ;;  %v663_v40 = vsel %vm4790_vm10, %v584_v35, %v662_v30  ;;  %v591_v45 = vor.u32 %v589_v29, %v588_v36  ;;  %v592_v49 = vrot.slane %v588_v36, 4  ;;  %v671_v56 = vld [vmem:[#allocation3 + $0x20] sm:$0xf] }
  0x86   : > { %893 = vmatpush.bf16.msra.mxu0 %v4212_v63  ;;  %658 = vst [vmem:[#allocation3 + $0xc] sm:$0x1] %v657_v33  ;;  %v599_v55 = vor.u32 %v597_v41, %v4819_v47  ;;  %v478_v58 = vunpack.c.h.bf16 %v446_v44  ;;  %v600_v61 = vrot.slane %v4819_v47, 4  ;;  %v4838_v13 = vmax.f32 %v461_v51, %v477_v52  ;;  %v674_v25 = vld [vmem:[#allocation3 + $0x24] sm:$0x1]  ;;  %v4272_v47 = vld [vmem:[%s5460_s1 + $0x1f0] sm:$0xff] }
  0x87   : > { %983 = vmatpush.bf16.msra.mxu1 %v4204_v0  ;;  %661 = vst [vmem:[#allocation3 + $0x10] sm:$0xf] %v660_v39  ;;  %v666_v50 = vsel %vm4780_vm9, %v591_v45, %v665_v37  ;;  %v669_v12 = vsel %vm4790_vm10, %v592_v49, %v668_v53  ;;  %v4254_v37 = vld [vmem:[%s5460_s1 + $0x178] sm:$0xff] }
  0x88   : > { %1709 = vmatpush.bf16.msrb.mxu2 %v4265_v42  ;;  %664 = vst [vmem:[#allocation3 + $0x14] sm:$0x1] %v663_v40  ;;  %v672_v18 = vsel %vm4780_vm9, %v599_v55, %v671_v56  ;;  %v4842_v19 = vmax.f32 %v462_v57, %v478_v58  ;;  %v675_v55 = vsel %vm4790_vm10, %v600_v61, %v674_v25  ;;  %v4253_v61 = vld [vmem:[%s5460_s1 + $0x170] sm:$0xff] }
  0x89   : > { %667 = vst [vmem:[#allocation3 + $0x18] sm:$0xf] %v666_v50  ;;  %1911 = vmatpush.bf16.msrb.mxu3 %v4273_v5 }
  0x8a   : > { %1442 = vmatpush.bf16.msrb.mxu0 %v4246_v6  ;;  %v1000_v59 = vld [vmem:[#allocation3] sm:$0xe]  ;;  %v550_v6 = vmax.f32 %v4764_v54, %v542_v48  ;;  %670 = vst [vmem:[#allocation3 + $0x1c] sm:$0x1] %v669_v12 }
  0x8b   : > { %v695_v60 = vld [vmem:[#allocation3] sm:$0xf]  ;;  %v717_v62 = vld [vmem:[#allocation3 + $0x4] sm:$0x1]  ;;  %v3602_v0 = vrot.slane %v1000_v59, 9  ;;  %1590 = vmatpush.bf16.msrb.mxu1 %v4254_v37  ;;  %v503_v59 = vpack.c.bf16 %v4842_v19, %v4838_v13 }
  0x8c   : > { %v727_v1 = vshrl.u32 %v695_v60, 16  ;;  %v730_v2 = vshll.u32 %v695_v60, 16  ;;  %v3560_v3 = vld [vmem:[#allocation3] sm:$0xf]  ;;  %v1001_v7 = vld [vmem:[#allocation3 + $0x8] sm:$0xe]  ;;  %v4866_v48 = vpack.c.bf16 %v550_v6, %v550_v6  ;;  %1710 = vmatpush.bf16.msrb.mxu2 %v4264_v43 }
  0x8d   : > { %v1023_v8 = vrot.slane %v717_v62, 5  ;;  %v3642_v9 = vld [vmem:[#allocation3 + $0x8] sm:$0xf]  ;;  %v736_v11 = vshll.u32 %v717_v62, 16  ;;  %v718_v14 = vld [vmem:[#allocation3 + $0xc] sm:$0x1]  ;;  %1912 = vmatpush.bf16.msrb.mxu3 %v4272_v47 }
  0x8e   : > { %1443 = vmatpush.bf16.msrb.mxu0 %v4245_v28  ;;  %v3603_v15 = vrot.slane %v1001_v7, 9  ;;  %v696_v16 = vld [vmem:[#allocation3 + $0x8] sm:$0xf]  ;;  %v729_v17 = vrot.slane %v727_v1, 4  ;;  %v1027_v20 = vrot.slane %v718_v14, 5  ;;  %v732_v22 = vrot.slane %v730_v2, 5 }
  0x8f   : > { %v1024_v54 = vsel %vm4828_vm15, %v3602_v0, %v1023_v8  ;;  %v4228_v21 = vld [vmem:[#allocation3 + $0xc] sm:$0xf0]  ;;  %v738_v23 = vrot.slane %v736_v11, 5  ;;  %v741_v28 = vshrl.u32 %v696_v16, 16  ;;  %v744_v29 = vshll.u32 %v696_v16, 16  ;;  %v4263_v2 = vld [vmem:[%s5460_s1 + $0x1a8] sm:$0xff]  ;;  %1591 = vmatpush.bf16.msrb.mxu1 %v4253_v61 }
  0x90   : > { %v1061_v26 = vunpack.c.l.b16 %v1024_v54  ;;  %v3643_v27 = vor.u32 %v4228_v21, %v3642_v9  ;;  %v4201_v30 = vld [vmem:[#allocation3 + $0x4] sm:$0xf0]  ;;  %v1028_v31 = vsel %vm4828_vm15, %v3603_v15, %v1027_v20  ;;  %v733_v32 = vor.u32 %v732_v22, %v729_v17  ;;  %v4851_v35 = vld [vmem:[#allocation3 + $0x14] sm:$0x1]  ;;  %v1002_v36 = vld [vmem:[#allocation3 + $0x10] sm:$0xe]  ;;  %1711 = vmatpush.bf16.msrb.mxu2 %v4263_v2 }
  0x91   : > { %v750_v33 = vshll.u32 %v718_v14, 16  ;;  %v3561_v34 = vor.u32 %v4201_v30, %v3560_v3  ;;  %v1062_v38 = vunpack.c.l.b16 %v1028_v31  ;;  %v743_v40 = vrot.slane %v741_v28, 4  ;;  %v1003_v45 = vld [vmem:[#allocation3 + $0x18] sm:$0xe]  ;;  %673 = vst [vmem:[#allocation3 + $0x20] sm:$0xf] %v672_v18 }
  0x92   : > { %1444 = vmatpush.bf16.msrb.mxu0 %v4244_v46  ;;  %1248 = vmatmul.bf16.vlgmr.msra.gmra.mxu3 %v3643_v27  ;;  %v746_v41 = vrot.slane %v744_v29, 5  ;;  %v3604_v42 = vrot.slane %v1002_v36, 9  ;;  %v734_v44 = vrot.slane %v733_v32, 4  ;;  %v1031_v46 = vrot.slane %v4851_v35, 5  ;;  %v697_v52 = vld [vmem:[#allocation3 + $0x10] sm:$0xf] }
  0x93   : > { %984 = vmatmul.bf16.vlgmr.msra.gmra.mxu1 %v3561_v34  ;;  %v1067_v49 = vpack.c.b16 %v1062_v38, %v1061_v26  ;;  %v752_v51 = vrot.slane %v750_v33, 5  ;;  %v698_v53 = vld [vmem:[#allocation3 + $0x18] sm:$0xf]  ;;  %v755_v57 = vshrl.u32 %v697_v52, 16  ;;  %v758_v58 = vshll.u32 %v697_v52, 16  ;;  %v4271_v16 = vld [vmem:[%s5460_s1 + $0x1e8] sm:$0xff] }
  0x94   : > { %v747_v50 = vor.u32 %v746_v41, %v743_v40  ;;  %v739_v56 = vsel %vm4858_vm0, %v734_v44, %v738_v23  ;;  %v4878_v0 = vsel %vm4828_vm15, %v3604_v42, %v1031_v46  ;;  %v3605_v1 = vrot.slane %v1003_v45, 9  ;;  %v720_v3 = vld [vmem:[#allocation3 + $0x1c] sm:$0x1]  ;;  %v4252_v17 = vld [vmem:[%s5460_s1 + $0x168] sm:$0xff]  ;;  %v4262_v21 = vld [vmem:[%s5460_s1 + $0x1a0] sm:$0xff]  ;;  %1913 = vmatpush.bf16.msrb.mxu3 %v4271_v16 }
  0x95   : > { %1129 = vmatmul.bf16.vlgmr.msra.gmra.mxu2 %v1067_v49  ;;  %v826_v62 = vunpack.c.l.b16 %v739_v56  ;;  %v757_v5 = vrot.slane %v755_v57, 4  ;;  %v760_v6 = vrot.slane %v758_v58, 5  ;;  %v769_v7 = vshrl.u32 %v698_v53, 16  ;;  %v4242_v15 = vld [vmem:[%s5460_s1 + $0x118] sm:$0xff]  ;;  %676 = vst [vmem:[#allocation3 + $0x24] sm:$0x1] %v675_v55  ;;  %1592 = vmatpush.bf16.msrb.mxu1 %v4252_v17 }
  0x96   : > { %1445 = vmatpush.bf16.msrb.mxu0 %v4243_v24  ;;  %v748_v60 = vrot.slane %v747_v50, 4  ;;  %v772_v8 = vshll.u32 %v698_v53, 16  ;;  %v1035_v11 = vrot.slane %v720_v3, 5  ;;  %v764_v12 = vshll.u32 %v4851_v35, 16  ;;  %v3646_v23 = vld [vmem:[#allocation3 + $0x18] sm:$0xf]  ;;  %1712 = vmatpush.bf16.msrb.mxu2 %v4262_v21 }
  0x97   : > { %v778_v14 = vshll.u32 %v720_v3, 16  ;;  %v761_v19 = vor.u32 %v760_v6, %v757_v5  ;;  %v771_v54 = vrot.slane %v769_v7, 4  ;;  %v3564_v24 = vld [vmem:[#allocation3 + $0x10] sm:$0xf]  ;;  %v602_v25 = vshrl.u32 %v4866_v48, 16  ;;  %v4270_v37 = vld [vmem:[%s5460_s1 + $0x1e0] sm:$0xff] }
  0x98   : > { %v753_v9 = vsel %vm4858_vm0, %v748_v60, %v752_v51  ;;  %v774_v20 = vrot.slane %v772_v8, 5  ;;  %v1036_v22 = vsel %vm4828_vm15, %v3605_v1, %v1035_v11  ;;  %v1063_v27 = vunpack.c.l.b16 %v4878_v0  ;;  %v4229_v28 = vld [vmem:[#allocation3 + $0x1c] sm:$0xf0]  ;;  %v4202_v29 = vld [vmem:[#allocation3 + $0x14] sm:$0xf0]  ;;  %v4241_v32 = vld [vmem:[%s5460_s1 + $0x110] sm:$0xff]  ;;  %1914 = vmatpush.bf16.msrb.mxu3 %v4270_v37 }
  0x99   : > { %v827_v18 = vunpack.c.l.b16 %v753_v9  ;;  %v677_v30 = vld [vmem:[#allocation3 + $0x28] sm:$0xf]  ;;  %v680_v31 = vld [vmem:[#allocation3 + $0x2c] sm:$0x1]  ;;  %v766_v33 = vrot.slane %v764_v12, 5  ;;  %v604_v35 = vrot.slane %v602_v25, 7  ;;  %v1064_v40 = vunpack.c.l.b16 %v1036_v22 }
  0x9a   : > { %1446 = vmatpush.bf16.msrb.mxu0 %v4242_v15  ;;  %v775_v34 = vor.u32 %v774_v20, %v771_v54  ;;  %v605_v36 = vshll.u32 %v4866_v48, 16  ;;  %v4251_v38 = vld [vmem:[%s5460_s1 + $0x160] sm:$0xff]  ;;  %v762_v41 = vrot.slane %v761_v19, 4  ;;  %v780_v42 = vrot.slane %v778_v14, 5  ;;  %v4261_v44 = vld [vmem:[%s5460_s1 + $0x198] sm:$0xff]  ;;  %v4240_v51 = vld [vmem:[%s5460_s1 + $0x108] sm:$0xff] }
  0x9b   : > { %v832_v26 = vpack.c.b16 %v827_v18, %v826_v62  ;;  %v527_v43 = vrot.slane %v503_v59, 4  ;;  %v699_v45 = vld [vmem:[#allocation3 + $0x20] sm:$0xf]  ;;  %v3647_v46 = vor.u32 %v4229_v28, %v3646_v23  ;;  %v608_v50 = vrot.slane %v604_v35, 4  ;;  %1593 = vmatpush.bf16.msrb.mxu1 %v4251_v38  ;;  %v4269_v59 = vld [vmem:[%s5460_s1 + $0x1d8] sm:$0xff]  ;;  %1713 = vmatpush.bf16.msrb.mxu2 %v4261_v44  ;;  %v4260_v2 = vld [vmem:[%s5460_s1 + $0x190] sm:$0xff] }
  0x9c   : > { %v776_v48 = vrot.slane %v775_v34, 4  ;;  %v607_v49 = vor.u32 %v605_v36, %v604_v35  ;;  %v3565_v52 = vor.u32 %v4202_v29, %v3564_v24  ;;  %v1004_v57 = vld [vmem:[#allocation3 + $0x20] sm:$0xe]  ;;  %v783_v58 = vshrl.u32 %v699_v45, 16  ;;  %v4250_v60 = vld [vmem:[%s5460_s1 + $0x158] sm:$0xff]  ;;  %1915 = vmatpush.bf16.msrb.mxu3 %v4269_v59  ;;  %v4268_v11 = vld [vmem:[%s5460_s1 + $0x1d0] sm:$0xff] }
  0x9d   : > { %894 = vmatmul.bf16.vlgmr.msra.gmra.mxu0 %v832_v26  ;;  %v543_v53 = vunpack.c.l.bf16 %v527_v43  ;;  %v681_v56 = vsel %vm4790_vm10, %v608_v50, %v680_v31  ;;  %v767_v62 = vsel %vm4858_vm0, %v762_v41, %v766_v33  ;;  %v721_v1 = vld [vmem:[#allocation3 + $0x24] sm:$0x1]  ;;  %v786_v61 = vshll.u32 %v699_v45, 16  ;;  %v4249_v12 = vld [vmem:[%s5460_s1 + $0x150] sm:$0xff]  ;;  %v4259_v18 = vld [vmem:[%s5460_s1 + $0x188] sm:$0xff] }
  0x9e   : > { %1447 = vmatpush.bf16.msrb.mxu0 %v4241_v32  ;;  %v678_v55 = vsel %vm4780_vm9, %v607_v49, %v677_v30  ;;  %v781_v0 = vsel %vm4858_vm0, %v776_v48, %v780_v42  ;;  %v1068_v3 = vpack.c.b16 %v1064_v40, %v1063_v27  ;;  %682 = vst [vmem:[#allocation3 + $0x2c] sm:$0x1] %v681_v56  ;;  %v4239_v5 = vld [vmem:[%s5460_s1 + $0x100] sm:$0xff]  ;;  %v828_v7 = vunpack.c.l.b16 %v767_v62  ;;  %v683_v20 = vld [vmem:[#allocation3 + $0x30] sm:$0xf]  ;;  %v4267_v21 = vld [vmem:[%s5460_s1 + $0x1c8] sm:$0xff] }
  0x9f   : > { %679 = vst [vmem:[#allocation3 + $0x28] sm:$0xf] %v678_v55  ;;  %v551_v47 = vmax.f32 %v4838_v13, %v543_v53  ;;  %v829_v8 = vunpack.c.l.b16 %v781_v0  ;;  %v3606_v9 = vrot.slane %v1004_v57, 9  ;;  %v1039_v13 = vrot.slane %v721_v1, 5  ;;  %1594 = vmatpush.bf16.msrb.mxu1 %v4250_v60  ;;  %1714 = vmatpush.bf16.msrb.mxu2 %v4260_v2  ;;  %v4248_v22 = vld [vmem:[%s5460_s1 + $0x148] sm:$0xff]  ;;  %v4258_v33 = vld [vmem:[%s5460_s1 + $0x180] sm:$0xff] }
  0xa0   : > { %v785_v16 = vrot.slane %v783_v58, 4  ;;  %v788_v17 = vrot.slane %v786_v61, 5  ;;  %v792_v19 = vshll.u32 %v721_v1, 16  ;;  %1916 = vmatpush.bf16.msrb.mxu3 %v4268_v11  ;;  %v1270_v27 = vld [vmem:[#allocation3 + $0x8] sm:$0xf]  ;;  %v4266_v40 = vld [vmem:[%s5460_s1 + $0x1c0] sm:$0xff] }
  0xa1   : > { %v559_v6 = vpack.c.bf16 %v551_v47, %v551_v47  ;;  %v833_v23 = vpack.c.b16 %v829_v8, %v828_v7  ;;  %v1040_v25 = vsel %vm4828_vm15, %v3606_v9, %v1039_v13  ;;  %v3568_v38 = vld [vmem:[#allocation3 + $0x20] sm:$0xf]  ;;  %v1272_v43 = vld [vmem:[#allocation3 + $0x10] sm:$0xf]  ;;  %v1283_v44 = vshrl.u32 %v1270_v27, 16  ;;  %v4281_v57 = vld [vmem:[%s5460_s1 + $0x238] sm:$0xff] }
  0xa2   : > { %1253 = vmatmul.bf16.gmra.mxu3 %v3647_v46  ;;  %1448 = vmatpush.bf16.msrb.mxu0 %v4240_v51  ;;  %v789_v31 = vor.u32 %v788_v17, %v785_v16  ;;  %v794_v35 = vrot.slane %v792_v19, 5  ;;  %v1739_v45 = vld [vmem:[#allocation3 + $0x10] sm:$0xf]  ;;  %v4247_v50 = vld [vmem:[%s5460_s1 + $0x140] sm:$0xff]  ;;  %v1065_v51 = vunpack.c.l.b16 %v1040_v25  ;;  %v1286_v55 = vshll.u32 %v1270_v27, 16 }
  0xa3   : > { %989 = vmatmul.bf16.gmra.mxu1 %v3565_v52  ;;  %v610_v14 = vshrl.u32 %v559_v6, 16  ;;  %v613_v15 = vshll.u32 %v559_v6, 16  ;;  %1715 = vmatpush.bf16.msrb.mxu2 %v4259_v18  ;;  %v1741_v56 = vld [vmem:[#allocation3 + $0x18] sm:$0xf]  ;;  %v1752_v60 = vshrl.u32 %v1739_v45, 16  ;;  %v1755_v62 = vshll.u32 %v1739_v45, 16 }
  0xa4   : > { %1595 = vmatpush.bf16.msrb.mxu1 %v4249_v12  ;;  %1917 = vmatpush.bf16.msrb.mxu3 %v4267_v21  ;;  %v790_v52 = vrot.slane %v789_v31, 4  ;;  %v1297_v1 = vshrl.u32 %v1272_v43, 16  ;;  %v1300_v47 = vshll.u32 %v1272_v43, 16  ;;  %v4981_v61 = vld [vmem:[#allocation3 + $0x14] sm:$0x1]  ;;  %v1766_v8 = vshrl.u32 %v1741_v56, 16 }
  0xa5   : > { %1134 = vmatmul.bf16.gmra.mxu2 %v1068_v3  ;;  %v4954_v54 = vrot.slane %v610_v14, 7  ;;  %v722_v28 = vld [vmem:[#allocation3 + $0x2c] sm:$0x1]  ;;  %v4280_v2 = vld [vmem:[%s5460_s1 + $0x230] sm:$0xff]  ;;  %v1754_v6 = vrot.slane %v1752_v60, 4  ;;  %v1757_v7 = vrot.slane %v1755_v62, 5 }
  0xa6   : > { %1449 = vmatpush.bf16.msrb.mxu0 %v4239_v5  ;;  %v1005_v24 = vld [vmem:[#allocation3 + $0x28] sm:$0xe]  ;;  %v1043_v34 = vrot.slane %v722_v28, 5  ;;  %v806_v37 = vshll.u32 %v722_v28, 16  ;;  %v4986_v5 = vld [vmem:[#allocation3 + $0x1c] sm:$0x1]  ;;  %v795_v13 = vsel %vm4858_vm0, %v790_v52, %v794_v35 }
  0xa7   : > { %v700_v26 = vld [vmem:[#allocation3 + $0x28] sm:$0xf]  ;;  %v3607_v29 = vrot.slane %v1005_v24, 9  ;;  %v615_v30 = vor.u32 %v613_v15, %v4954_v54  ;;  %1716 = vmatpush.bf16.msrb.mxu2 %v4258_v33  ;;  %v1271_v11 = vld [vmem:[#allocation3 + $0xc] sm:$0x1]  ;;  %v1285_v12 = vrot.slane %v1283_v44, 4  ;;  %v830_v28 = vunpack.c.l.b16 %v795_v13 }
  0xa8   : > { %v797_v32 = vshrl.u32 %v700_v26, 16  ;;  %v800_v36 = vshll.u32 %v700_v26, 16  ;;  %v4203_v49 = vld [vmem:[#allocation3 + $0x24] sm:$0xf0]  ;;  %1596 = vmatpush.bf16.msrb.mxu1 %v4248_v22  ;;  %v808_v53 = vrot.slane %v806_v37, 5  ;;  %1918 = vmatpush.bf16.msrb.mxu3 %v4266_v40  ;;  %v1769_v14 = vshll.u32 %v1741_v56, 16 }
  0xa9   : > { %v684_v41 = vsel %vm4780_vm9, %v615_v30, %v683_v20  ;;  %v1044_v46 = vsel %vm4828_vm15, %v3607_v29, %v1043_v34  ;;  %v3569_v0 = vor.u32 %v4203_v49, %v3568_v38  ;;  %v3650_v9 = vld [vmem:[#allocation3 + $0x28] sm:$0xf]  ;;  %v1288_v17 = vrot.slane %v1286_v55, 5  ;;  %v1473_v20 = vld [vmem:[#allocation3 + $0x10] sm:$0xe] }
  0xaa   : > { %v799_v42 = vrot.slane %v797_v32, 4  ;;  %685 = vst [vmem:[#allocation3 + $0x30] sm:$0xf] %v684_v41  ;;  %v802_v48 = vrot.slane %v800_v36, 5  ;;  %v1066_v58 = vunpack.c.l.b16 %v1044_v46  ;;  %2059 = vmatpush.bf16.msra.mxu0 %v4281_v57  ;;  %v1768_v18 = vrot.slane %v1766_v8, 4  ;;  %v4279_v26 = vld [vmem:[%s5460_s1 + $0x228] sm:$0xff] }
  0xab   : > { %v1472_v19 = vld [vmem:[#allocation3 + $0x8] sm:$0xe]  ;;  %v1758_v22 = vor.u32 %v1757_v7, %v1754_v6  ;;  %v1771_v24 = vrot.slane %v1769_v14, 5  ;;  %v1775_v25 = vshll.u32 %v4986_v5, 16  ;;  %v1299_v29 = vrot.slane %v1297_v1, 4  ;;  %v448_v7 = vld [vmem:[%s4636_s25 + $0x78] sm:$0xff] }
  0xac   : > { %v803_v59 = vor.u32 %v802_v48, %v799_v42  ;;  %1597 = vmatpush.bf16.msrb.mxu1 %v4247_v50  ;;  %v1069_v15 = vpack.c.b16 %v1066_v58, %v1065_v51  ;;  %v1302_v30 = vrot.slane %v1300_v47, 5  ;;  %v4997_v32 = vld [vmem:[#allocation3 + $0x10] sm:$0xf]  ;;  %v1273_v33 = vld [vmem:[#allocation3 + $0x14] sm:$0x1]  ;;  %v3716_v35 = vrot.slane %v1472_v19, 9 }
  0xad   : > { %899 = vmatmul.bf16.gmra.mxu0 %v833_v23  ;;  %v1761_v23 = vshll.u32 %v4981_v61, 16  ;;  %v1772_v34 = vor.u32 %v1771_v24, %v1768_v18  ;;  %v1492_v36 = vrot.slane %v1271_v11, 5  ;;  %v4999_v37 = vld [vmem:[#allocation3 + $0x14] sm:$0xf0]  ;;  %v1289_v38 = vor.u32 %v1288_v17, %v1285_v12  ;;  %v5002_v48 = vld [vmem:[%s4636_s25 + $0x70] sm:$0xff]  ;;  %v4278_v17 = vld [vmem:[%s5460_s1 + $0x220] sm:$0xff] }
  0xae   : > { %v804_v3 = vrot.slane %v803_v59, 4  ;;  %2060 = vmatpush.bf16.msra.mxu0 %v4280_v2  ;;  %v1292_v40 = vshll.u32 %v1271_v11, 16  ;;  %v3717_v41 = vrot.slane %v1473_v20, 9  ;;  %v1496_v42 = vrot.slane %v1273_v33, 5  ;;  %v1274_v56 = vld [vmem:[#allocation3 + $0x18] sm:$0xf] }
  0xaf   : > { %v1759_v43 = vrot.slane %v1758_v22, 4  ;;  %v1763_v44 = vrot.slane %v1761_v23, 5  ;;  %v1773_v45 = vrot.slane %v1772_v34, 4  ;;  %v1777_v46 = vrot.slane %v1775_v25, 5  ;;  %v1743_v57 = vld [vmem:[#allocation3 + $0x20] sm:$0xf] }
  0xb0   : > { %v809_v16 = vsel %vm4858_vm0, %v804_v3, %v808_v53  ;;  %v1303_v49 = vor.u32 %v1302_v30, %v1299_v29  ;;  %v1306_v50 = vshll.u32 %v1273_v33, 16  ;;  %v1493_v51 = vsel %vm4828_vm15, %v3716_v35, %v1492_v36  ;;  %v1276_v60 = vld [vmem:[#allocation3 + $0x20] sm:$0xf]  ;;  %v1745_v62 = vld [vmem:[#allocation3 + $0x28] sm:$0xf]  ;;  %v4277_v29 = vld [vmem:[%s5460_s1 + $0x218] sm:$0xff] }
  0xb1   : > { %v4230_v21 = vld [vmem:[#allocation3 + $0x2c] sm:$0xf0]  ;;  %v831_v31 = vunpack.c.l.b16 %v809_v16  ;;  %v1497_v52 = vsel %vm4828_vm15, %v3717_v41, %v1496_v42  ;;  %v3757_v55 = vor.u32 %v4999_v37, %v4997_v32  ;;  %v1290_v58 = vrot.slane %v1289_v38, 4  ;;  %v5020_v20 = vld [vmem:[#allocation3 + $0x24] sm:$0x1] }
  0xb2   : > { %v3651_v27 = vor.u32 %v4230_v21, %v3650_v9  ;;  %2061 = vmatpush.bf16.msra.mxu0 %v4279_v26  ;;  %v1294_v59 = vrot.slane %v1292_v40, 5  ;;  %v464_v1 = vunpack.c.h.bf16 %v5002_v48  ;;  %v1764_v47 = vsel %vm4858_vm0, %v1759_v43, %v1763_v44  ;;  %v5022_v21 = vld [vmem:[#allocation3 + $0x2c] sm:$0x1]  ;;  %v1475_v41 = vld [vmem:[#allocation3 + $0x20] sm:$0xe] }
  0xb3   : > { %994 = vmatmul.bf16.gmra.mxu1 %v3569_v0  ;;  %v834_v53 = vpack.c.b16 %v831_v31, %v830_v28  ;;  %v463_v0 = vunpack.c.l.bf16 %v5002_v48  ;;  %v1778_v2 = vsel %vm4858_vm0, %v1773_v45, %v1777_v46  ;;  %v1530_v3 = vunpack.c.l.b16 %v1493_v51  ;;  %v1474_v28 = vld [vmem:[#allocation3 + $0x18] sm:$0xe]  ;;  %v1275_v43 = vld [vmem:[#allocation3 + $0x1c] sm:$0x1] }
  0xb4   : > { %1258 = vmatmul.bf16.gmra.mxu3 %v3651_v27  ;;  %v1531_v6 = vunpack.c.l.b16 %v1497_v52  ;;  %v1304_v8 = vrot.slane %v1303_v49, 4  ;;  %v1308_v9 = vrot.slane %v1306_v50, 5  ;;  %v1311_v13 = vshrl.u32 %v1274_v56, 16  ;;  %v686_v52 = vld [vmem:[#allocation3 + $0x34] sm:$0x1] }
  0xb5   : > { %1139 = vmatmul.bf16.gmra.mxu2 %v1069_v15  ;;  %v1780_v11 = vshrl.u32 %v1743_v57, 16  ;;  %v1314_v12 = vshll.u32 %v1274_v56, 16  ;;  %v1325_v14 = vshrl.u32 %v1276_v60, 16  ;;  %v1783_v15 = vshll.u32 %v1743_v57, 16 }
  0xb6   : > { %v1794_v16 = vshrl.u32 %v1745_v62, 16  ;;  %v1851_v18 = vunpack.c.l.b16 %v1764_v47  ;;  %v1852_v19 = vunpack.c.l.b16 %v1778_v2  ;;  %v1797_v22 = vshll.u32 %v1745_v62, 16  ;;  %2062 = vmatpush.bf16.msra.mxu0 %v4278_v17 }
  0xb7   : > { %v479_v23 = vunpack.c.l.bf16 %v448_v7  ;;  %v1536_v24 = vpack.c.b16 %v1531_v6, %v1530_v3  ;;  %v1782_v25 = vrot.slane %v1780_v11, 4  ;;  %v1785_v26 = vrot.slane %v1783_v15, 5 }
  0xb8   : > { %v1796_v27 = vrot.slane %v1794_v16, 4  ;;  %v616_v30 = vrot.slane %v4954_v54, 4  ;;  %v1295_v31 = vsel %vm4858_vm0, %v1290_v58, %v1294_v59  ;;  %v1328_v33 = vshll.u32 %v1276_v60, 16  ;;  %v1277_v54 = vld [vmem:[#allocation3 + $0x24] sm:$0x1] }
  0xb9   : > { %v1799_v34 = vrot.slane %v1797_v22, 5  ;;  %v1309_v35 = vsel %vm4858_vm0, %v1304_v8, %v1308_v9  ;;  %v1313_v36 = vrot.slane %v1311_v13, 4  ;;  %v1316_v38 = vrot.slane %v1314_v12, 5 }
  0xba   : > { %v1327_v40 = vrot.slane %v1325_v14, 4  ;;  %v1857_v42 = vpack.c.b16 %v1852_v19, %v1851_v18  ;;  %v1789_v44 = vshll.u32 %v5020_v20, 16  ;;  %v1803_v45 = vshll.u32 %v5022_v21, 16  ;;  %2063 = vmatpush.bf16.msra.mxu0 %v4277_v29  ;;  %v4256_v29 = vld [vmem:[#allocation3 + $0x24] sm:$0xf0] }
  0xbb   : > { %v3718_v46 = vrot.slane %v1474_v28, 9  ;;  %v1786_v48 = vor.u32 %v1785_v26, %v1782_v25  ;;  %v1800_v49 = vor.u32 %v1799_v34, %v1796_v27  ;;  %v1500_v50 = vrot.slane %v1275_v43, 5  ;;  %v1278_v26 = vld [vmem:[#allocation3 + $0x28] sm:$0xf]  ;;  %v3760_v28 = vld [vmem:[#allocation3 + $0x20] sm:$0xf] }
  0xbc   : > { %v480_v51 = vunpack.c.h.bf16 %v448_v7  ;;  %v3719_v56 = vrot.slane %v1475_v41, 9  ;;  %v1504_v57 = vrot.slane %v1277_v54, 5  ;;  %v495_v58 = vmax.f32 %v463_v0, %v479_v23  ;;  %v4276_v7 = vld [vmem:[%s5460_s1 + $0x210] sm:$0xff]  ;;  %v4275_v27 = vld [vmem:[%s5460_s1 + $0x208] sm:$0xff] }
  0xbd   : > { %904 = vmatmul.bf16.gmra.mxu0 %v834_v53  ;;  %v1330_v53 = vrot.slane %v1328_v33, 5  ;;  %v1382_v59 = vunpack.c.l.b16 %v1295_v31  ;;  %v1383_v60 = vunpack.c.l.b16 %v1309_v35  ;;  %v1320_v62 = vshll.u32 %v1275_v43, 16  ;;  %v1747_v43 = vld [vmem:[#allocation3 + $0x30] sm:$0xf] }
  0xbe   : > { %v496_v47 = vmax.f32 %v464_v1, %v480_v51  ;;  %v1317_v2 = vor.u32 %v1316_v38, %v1313_v36  ;;  %v1791_v3 = vrot.slane %v1789_v44, 5  ;;  %v1805_v6 = vrot.slane %v1803_v45, 5  ;;  %2064 = vmatpush.bf16.msra.mxu0 %v4276_v7  ;;  %v1280_v36 = vld [vmem:[#allocation3 + $0x30] sm:$0xf]  ;;  %v4274_v38 = vld [vmem:[%s5460_s1 + $0x200] sm:$0xff] }
  0xbf   : > { %v687_v8 = vsel %vm4790_vm10, %v616_v30, %v686_v52  ;;  %v1787_v0 = vrot.slane %v1786_v48, 4  ;;  %v1801_v9 = vrot.slane %v1800_v49, 4  ;;  %v1501_v1 = vsel %vm4828_vm15, %v3718_v46, %v1500_v50  ;;  %v1477_v48 = vld [vmem:[#allocation3 + $0x30] sm:$0xe]  ;;  %v689_v51 = vld [vmem:[#allocation3 + $0x38] sm:$0xf] }
  0xc0   : > { %v504_v13 = vpack.c.bf16 %v496_v47, %v495_v58  ;;  %688 = vst [vmem:[#allocation3 + $0x34] sm:$0x1] %v687_v8  ;;  %v1331_v32 = vor.u32 %v1330_v53, %v1327_v40  ;;  %v1334_v37 = vshll.u32 %v1277_v54, 16  ;;  %v1388_v11 = vpack.c.b16 %v1383_v60, %v1382_v59  ;;  %v1476_v54 = vld [vmem:[#allocation3 + $0x28] sm:$0xe] }
  0xc1   : > { %v1318_v14 = vrot.slane %v1317_v2, 4  ;;  %v1322_v15 = vrot.slane %v1320_v62, 5  ;;  %v1532_v16 = vunpack.c.l.b16 %v1501_v1  ;;  %v1792_v17 = vsel %vm4858_vm0, %v1787_v0, %v1791_v3  ;;  %v1279_v52 = vld [vmem:[#allocation3 + $0x2c] sm:$0x1]  ;;  %v692_v47 = vld [vmem:[#allocation3 + $0x3c] sm:$0x1] }
  0xc2   : > { %v528_v12 = vrot.slane %v504_v13, 4  ;;  %v1806_v18 = vsel %vm4858_vm0, %v1801_v9, %v1805_v6  ;;  %v1332_v23 = vrot.slane %v1331_v32, 4  ;;  %v1853_v30 = vunpack.c.l.b16 %v1792_v17  ;;  %2065 = vmatpush.bf16.msra.mxu0 %v4275_v27 }
  0xc3   : > { %1598 = vmatmul.bf16.vlgmr.msrb.gmra.mxu1 %v1536_v24  ;;  %v1336_v24 = vrot.slane %v1334_v37, 5  ;;  %v1854_v31 = vunpack.c.l.b16 %v1806_v18  ;;  %v1323_v33 = vsel %vm4858_vm0, %v1318_v14, %v1322_v15  ;;  %v1339_v41 = vshrl.u32 %v1278_v26, 16 }
  0xc4   : > { %1919 = vmatmul.bf16.vlgmr.msrb.gmra.mxu3 %v1857_v42  ;;  %v544_v22 = vunpack.c.l.bf16 %v528_v12  ;;  %v1342_v42 = vshll.u32 %v1278_v26, 16  ;;  %v3761_v44 = vor.u32 %v4256_v29, %v3760_v28  ;;  %v1384_v49 = vunpack.c.l.b16 %v1323_v33  ;;  %v3764_v33 = vld [vmem:[#allocation3 + $0x30] sm:$0xf] }
  0xc5   : > { %1717 = vmatmul.bf16.vlgmr.msrb.gmra.mxu2 %v3757_v55  ;;  %v1505_v55 = vsel %vm4828_vm15, %v3719_v56, %v1504_v57  ;;  %v1337_v40 = vsel %vm4858_vm0, %v1332_v23, %v1336_v24  ;;  %v1858_v50 = vpack.c.b16 %v1854_v31, %v1853_v30  ;;  %v1353_v53 = vshrl.u32 %v1280_v36, 16 }
  0xc6   : > { %v1533_v19 = vunpack.c.l.b16 %v1505_v55  ;;  %v552_v25 = vmax.f32 %v495_v58, %v544_v22  ;;  %v1356_v56 = vshll.u32 %v1280_v36, 16  ;;  %v1385_v57 = vunpack.c.l.b16 %v1337_v40  ;;  %2066 = vmatpush.bf16.msra.mxu0 %v4274_v38 }
  0xc7   : > { %v1281_v59 = vld [vmem:[#allocation3 + $0x34] sm:$0x1]  ;;  %v1808_v60 = vshrl.u32 %v1747_v43, 16  ;;  %v1811_v62 = vshll.u32 %v1747_v43, 16  ;;  %v3720_v2 = vrot.slane %v1476_v54, 9  ;;  %v1508_v3 = vrot.slane %v1279_v52, 5 }
  0xc8   : > { %v1537_v34 = vpack.c.b16 %v1533_v19, %v1532_v16  ;;  %v560_v35 = vpack.c.bf16 %v552_v25, %v552_v25  ;;  %v3721_v6 = vrot.slane %v1477_v48, 9  ;;  %v1512_v7 = vrot.slane %v1281_v59, 5  ;;  %v5068_v19 = vld [vmem:[#allocation3 + $0x34] sm:$0x1] }
  0xc9   : > { %v1341_v9 = vrot.slane %v1339_v41, 4  ;;  %v1344_v1 = vrot.slane %v1342_v42, 5  ;;  %v1355_v13 = vrot.slane %v1353_v53, 4  ;;  %v1358_v32 = vrot.slane %v1356_v56, 5 }
  0xca   : > { %v618_v45 = vshrl.u32 %v560_v35, 16  ;;  %v621_v46 = vshll.u32 %v560_v35, 16  ;;  %v1813_v12 = vrot.slane %v1811_v62, 5  ;;  %v1509_v14 = vsel %vm4828_vm15, %v3720_v2, %v1508_v3  ;;  %v1941_v2 = vld [vmem:[#allocation3 + $0x10] sm:$0xe] }
  0xcb   : > { %v1513_v15 = vsel %vm4828_vm15, %v3721_v6, %v1512_v7  ;;  %v1389_v16 = vpack.c.b16 %v1385_v57, %v1384_v49  ;;  %v1345_v17 = vor.u32 %v1344_v1, %v1341_v9  ;;  %v1348_v18 = vshll.u32 %v1279_v52, 16  ;;  %v1942_v3 = vld [vmem:[#allocation3 + $0x18] sm:$0xe] }
  0xcc   : > { %v620_v58 = vrot.slane %v618_v45, 7  ;;  %v1359_v22 = vor.u32 %v1358_v32, %v1355_v13  ;;  %v1362_v23 = vshll.u32 %v1281_v59, 16  ;;  %v1534_v24 = vunpack.c.l.b16 %v1509_v14 }
  0xcd   : > { %1450 = vmatmul.bf16.vlgmr.msrb.gmra.mxu0 %v1388_v11  ;;  %v1810_v11 = vrot.slane %v1808_v60, 4  ;;  %v1535_v25 = vunpack.c.l.b16 %v1513_v15  ;;  %v1817_v27 = vshll.u32 %v5068_v19, 16  ;;  %v1346_v28 = vrot.slane %v1345_v17, 4 }
  0xce   : > { %v623_v8 = vor.u32 %v621_v46, %v620_v58  ;;  %v624_v0 = vrot.slane %v620_v58, 4  ;;  %v1350_v29 = vrot.slane %v1348_v18, 5  ;;  %v1360_v30 = vrot.slane %v1359_v22, 4 }
  0xcf   : > { %v1814_v26 = vor.u32 %v1813_v12, %v1810_v11  ;;  %v1364_v31 = vrot.slane %v1362_v23, 5  ;;  %v1538_v36 = vpack.c.b16 %v1535_v25, %v1534_v24  ;;  %v1819_v41 = vrot.slane %v1817_v27, 5  ;;  %v1944_v11 = vld [vmem:[#allocation3 + $0x28] sm:$0xe]  ;;  %v1945_v23 = vld [vmem:[#allocation3 + $0x30] sm:$0xe] }
  0xd0   : > { %v690_v37 = vsel %vm4780_vm9, %v623_v8, %v689_v51  ;;  %v693_v55 = vsel %vm4790_vm10, %v624_v0, %v692_v47  ;;  %v1961_v6 = vrot.slane %v4981_v61, 5  ;;  %v1965_v7 = vrot.slane %v4986_v5, 5 }
  0xd1   : > { %691 = vst [vmem:[#allocation3 + $0x38] sm:$0xf] %v690_v37  ;;  %v1815_v40 = vrot.slane %v1814_v26, 4  ;;  %v1365_v54 = vsel %vm4858_vm0, %v1360_v30, %v1364_v31  ;;  %v3830_v8 = vrot.slane %v1941_v2, 9  ;;  %v3831_v0 = vrot.slane %v1942_v3, 9 }
  0xd2   : > { %694 = vst [vmem:[#allocation3 + $0x3c] sm:$0x1] %v693_v55  ;;  %v1387_v56 = vunpack.c.l.b16 %v1365_v54  ;;  %v1943_v55 = vld [vmem:[#allocation3 + $0x20] sm:$0xe]  ;;  %v1969_v14 = vrot.slane %v5020_v20, 5  ;;  %v3833_v61 = vrot.slane %v1944_v11, 9 }
  0xd3   : > { %1603 = vmatmul.bf16.gmra.mxu1 %v1537_v34  ;;  %v1962_v9 = vsel %vm4828_vm15, %v3830_v8, %v1961_v6  ;;  %v1966_v1 = vsel %vm4828_vm15, %v3831_v0, %v1965_v7  ;;  %v3832_v12 = vrot.slane %v1943_v55, 9  ;;  %v1973_v5 = vrot.slane %v5022_v21, 5 }
  0xd4   : > { %1924 = vmatmul.bf16.gmra.mxu3 %v1858_v50  ;;  %v1820_v50 = vsel %vm4858_vm0, %v1815_v40, %v1819_v41  ;;  %v1999_v13 = vunpack.c.l.b16 %v1962_v9  ;;  %v2000_v32 = vunpack.c.l.b16 %v1966_v1  ;;  %v3834_v25 = vrot.slane %v1945_v23, 9 }
  0xd5   : > { %1722 = vmatmul.bf16.gmra.mxu2 %v3761_v44  ;;  %v1351_v44 = vsel %vm4858_vm0, %v1346_v28, %v1350_v29  ;;  %v1855_v58 = vunpack.c.l.b16 %v1820_v50  ;;  %v1970_v15 = vsel %vm4828_vm15, %v3832_v12, %v1969_v14  ;;  %v1977_v26 = vrot.slane %v5068_v19, 5 }
  0xd6   : > { %v1386_v53 = vunpack.c.l.b16 %v1351_v44  ;;  %v2005_v37 = vpack.c.b16 %v2000_v32, %v1999_v13  ;;  %v2001_v17 = vunpack.c.l.b16 %v1970_v15 }
  0xd7   : > { %v1978_v21 = vsel %vm4828_vm15, %v3834_v25, %v1977_v26  ;;  %v5113_v25 = vld [vmem:[%s5461_s2] ss:$0 sm:$0xff] }
  0xd8   : > { %v4257_v34 = vld [vmem:[#allocation3 + $0x34] sm:$0xf0]  ;;  %v1390_v60 = vpack.c.b16 %v1387_v56, %v1386_v53  ;;  %v2003_v29 = vunpack.c.l.b16 %v1978_v21 }
  0xd9   : > { %v1749_v35 = vld [vmem:[#allocation3 + $0x38] sm:$0xf]  ;;  %v1750_v38 = vld [vmem:[#allocation3 + $0x3c] sm:$0x1]  ;;  %v3765_v46 = vor.u32 %v4257_v34, %v3764_v33 }
  0xda   : > { %v1822_v42 = vshrl.u32 %v1749_v35, 16  ;;  %v1825_v43 = vshll.u32 %v1749_v35, 16  ;;  %v1831_v45 = vshll.u32 %v1750_v38, 16  ;;  %v1946_v24 = vld [vmem:[#allocation3 + $0x38] sm:$0xe]  ;;  %v1981_v20 = vrot.slane %v1750_v38, 5 }
  0xdb   : > { %v3835_v27 = vrot.slane %v1946_v24, 9 }
  0xdc   : > { %v1824_v48 = vrot.slane %v1822_v42, 4  ;;  %v1827_v49 = vrot.slane %v1825_v43, 5  ;;  %v1833_v52 = vrot.slane %v1831_v45, 5 }
  0xdd   : > { %1455 = vmatmul.bf16.gmra.mxu0 %v1389_v16  ;;  %v1974_v16 = vsel %vm4828_vm15, %v3833_v61, %v1973_v5  ;;  %v1982_v28 = vsel %vm4828_vm15, %v3835_v27, %v1981_v20 }
  0xde   : > { %v1828_v51 = vor.u32 %v1827_v49, %v1824_v48  ;;  %v2002_v18 = vunpack.c.l.b16 %v1974_v16  ;;  %v2004_v30 = vunpack.c.l.b16 %v1982_v28 }
  0xe0   : > { %v1829_v57 = vrot.slane %v1828_v51, 4  ;;  %v2006_v22 = vpack.c.b16 %v2002_v18, %v2001_v17  ;;  %v2007_v31 = vpack.c.b16 %v2004_v30, %v2003_v29 }
  0xe2   : > { %v1834_v59 = vsel %vm4858_vm0, %v1829_v57, %v1833_v52 }
  0xe3   : > { %1608 = vmatmul.bf16.gmra.mxu1 %v1538_v36  ;;  %v1856_v62 = vunpack.c.l.b16 %v1834_v59 }
  0xe5   : > { %1727 = vmatmul.bf16.gmra.mxu2 %v3765_v46  ;;  %v1859_v47 = vpack.c.b16 %v1856_v62, %v1855_v58 }
  0xe7   : > { %1929 = vmatmul.bf16.gmra.mxu3 %v1859_v47 }
  0xed   : > { %1460 = vmatmul.bf16.gmra.mxu0 %v1390_v60 }
  0xfd   : > { %2067 = vmatmul.bf16.vlgmr.msra.gmra.mxu0 %v2005_v37 }
 0x10d   : > { %2072 = vmatmul.bf16.gmra.mxu0 %v2006_v22 }
 0x110   : > { %v985_v35 = vpop.f32.mrf.mxu1 }
 0x115   : > { %v1249_v41 = vpop.f32.mrf.mxu3 }
 0x118   : > { %v1130_v40 = vpop.f32.mrf.mxu2  ;;  %v987_v19 = vpop.f32.mrf.mxu1 }
 0x11a   : > { %v895_v33 = vpop.f32.mrf.mxu0 }
 0x11b   : > { %v986_v2 = vadd.f32 %v985_v35, %v895_v33 }
 0x11d   : > { %2077 = vmatmul.bf16.gmra.mxu0 %v2007_v31  ;;  %v1251_v44 = vpop.f32.mrf.mxu3  ;;  %v1145_v7 = vadd.f32 %v1130_v40, %v986_v2 }
 0x11f   : > { %v1264_v9 = vadd.f32 %v1249_v41, %v1145_v7  ;;  %v2174_v7 = vld [vmem:[#allocation4 + $0x4] sm:$0x1] }
 0x120   : > { %v1132_v43 = vpop.f32.mrf.mxu2  ;;  %v990_v45 = vpop.f32.mrf.mxu1 }
 0x122   : > { %v897_v34 = vpop.f32.mrf.mxu0 }
 0x123   : > { %v988_v1 = vadd.f32 %v987_v19, %v897_v34 }
 0x125   : > { %v1254_v48 = vpop.f32.mrf.mxu3  ;;  %v1146_v55 = vadd.f32 %v1132_v43, %v988_v1 }
 0x127   : > { %v1265_v5 = vadd.f32 %v1251_v44, %v1146_v55 }
 0x128   : > { %v1135_v46 = vpop.f32.mrf.mxu2  ;;  %v992_v49 = vpop.f32.mrf.mxu1 }
 0x12a   : > { %v900_v36 = vpop.f32.mrf.mxu0 }
 0x12b   : > { %v991_v12 = vadd.f32 %v990_v45, %v900_v36 }
 0x12d   : > { %v1256_v52 = vpop.f32.mrf.mxu3  ;;  %v1147_v17 = vadd.f32 %v1135_v46, %v991_v12 }
 0x12f   : > { %v1266_v26 = vadd.f32 %v1254_v48, %v1147_v17 }
 0x130   : > { %v1137_v51 = vpop.f32.mrf.mxu2  ;;  %v995_v53 = vpop.f32.mrf.mxu1 }
 0x132   : > { %v902_v42 = vpop.f32.mrf.mxu0 }
 0x133   : > { %v993_v20 = vadd.f32 %v992_v49, %v902_v42 }
 0x135   : > { %v1148_v33 = vadd.f32 %v1137_v51, %v993_v20  ;;  %v2171_v51 = vld [vmem:[#allocation4] sm:$0xf] }
 0x137   : > { %v5098_v58 = vpop.f32.mrf.mxu3  ;;  %v1267_v45 = vadd.f32 %v1256_v52, %v1148_v33 }
 0x138   : > { %v1140_v57 = vpop.f32.mrf.mxu2  ;;  %v5100_v60 = vpop.f32.mrf.mxu1 }
 0x13a   : > { %v905_v38 = vpop.f32.mrf.mxu0 }
 0x13b   : > { %v996_v19 = vadd.f32 %v995_v53, %v905_v38 }
 0x13d   : > { %v1149_v2 = vadd.f32 %v1140_v57, %v996_v19 }
 0x13f   : > { %v5104_v3 = vpop.f32.mrf.mxu3 }
 0x140   : > { %v5102_v62 = vpop.f32.mrf.mxu2  ;;  %v1599_v6 = vpop.f32.mrf.mxu1 }
 0x142   : > { %v5096_v54 = vpop.f32.mrf.mxu0 }
 0x143   : > { %v998_v55 = vadd.f32 %v5100_v60, %v5096_v54 }
 0x147   : > { %v1920_v13 = vpop.f32.mrf.mxu3 }
 0x148   : > { %v1718_v8 = vpop.f32.mrf.mxu2  ;;  %v1601_v37 = vpop.f32.mrf.mxu1 }
 0x14a   : > { %v1451_v50 = vpop.f32.mrf.mxu0 }
 0x14b   : > { %v1466_v32 = vadd.f32 %v1451_v50, %v1264_v9 }
 0x14d   : > { %v1614_v11 = vadd.f32 %v1599_v6, %v1466_v32  ;;  %v1268_v32 = vadd.f32 %v5098_v58, %v1149_v2  ;;  %v1150_v58 = vadd.f32 %v5102_v62, %v998_v55 }
 0x14f   : > { %v1733_v15 = vadd.f32 %v1718_v8, %v1614_v11  ;;  %v1922_v18 = vpop.f32.mrf.mxu3 }
 0x150   : > { %v1720_v14 = vpop.f32.mrf.mxu2  ;;  %v1604_v22 = vpop.f32.mrf.mxu1 }
 0x151   : > { %v1935_v23 = vadd.f32 %v1920_v13, %v1733_v15 }
 0x152   : > { %v1453_v56 = vpop.f32.mrf.mxu0 }
 0x153   : > { %v1467_v16 = vadd.f32 %v1453_v56, %v1265_v5 }
 0x155   : > { %v1615_v24 = vadd.f32 %v1601_v37, %v1467_v16 }
 0x157   : > { %v1734_v30 = vadd.f32 %v1720_v14, %v1615_v24  ;;  %v1925_v36 = vpop.f32.mrf.mxu3 }
 0x158   : > { %v1723_v29 = vpop.f32.mrf.mxu2  ;;  %v1606_v43 = vpop.f32.mrf.mxu1 }
 0x159   : > { %v1936_v40 = vadd.f32 %v1922_v18, %v1734_v30  ;;  %v1269_v30 = vadd.f32 %v5104_v3, %v1150_v58 }
 0x15a   : > { %v1456_v59 = vpop.f32.mrf.mxu0 }
 0x15b   : > { %v1468_v28 = vadd.f32 %v1456_v59, %v1266_v26 }
 0x15d   : > { %v1616_v35 = vadd.f32 %v1604_v22, %v1468_v28  ;;  %v2177_v22 = vld [vmem:[#allocation4 + $0x8] sm:$0xf] }
 0x15f   : > { %v1735_v50 = vadd.f32 %v1723_v29, %v1616_v35  ;;  %v1927_v37 = vpop.f32.mrf.mxu3 }
 0x160   : > { %v1725_v6 = vpop.f32.mrf.mxu2  ;;  %v1609_v5 = vpop.f32.mrf.mxu1 }
 0x161   : > { %v1937_v13 = vadd.f32 %v1925_v36, %v1735_v50 }
 0x162   : > { %v1458_v47 = vpop.f32.mrf.mxu0 }
 0x163   : > { %v1469_v42 = vadd.f32 %v1458_v47, %v1267_v45 }
 0x165   : > { %v1617_v38 = vadd.f32 %v1606_v43, %v1469_v42  ;;  %v2183_v43 = vld [vmem:[#allocation4 + $0x10] sm:$0xf] }
 0x167   : > { %v1736_v15 = vadd.f32 %v1725_v6, %v1617_v38  ;;  %v2192_v38 = vld [vmem:[#allocation4 + $0x1c] sm:$0x1] }
 0x168   : > { %v1728_v54 = vpop.f32.mrf.mxu2  ;;  %v1611_v19 = vpop.f32.mrf.mxu1 }
 0x169   : > { %v1938_v60 = vadd.f32 %v1927_v37, %v1736_v15 }
 0x16a   : > { %v5106_v0 = vpop.f32.mrf.mxu0 }
 0x16b   : > { %v1470_v14 = vadd.f32 %v5106_v0, %v1268_v32 }
 0x16d   : > { %v1618_v20 = vadd.f32 %v1609_v5, %v1470_v14 }
 0x16f   : > { %v1737_v33 = vadd.f32 %v1728_v54, %v1618_v20 }
 0x172   : > { %v5108_v61 = vpop.f32.mrf.mxu0 }
 0x173   : > { %v1471_v35 = vadd.f32 %v5108_v61, %v1269_v30  ;;  %v1730_v61 = vpop.f32.mrf.mxu2 }
 0x175   : > { %v1619_v42 = vadd.f32 %v1611_v19, %v1471_v35 }
 0x17a   : > { %v2068_v27 = vpop.f32.mrf.mxu0 }
 0x17b   : > { %v2083_v21 = vadd.f32 %v2068_v27, %v1935_v23  ;;  %v2180_v23 = vld [vmem:[#allocation4 + $0xc] sm:$0x1] }
 0x17d   : > { %v2093_v31 = vadd.f32 %v5113_v25, %v2083_v21 }
 0x17f   : > { %v2099_v34 = vmax.f32 %v2093_v31, 0.0 }
 0x181   : > { %v2105_v41 = vpack.c.bf16 %v2099_v34, %v2099_v34  ;;  %v1930_v34 = vpop.f32.mrf.mxu3 }
 0x182   : > { %v2070_v44 = vpop.f32.mrf.mxu0  ;;  %v1939_v50 = vadd.f32 %v1930_v34, %v1737_v33 }
 0x183   : > { %v2112_v46 = vshrl.u32 %v2105_v41, 16  ;;  %v2084_v48 = vadd.f32 %v2070_v44, %v1936_v40  ;;  %v2115_v56 = vshll.u32 %v2105_v41, 16  ;;  %v2186_v44 = vld [vmem:[#allocation4 + $0x14] sm:$0x1] }
 0x185   : > { %v2114_v49 = vrot.slane %v2112_v46, 7  ;;  %v2094_v59 = vadd.f32 %v5113_v25, %v2084_v48 }
 0x187   : > { %v2117_v8 = vor.u32 %v2115_v56, %v2114_v49  ;;  %v2118_v9 = vrot.slane %v2114_v49, 4  ;;  %v2100_v1 = vmax.f32 %v2094_v59, 0.0 }
 0x189   : > { %v2172_v52 = vsel %vm4780_vm9, %v2117_v8, %v2171_v51  ;;  %v2175_v53 = vsel %vm4790_vm10, %v2118_v9, %v2174_v7  ;;  %v2106_v47 = vpack.c.bf16 %v2100_v1, %v2100_v1  ;;  %v1738_v51 = vadd.f32 %v1730_v61, %v1619_v42  ;;  %v1932_v1 = vpop.f32.mrf.mxu3 }
 0x18a   : > { %2173 = vst [vmem:[#allocation4] sm:$0xf] %v2172_v52  ;;  %v2073_v57 = vpop.f32.mrf.mxu0 }
 0x18b   : > { %2176 = vst [vmem:[#allocation4 + $0x4] sm:$0x1] %v2175_v53  ;;  %v2120_v11 = vshrl.u32 %v2106_v47, 16  ;;  %v2085_v12 = vadd.f32 %v2073_v57, %v1937_v13  ;;  %v2123_v17 = vshll.u32 %v2106_v47, 16  ;;  %v2189_v13 = vld [vmem:[#allocation4 + $0x18] sm:$0xf]  ;;  %v1940_v32 = vadd.f32 %v1932_v1, %v1738_v51 }
 0x18d   : > { %v2122_v16 = vrot.slane %v2120_v11, 7  ;;  %v2095_v18 = vadd.f32 %v5113_v25, %v2085_v12 }
 0x18f   : > { %v2125_v24 = vor.u32 %v2123_v17, %v2122_v16  ;;  %v2126_v26 = vrot.slane %v2122_v16, 4  ;;  %v2101_v27 = vmax.f32 %v2095_v18, 0.0  ;;  %v2195_v17 = vld [vmem:[#allocation4 + $0x20] sm:$0xf]  ;;  %v2198_v18 = vld [vmem:[#allocation4 + $0x24] sm:$0x1] }
 0x191   : > { %v2178_v21 = vsel %vm4780_vm9, %v2125_v24, %v2177_v22  ;;  %v2181_v0 = vsel %vm4790_vm10, %v2126_v26, %v2180_v23  ;;  %v2107_v28 = vpack.c.bf16 %v2101_v27, %v2101_v27 }
 0x192   : > { %2179 = vst [vmem:[#allocation4 + $0x8] sm:$0xf] %v2178_v21  ;;  %v2075_v29 = vpop.f32.mrf.mxu0  ;;  %v2201_v21 = vld [vmem:[#allocation4 + $0x28] sm:$0xf] }
 0x193   : > { %2182 = vst [vmem:[#allocation4 + $0xc] sm:$0x1] %v2181_v0  ;;  %v2128_v31 = vshrl.u32 %v2107_v28, 16  ;;  %v2086_v62 = vadd.f32 %v2075_v29, %v1938_v60  ;;  %v2131_v40 = vshll.u32 %v2107_v28, 16  ;;  %v2204_v0 = vld [vmem:[#allocation4 + $0x2c] sm:$0x1] }
 0x195   : > { %v2130_v36 = vrot.slane %v2128_v31, 7  ;;  %v2096_v41 = vadd.f32 %v5113_v25, %v2086_v62 }
 0x197   : > { %v2133_v45 = vor.u32 %v2131_v40, %v2130_v36  ;;  %v2134_v46 = vrot.slane %v2130_v36, 4  ;;  %v2102_v48 = vmax.f32 %v2096_v41, 0.0 }
 0x199   : > { %v2184_v3 = vsel %vm4780_vm9, %v2133_v45, %v2183_v43  ;;  %v2187_v49 = vsel %vm4790_vm10, %v2134_v46, %v2186_v44  ;;  %v2108_v56 = vpack.c.bf16 %v2102_v48, %v2102_v48 }
 0x19a   : > { %2185 = vst [vmem:[#allocation4 + $0x10] sm:$0xf] %v2184_v3  ;;  %v2078_v59 = vpop.f32.mrf.mxu0 }
 0x19b   : > { %2188 = vst [vmem:[#allocation4 + $0x14] sm:$0x1] %v2187_v49  ;;  %v2136_v2 = vshrl.u32 %v2108_v56, 16  ;;  %v2087_v6 = vadd.f32 %v2078_v59, %v1939_v50  ;;  %v2139_v8 = vshll.u32 %v2108_v56, 16 }
 0x19d   : > { %v2138_v7 = vrot.slane %v2136_v2, 7  ;;  %v2097_v9 = vadd.f32 %v5113_v25, %v2087_v6 }
 0x19f   : > { %v2141_v52 = vor.u32 %v2139_v8, %v2138_v7  ;;  %v2142_v53 = vrot.slane %v2138_v7, 4  ;;  %v2103_v47 = vmax.f32 %v2097_v9, 0.0 }
 0x1a1   : > { %v2190_v37 = vsel %vm4780_vm9, %v2141_v52, %v2189_v13  ;;  %v2193_v57 = vsel %vm4790_vm10, %v2142_v53, %v2192_v38  ;;  %v2109_v55 = vpack.c.bf16 %v2103_v47, %v2103_v47 }
 0x1a2   : > { %2191 = vst [vmem:[#allocation4 + $0x18] sm:$0xf] %v2190_v37  ;;  %v2080_v11 = vpop.f32.mrf.mxu0 }
 0x1a3   : > { %2194 = vst [vmem:[#allocation4 + $0x1c] sm:$0x1] %v2193_v57  ;;  %v2144_v12 = vshrl.u32 %v2109_v55, 16  ;;  %v2088_v14 = vadd.f32 %v2080_v11, %v1940_v32  ;;  %v2147_v15 = vshll.u32 %v2109_v55, 16 }
 0x1a5   : > { %v2146_v5 = vrot.slane %v2144_v12, 7  ;;  %v2098_v16 = vadd.f32 %v5113_v25, %v2088_v14 }
 0x1a7   : > { %v2149_v22 = vor.u32 %v2147_v15, %v2146_v5  ;;  %v2150_v23 = vrot.slane %v2146_v5, 4  ;;  %v2104_v58 = vmax.f32 %v2098_v16, 0.0 }
 0x1a9   : > { %v2196_v24 = vsel %vm4780_vm9, %v2149_v22, %v2195_v17  ;;  %v2199_v26 = vsel %vm4790_vm10, %v2150_v23, %v2198_v18  ;;  %v2110_v27 = vpack.c.bf16 %v2104_v58, %v2104_v58 }
 0x1aa   : > { %2197 = vst [vmem:[#allocation4 + $0x20] sm:$0xf] %v2196_v24 }
 0x1ab   : > { %2200 = vst [vmem:[#allocation4 + $0x24] sm:$0x1] %v2199_v26  ;;  %v2152_v20 = vshrl.u32 %v2110_v27, 16  ;;  %v2155_v60 = vshll.u32 %v2110_v27, 16 }
 0x1ad   : > { %v2154_v54 = vrot.slane %v2152_v20, 7 }
 0x1af   : > { %v2157_v25 = vor.u32 %v2155_v60, %v2154_v54  ;;  %v2158_v28 = vrot.slane %v2154_v54, 4  ;;  %2209 = sbr.rel (%p3501_p9) target bundleno = 439 (0x1b7), region = 86 }
 0x1b1   : > { %v2202_v29 = vsel %vm4780_vm9, %v2157_v25, %v2201_v21  ;;  %v2205_v30 = vsel %vm4790_vm10, %v2158_v28, %v2204_v0 }
 0x1b2   : > { %2203 = vst [vmem:[#allocation4 + $0x28] sm:$0xf] %v2202_v29 }
 0x1b3   : > { %2206 = vst [vmem:[#allocation4 + $0x2c] sm:$0x1] %v2205_v30 }
 0x1b4   : > { %v4465_v31 = vmov 0  }
 0x1b5   : > { %2210 = vst [vmem:[#allocation4] sm:$0xf] %v4465_v31 }
 0x1b6   : > { %2211 = vst [vmem:[#allocation4 + $0x4] sm:$0x1] %v4465_v31 }
 0x1b7 PF: > { %p3869_p11 = scmp.ne.s32.totalorder %s4447_s18, 1 }
 0x1b9   : > { %2215 = sbr.rel (%p3869_p11) target bundleno = 449 (0x1c1), region = 90 }
 0x1be   : > { %v4466_v62 = vmov 0  }
 0x1bf   : > { %2217 = vst [vmem:[#allocation4 + $0x28] sm:$0xf] %v4466_v62 }
 0x1c0   : > { %2218 = vst [vmem:[#allocation4 + $0x2c] sm:$0x1] %v4466_v62 }
 0x1c1 PF: > { %v4299_v4 = vld [vmem:[%s5462_s3 + $0x78] sm:$0xff]  ;;  %v4298_v34 = vld [vmem:[%s5462_s3 + $0x70] sm:$0xff]  ;;  %v4297_v40 = vld [vmem:[%s5462_s3 + $0x68] sm:$0xff] }
 0x1c2   : > { %v4291_v10 = vld [vmem:[%s5462_s3 + $0x38] sm:$0xff]  ;;  %2371 = vmatpush.bf16.msra.mxu1 %v4299_v4  ;;  %v4290_v35 = vld [vmem:[%s5462_s3 + $0x30] sm:$0xff]  ;;  %v4289_v41 = vld [vmem:[%s5462_s3 + $0x28] sm:$0xff] }
 0x1c3   : > { %v4307_v33 = vld [vmem:[%s5462_s3 + $0xb8] sm:$0xff]  ;;  %2450 = vmatpush.bf16.msra.mxu2 %v4291_v10  ;;  %v4306_v36 = vld [vmem:[%s5462_s3 + $0xb0] sm:$0xff]  ;;  %v4305_v19 = vld [vmem:[%s5462_s3 + $0xa8] sm:$0xff] }
 0x1c4   : > { %2569 = vmatpush.bf16.msra.mxu3 %v4307_v33  ;;  %v2219_v43 = vld [vmem:[#allocation4] sm:$0xf]  ;;  %v2220_v44 = vld [vmem:[#allocation4 + $0x8] sm:$0xf]  ;;  %v2239_v3 = vld [vmem:[#allocation4 + $0x4] sm:$0x1] }
 0x1c5   : > { %v2244_v45 = vshrl.u32 %v2219_v43, 16  ;;  %v2247_v46 = vshll.u32 %v2219_v43, 16  ;;  %v2258_v48 = vshrl.u32 %v2220_v44, 16  ;;  %v4296_v50 = vld [vmem:[%s5462_s3 + $0x60] sm:$0xff]  ;;  %v2261_v49 = vshll.u32 %v2220_v44, 16  ;;  %v4295_v7 = vld [vmem:[%s5462_s3 + $0x58] sm:$0xff] }
 0x1c6   : > { %2372 = vmatpush.bf16.msra.mxu1 %v4298_v34  ;;  %v4288_v42 = vld [vmem:[%s5462_s3 + $0x20] sm:$0xff]  ;;  %v2240_v61 = vld [vmem:[#allocation4 + $0xc] sm:$0x1]  ;;  %v4287_v8 = vld [vmem:[%s5462_s3 + $0x18] sm:$0xff]  ;;  %v2253_v1 = vshll.u32 %v2239_v3, 16  ;;  %v2483_v18 = vrot.slane %v2239_v3, 5 }
 0x1c7   : > { %2451 = vmatpush.bf16.msra.mxu2 %v4290_v35  ;;  %v4304_v56 = vld [vmem:[%s5462_s3 + $0xa0] sm:$0xff]  ;;  %v2246_v59 = vrot.slane %v2244_v45, 4  ;;  %v2249_v2 = vrot.slane %v2247_v46, 5  ;;  %v2260_v6 = vrot.slane %v2258_v48, 4  ;;  %v2263_v51 = vrot.slane %v2261_v49, 5  ;;  %v4303_v52 = vld [vmem:[%s5462_s3 + $0x98] sm:$0xff] }
 0x1c8   : > { %2570 = vmatpush.bf16.msra.mxu3 %v4306_v36  ;;  %v2267_v38 = vshll.u32 %v2240_v61, 16  ;;  %v4343_v53 = vld [vmem:[%s5462_s3 + $0x1b8] sm:$0xff]  ;;  %v4294_v47 = vld [vmem:[%s5462_s3 + $0x50] sm:$0xff]  ;;  %v2469_v32 = vld [vmem:[#allocation4] sm:$0xe]  ;;  %v2255_v14 = vrot.slane %v2253_v1, 5 }
 0x1c9   : > { %v2250_v9 = vor.u32 %v2249_v2, %v2246_v59  ;;  %v2264_v13 = vor.u32 %v2263_v51, %v2260_v6  ;;  %v2470_v37 = vld [vmem:[#allocation4 + $0x8] sm:$0xe]  ;;  %v4286_v57 = vld [vmem:[%s5462_s3 + $0x10] sm:$0xff]  ;;  %3059 = vmatpush.bf16.msrb.mxu0 %v4343_v53  ;;  %v3942_v17 = vrot.slane %v2469_v32, 9  ;;  %v2487_v23 = vrot.slane %v2240_v61, 5  ;;  %v4292_v31 = vld [vmem:[%s5462_s3 + $0x40] sm:$0xff] }
 0x1ca   : > { %2373 = vmatpush.bf16.msra.mxu1 %v4297_v40  ;;  %v4302_v55 = vld [vmem:[%s5462_s3 + $0x90] sm:$0xff]  ;;  %v2269_v15 = vrot.slane %v2267_v38, 5  ;;  %v3943_v22 = vrot.slane %v2470_v37, 9  ;;  %v2222_v58 = vld [vmem:[#allocation4 + $0x18] sm:$0xf]  ;;  %v4293_v27 = vld [vmem:[%s5462_s3 + $0x48] sm:$0xff] }
 0x1cb   : > { %2452 = vmatpush.bf16.msra.mxu2 %v4289_v41  ;;  %v4342_v11 = vld [vmem:[%s5462_s3 + $0x1b0] sm:$0xff]  ;;  %v2251_v12 = vrot.slane %v2250_v9, 4  ;;  %v2265_v5 = vrot.slane %v2264_v13, 4  ;;  %v4285_v20 = vld [vmem:[%s5462_s3 + $0x8] sm:$0xff]  ;;  %v2286_v21 = vshrl.u32 %v2222_v58, 16  ;;  %v2289_v0 = vshll.u32 %v2222_v58, 16 }
 0x1cc   : > { %2571 = vmatpush.bf16.msra.mxu3 %v4305_v19  ;;  %v2221_v16 = vld [vmem:[#allocation4 + $0x10] sm:$0xf]  ;;  %v4341_v25 = vld [vmem:[%s5462_s3 + $0x1a8] sm:$0xff]  ;;  %v2484_v29 = vsel %vm4828_vm15, %v3942_v17, %v2483_v18  ;;  %v2488_v30 = vsel %vm4828_vm15, %v3943_v22, %v2487_v23  ;;  %v4284_v62 = vld [vmem:[%s5462_s3] sm:$0xff] }
 0x1cd   : > { %3060 = vmatpush.bf16.msrb.mxu0 %v4342_v11  ;;  %v2272_v24 = vshrl.u32 %v2221_v16, 16  ;;  %v2275_v26 = vshll.u32 %v2221_v16, 16  ;;  %v2256_v54 = vsel %vm4858_vm0, %v2251_v12, %v2255_v14  ;;  %v2270_v60 = vsel %vm4858_vm0, %v2265_v5, %v2269_v15  ;;  %v4301_v28 = vld [vmem:[%s5462_s3 + $0x88] sm:$0xff]  ;;  %v5241_v33 = vld [vmem:[#allocation4 + $0x14] sm:$0x1]  ;;  %v4340_v36 = vld [vmem:[%s5462_s3 + $0x1a0] sm:$0xff] }
 0x1ce   : > { %2374 = vmatpush.bf16.msra.mxu1 %v4296_v50  ;;  %v2315_v4 = vunpack.c.l.b16 %v2256_v54  ;;  %v2316_v10 = vunpack.c.l.b16 %v2270_v60  ;;  %v3904_v40 = vld [vmem:[#allocation4] sm:$0xf]  ;;  %v4282_v41 = vld [vmem:[#allocation4 + $0x4] sm:$0xf0]  ;;  %v2513_v19 = vunpack.c.l.b16 %v2484_v29  ;;  %v2514_v43 = vunpack.c.l.b16 %v2488_v30  ;;  %v4325_v48 = vld [vmem:[%s5462_s3 + $0x138] sm:$0xff] }
 0x1cf   : > { %2453 = vmatpush.bf16.msra.mxu2 %v4288_v42  ;;  %v2274_v34 = vrot.slane %v2272_v24, 4  ;;  %v2277_v35 = vrot.slane %v2275_v26, 5  ;;  %v2288_v44 = vrot.slane %v2286_v21, 4  ;;  %v2291_v45 = vrot.slane %v2289_v0, 5  ;;  %v4300_v46 = vld [vmem:[%s5462_s3 + $0x80] sm:$0xff]  ;;  %v4317_v42 = vld [vmem:[%s5462_s3 + $0xf8] sm:$0xff] }
 0x1d0   : > { %2572 = vmatpush.bf16.msra.mxu3 %v4304_v56  ;;  %v2242_v50 = vld [vmem:[#allocation4 + $0x1c] sm:$0x1]  ;;  %v2281_v49 = vshll.u32 %v5241_v33, 16  ;;  %v2319_v56 = vpack.c.b16 %v2316_v10, %v2315_v4  ;;  %v3905_v61 = vor.u32 %v4282_v41, %v3904_v40  ;;  %v2517_v2 = vpack.c.b16 %v2514_v43, %v2513_v19  ;;  %v4324_v1 = vld [vmem:[%s5462_s3 + $0x130] sm:$0xff]  ;;  %v2696_v14 = vld [vmem:[#allocation4 + $0x8] sm:$0xf] }
 0x1d1   : > { %3061 = vmatpush.bf16.msrb.mxu0 %v4341_v25  ;;  %v4333_v3 = vld [vmem:[%s5462_s3 + $0x178] sm:$0xff]  ;;  %v2278_v59 = vor.u32 %v2277_v35, %v2274_v34  ;;  %v2292_v6 = vor.u32 %v2291_v45, %v2288_v44  ;;  %v2295_v51 = vshll.u32 %v2242_v50, 16  ;;  %v4316_v13 = vld [vmem:[%s5462_s3 + $0xf0] sm:$0xff]  ;;  %v2491_v53 = vrot.slane %v5241_v33, 5  ;;  %v4323_v5 = vld [vmem:[%s5462_s3 + $0x128] sm:$0xff] }
 0x1d2   : > { %2375 = vmatpush.bf16.msra.mxu1 %v4295_v7  ;;  %v2471_v7 = vld [vmem:[#allocation4 + $0x10] sm:$0xe]  ;;  %v4339_v9 = vld [vmem:[%s5462_s3 + $0x198] sm:$0xff]  ;;  %v4315_v16 = vld [vmem:[%s5462_s3 + $0xe8] sm:$0xff]  ;;  %v2705_v58 = vshrl.u32 %v2696_v14, 16  ;;  %v2708_v26 = vshll.u32 %v2696_v14, 16 }
 0x1d3   : > { %2454 = vmatpush.bf16.msra.mxu2 %v4287_v8  ;;  %v2472_v8 = vld [vmem:[#allocation4 + $0x18] sm:$0xe]  ;;  %v4332_v38 = vld [vmem:[%s5462_s3 + $0x170] sm:$0xff]  ;;  %v3944_v32 = vrot.slane %v2471_v7, 9  ;;  %v2297_v11 = vrot.slane %v2295_v51, 5  ;;  %v4331_v17 = vld [vmem:[%s5462_s3 + $0x168] sm:$0xff] }
 0x1d4   : > { %2573 = vmatpush.bf16.msra.mxu3 %v4303_v52  ;;  %v2283_v52 = vrot.slane %v2281_v49, 5  ;;  %v3945_v37 = vrot.slane %v2472_v8, 9  ;;  %v4338_v12 = vld [vmem:[%s5462_s3 + $0x190] sm:$0xff]  ;;  %v4337_v54 = vld [vmem:[%s5462_s3 + $0x188] sm:$0xff]  ;;  %v4322_v60 = vld [vmem:[%s5462_s3 + $0x120] sm:$0xff]  ;;  %v2707_v33 = vrot.slane %v2705_v58, 4 }
 0x1d5   : > { %3062 = vmatpush.bf16.msrb.mxu0 %v4340_v36  ;;  %v2698_v15 = vld [vmem:[#allocation4 + $0x10] sm:$0xf]  ;;  %v2492_v22 = vsel %vm4828_vm15, %v3944_v32, %v2491_v53  ;;  %v4314_v21 = vld [vmem:[%s5462_s3 + $0xe0] sm:$0xff]  ;;  %v4283_v30 = vld [vmem:[#allocation4 + $0x14] sm:$0xf0]  ;;  %v2710_v34 = vrot.slane %v2708_v26, 5 }
 0x1d6   : > { %2376 = vmatpush.bf16.msra.mxu1 %v4294_v47  ;;  %v2279_v47 = vrot.slane %v2278_v59, 4  ;;  %v4330_v0 = vld [vmem:[%s5462_s3 + $0x160] sm:$0xff]  ;;  %v3908_v29 = vld [vmem:[#allocation4 + $0x10] sm:$0xf]  ;;  %v5304_v4 = vld [vmem:[#allocation4 + $0xc] sm:$0x1] }
 0x1d7   : > { %2455 = vmatpush.bf16.msra.mxu2 %v4286_v57  ;;  %v2495_v57 = vrot.slane %v2242_v50, 5  ;;  %v4321_v10 = vld [vmem:[%s5462_s3 + $0x118] sm:$0xff]  ;;  %v4336_v40 = vld [vmem:[%s5462_s3 + $0x180] sm:$0xff]  ;;  %v2699_v41 = vld [vmem:[#allocation4 + $0x14] sm:$0x1]  ;;  %v2869_v32 = vrot.slane %v5304_v4, 5 }
 0x1d8   : > { %2574 = vmatpush.bf16.msra.mxu3 %v4302_v55  ;;  %v2293_v55 = vrot.slane %v2292_v6, 4  ;;  %v2284_v18 = vsel %vm4858_vm0, %v2279_v47, %v2283_v52  ;;  %v4088_v19 = vld [vmem:[#allocation4 + $0x10] sm:$0xf]  ;;  %v4334_v43 = vld [vmem:[#allocation4 + $0x14] sm:$0xf0]  ;;  %v4319_v53 = vld [vmem:[%s5462_s3 + $0x108] sm:$0xff] }
 0x1d9   : > { %3063 = vmatpush.bf16.msrb.mxu0 %v4339_v9  ;;  %v2496_v23 = vsel %vm4828_vm15, %v3945_v37, %v2495_v57  ;;  %v2317_v25 = vunpack.c.l.b16 %v2284_v18  ;;  %v4313_v44 = vld [vmem:[%s5462_s3 + $0xd8] sm:$0xff]  ;;  %v4320_v59 = vld [vmem:[%s5462_s3 + $0x110] sm:$0xff]  ;;  %v2855_v51 = vld [vmem:[#allocation4 + $0x8] sm:$0xe]  ;;  %v2873_v57 = vrot.slane %v2699_v41, 5 }
 0x1da   : > { %2377 = vmatpush.bf16.msra.mxu1 %v4293_v27  ;;  %v2298_v24 = vsel %vm4858_vm0, %v2293_v55, %v2297_v11  ;;  %v2719_v27 = vshrl.u32 %v2698_v15, 16  ;;  %v4329_v45 = vld [vmem:[%s5462_s3 + $0x158] sm:$0xff]  ;;  %v4328_v6 = vld [vmem:[%s5462_s3 + $0x150] sm:$0xff]  ;;  %v2702_v9 = vld [vmem:[#allocation4 + $0x20] sm:$0xf]  ;;  %v4050_v47 = vrot.slane %v2855_v51, 9 }
 0x1db   : > { %2456 = vmatpush.bf16.msra.mxu2 %v4285_v20  ;;  %v2722_v20 = vshll.u32 %v2698_v15, 16  ;;  %v2856_v7 = vld [vmem:[#allocation4 + $0x10] sm:$0xe]  ;;  %v2700_v8 = vld [vmem:[#allocation4 + $0x18] sm:$0xf]  ;;  %v4311_v55 = vld [vmem:[%s5462_s3 + $0xc8] sm:$0xff] }
 0x1dc   : > { %2575 = vmatpush.bf16.msra.mxu3 %v4301_v28  ;;  %v2318_v28 = vunpack.c.l.b16 %v2298_v24  ;;  %v2721_v35 = vrot.slane %v2719_v27, 4  ;;  %v4051_v37 = vrot.slane %v2856_v7, 9  ;;  %v4327_v11 = vld [vmem:[%s5462_s3 + $0x148] sm:$0xff]  ;;  %v2736_v14 = vshll.u32 %v2700_v8, 16  ;;  %v4318_v18 = vld [vmem:[%s5462_s3 + $0x100] sm:$0xff] }
 0x1dd   : > { %3064 = vmatpush.bf16.msrb.mxu0 %v4338_v12  ;;  %v2724_v36 = vrot.slane %v2722_v20, 5  ;;  %v2733_v12 = vshrl.u32 %v2700_v8, 16  ;;  %v2750_v15 = vshll.u32 %v2702_v9, 16  ;;  %v2870_v58 = vsel %vm4828_vm15, %v4050_v47, %v2869_v32  ;;  %v5355_v26 = vld [vmem:[#allocation4 + $0x1c] sm:$0x1] }
 0x1de   : > { %2378 = vmatpush.bf16.msra.mxu1 %v4292_v31  ;;  %v2515_v31 = vunpack.c.l.b16 %v2492_v22  ;;  %v4310_v22 = vld [vmem:[%s5462_s3 + $0xc0] sm:$0xff]  ;;  %v2874_v24 = vsel %vm4828_vm15, %v4051_v37, %v2873_v57  ;;  %v2738_v20 = vrot.slane %v2736_v14, 5  ;;  %v3082_v7 = vld [vmem:[#allocation4 + $0x10] sm:$0xf]  ;;  %v3084_v8 = vld [vmem:[#allocation4 + $0x18] sm:$0xf] }
 0x1df   : > { %2457 = vmatpush.bf16.msra.mxu2 %v4284_v62  ;;  %v2516_v62 = vunpack.c.l.b16 %v2496_v23  ;;  %v2725_v49 = vor.u32 %v2724_v36, %v2721_v35  ;;  %v4326_v23 = vld [vmem:[%s5462_s3 + $0x140] sm:$0xff]  ;;  %v2735_v27 = vrot.slane %v2733_v12, 4  ;;  %v3094_v47 = vshll.u32 %v3082_v7, 16 }
 0x1e0   : > { %2576 = vmatpush.bf16.msra.mxu3 %v4300_v46  ;;  %v2320_v46 = vpack.c.b16 %v2318_v28, %v2317_v25  ;;  %v4359_v25 = vld [vmem:[%s5462_s3 + $0x238] sm:$0xff]  ;;  %v3105_v32 = vshrl.u32 %v3084_v8, 16  ;;  %v3108_v37 = vshll.u32 %v3084_v8, 16  ;;  %v4356_v57 = vld [vmem:[%s5462_s3 + $0x220] sm:$0xff]  ;;  %v4345_v8 = vld [vmem:[%s5462_s3 + $0x1c8] sm:$0xff] }
 0x1e1   : > { %2379 = vmatmul.bf16.vlgmr.msra.gmra.mxu1 %v2319_v56  ;;  %3065 = vmatpush.bf16.msrb.mxu0 %v4337_v54  ;;  %v2518_v50 = vpack.c.b16 %v2516_v62, %v2515_v31  ;;  %v2728_v56 = vshll.u32 %v2699_v41, 16  ;;  %v4351_v28 = vld [vmem:[%s5462_s3 + $0x1f8] sm:$0xff]  ;;  %v4308_v31 = vld [vmem:[#allocation4 + $0xc] sm:$0xf0]  ;;  %v2899_v62 = vunpack.c.l.b16 %v2870_v58  ;;  %v4092_v41 = vld [vmem:[#allocation4 + $0x20] sm:$0xf] }
 0x1e2   : > { %2673 = vmatpush.bf16.msrb.mxu1 %v4317_v42  ;;  %2458 = vmatmul.bf16.vlgmr.msra.gmra.mxu2 %v3905_v61  ;;  %v2714_v42 = vshll.u32 %v5304_v4, 16  ;;  %v4089_v61 = vor.u32 %v4334_v43, %v4088_v19  ;;  %v2900_v4 = vunpack.c.l.b16 %v2874_v24  ;;  %v4335_v19 = vld [vmem:[#allocation4 + $0x24] sm:$0xf0]  ;;  %v4348_v12 = vld [vmem:[%s5462_s3 + $0x1e0] sm:$0xff]  ;;  %v3096_v24 = vrot.slane %v3094_v47, 5 }
 0x1e3   : > { %2832 = vmatpush.bf16.msrb.mxu2 %v4325_v48  ;;  %2577 = vmatmul.bf16.vlgmr.msra.gmra.mxu3 %v2517_v2  ;;  %v3909_v48 = vor.u32 %v4283_v30, %v3908_v29  ;;  %v4312_v2 = vld [vmem:[%s5462_s3 + $0xd0] sm:$0xff]  ;;  %v2730_v52 = vrot.slane %v2728_v56, 5  ;;  %v2703_v29 = vld [vmem:[#allocation4 + $0x24] sm:$0x1]  ;;  %v3980_v30 = vld [vmem:[#allocation4 + $0x8] sm:$0xf]  ;;  %v4093_v56 = vor.u32 %v4335_v19, %v4092_v41 }
 0x1e4   : > { %2955 = vmatpush.bf16.msrb.mxu3 %v4333_v3  ;;  %v2711_v3 = vor.u32 %v2710_v34, %v2707_v33  ;;  %v2739_v33 = vor.u32 %v2738_v20, %v2735_v27  ;;  %v2756_v35 = vshll.u32 %v2703_v29, 16  ;;  %v3981_v36 = vor.u32 %v4308_v31, %v3980_v30  ;;  %v4354_v19 = vld [vmem:[%s5462_s3 + $0x210] sm:$0xff] }
 0x1e5   : > { %3066 = vmatpush.bf16.msrb.mxu0 %v4336_v40  ;;  %v2903_v43 = vpack.c.b16 %v2900_v4, %v2899_v62  ;;  %v2881_v51 = vrot.slane %v2703_v29, 5  ;;  %v3110_v27 = vrot.slane %v3108_v37, 5 }
 0x1e6   : > { %2674 = vmatpush.bf16.msrb.mxu1 %v4316_v13  ;;  %v2716_v13 = vrot.slane %v2714_v42, 5  ;;  %v2740_v42 = vrot.slane %v2739_v33, 4  ;;  %v5399_v33 = vld [vmem:[#allocation4 + $0x2c] sm:$0x1] }
 0x1e7   : > { %2833 = vmatpush.bf16.msrb.mxu2 %v4324_v1  ;;  %v2712_v1 = vrot.slane %v2711_v3, 4 }
 0x1e8   : > { %2956 = vmatpush.bf16.msrb.mxu3 %v4332_v38  ;;  %v2726_v38 = vrot.slane %v2725_v49, 4  ;;  %3067 = vmatmul.bf16.vlgmr.msrb.gmra.mxu0 %v4089_v61  ;;  %v2758_v49 = vrot.slane %v2756_v35, 5  ;;  %v4357_v61 = vld [vmem:[%s5462_s3 + $0x228] sm:$0xff] }
 0x1ea   : > { %2675 = vmatpush.bf16.msrb.mxu1 %v4315_v16  ;;  %v2717_v16 = vsel %vm4858_vm0, %v2712_v1, %v2716_v13 }
 0x1eb   : > { %2834 = vmatpush.bf16.msrb.mxu2 %v4323_v5  ;;  %v2747_v5 = vshrl.u32 %v2702_v9, 16  ;;  %v4349_v9 = vld [vmem:[%s5462_s3 + $0x1e8] sm:$0xff] }
 0x1ec   : > { %2957 = vmatpush.bf16.msrb.mxu3 %v4331_v17  ;;  %v2731_v17 = vsel %vm4858_vm0, %v2726_v38, %v2730_v52  ;;  %v3086_v38 = vld [vmem:[#allocation4 + $0x20] sm:$0xf]  ;;  %v3088_v52 = vld [vmem:[#allocation4 + $0x28] sm:$0xf] }
 0x1ed   : > { %v2749_v54 = vrot.slane %v2747_v5, 4  ;;  %v3119_v14 = vshrl.u32 %v3086_v38, 16  ;;  %v3122_v5 = vshll.u32 %v3086_v38, 16 }
 0x1ee   : > { %2676 = vmatpush.bf16.msrb.mxu1 %v4314_v21  ;;  %v2776_v21 = vunpack.c.l.b16 %v2717_v16  ;;  %v3136_v16 = vshll.u32 %v3088_v52, 16 }
 0x1ef   : > { %2835 = vmatpush.bf16.msrb.mxu2 %v4322_v60  ;;  %v2752_v60 = vrot.slane %v2750_v15, 5  ;;  %v3133_v15 = vshrl.u32 %v3088_v52, 16  ;;  %v3124_v29 = vrot.slane %v3122_v5, 5  ;;  %v4352_v52 = vld [vmem:[%s5462_s3 + $0x200] sm:$0xff] }
 0x1f0   : > { %2958 = vmatpush.bf16.msrb.mxu3 %v4330_v0  ;;  %v2777_v0 = vunpack.c.l.b16 %v2731_v17  ;;  %v3984_v17 = vld [vmem:[#allocation4 + $0x18] sm:$0xf]  ;;  %v3138_v31 = vrot.slane %v3136_v16, 5 }
 0x1f1   : > { %2384 = vmatmul.bf16.gmra.mxu1 %v2320_v46  ;;  %v2753_v34 = vor.u32 %v2752_v60, %v2749_v54  ;;  %v4350_v46 = vld [vmem:[%s5462_s3 + $0x1f0] sm:$0xff]  ;;  %v4355_v60 = vld [vmem:[%s5462_s3 + $0x218] sm:$0xff]  ;;  %v3135_v30 = vrot.slane %v3133_v15, 4 }
 0x1f2   : > { %2677 = vmatpush.bf16.msrb.mxu1 %v4313_v44  ;;  %2463 = vmatmul.bf16.gmra.mxu2 %v3909_v48  ;;  %v2780_v40 = vpack.c.b16 %v2777_v0, %v2776_v21  ;;  %v4358_v44 = vld [vmem:[%s5462_s3 + $0x230] sm:$0xff]  ;;  %v3085_v0 = vld [vmem:[#allocation4 + $0x1c] sm:$0x1] }
 0x1f3   : > { %2836 = vmatpush.bf16.msrb.mxu2 %v4321_v10  ;;  %2582 = vmatmul.bf16.gmra.mxu3 %v2518_v50  ;;  %v2742_v10 = vshll.u32 %v5355_v26, 16  ;;  %v2858_v50 = vld [vmem:[#allocation4 + $0x20] sm:$0xe]  ;;  %v2754_v3 = vrot.slane %v2753_v34, 4  ;;  %v3083_v21 = vld [vmem:[#allocation4 + $0x14] sm:$0x1] }
 0x1f4   : > { %2959 = vmatpush.bf16.msrb.mxu3 %v4329_v45  ;;  %v2857_v45 = vld [vmem:[#allocation4 + $0x18] sm:$0xe]  ;;  %v3100_v35 = vshll.u32 %v3083_v21, 16 }
 0x1f5   : > { %v2744_v48 = vrot.slane %v2742_v10, 5  ;;  %v2759_v13 = vsel %vm4858_vm0, %v2754_v3, %v2758_v49  ;;  %v5397_v10 = vld [vmem:[#allocation4 + $0x24] sm:$0x1] }
 0x1f6   : > { %2678 = vmatpush.bf16.msrb.mxu1 %v4312_v2  ;;  %v2877_v2 = vrot.slane %v5355_v26, 5  ;;  %v3107_v26 = vrot.slane %v3105_v32, 4  ;;  %v3102_v49 = vrot.slane %v3100_v35, 5  ;;  %v3263_v39 = vrot.slane %v5397_v10, 5 }
 0x1f7   : > { %2837 = vmatpush.bf16.msrb.mxu2 %v4320_v59  ;;  %v4052_v59 = vrot.slane %v2857_v45, 9  ;;  %v2745_v1 = vsel %vm4858_vm0, %v2740_v42, %v2744_v48  ;;  %v3128_v45 = vshll.u32 %v5397_v10, 16  ;;  %v3142_v48 = vshll.u32 %v5399_v33, 16  ;;  %v3242_v42 = vld [vmem:[#allocation4 + $0x18] sm:$0xe] }
 0x1f8   : > { %2960 = vmatpush.bf16.msrb.mxu3 %v4328_v6  ;;  %v4053_v6 = vrot.slane %v2858_v50, 9  ;;  %3072 = vmatmul.bf16.gmra.mxu0 %v4093_v56  ;;  %v3241_v50 = vld [vmem:[#allocation4 + $0x10] sm:$0xe] }
 0x1f9   : > { %v3144_v38 = vrot.slane %v3142_v48, 5 }
 0x1fa   : > { %2679 = vmatpush.bf16.msrb.mxu1 %v4311_v55  ;;  %v2878_v55 = vsel %vm4828_vm15, %v4052_v59, %v2877_v2  ;;  %v4353_v59 = vld [vmem:[%s5462_s3 + $0x208] sm:$0xff]  ;;  %v4158_v2 = vrot.slane %v3241_v50, 9 }
 0x1fb   : > { %2838 = vmatpush.bf16.msrb.mxu2 %v4319_v53  ;;  %v3091_v53 = vshrl.u32 %v3082_v7, 16  ;;  %v2901_v20 = vunpack.c.l.b16 %v2878_v55  ;;  %v3259_v7 = vrot.slane %v3085_v0, 5 }
 0x1fc   : > { %2961 = vmatpush.bf16.msrb.mxu3 %v4327_v11  ;;  %v2882_v11 = vsel %vm4828_vm15, %v4053_v6, %v2881_v51  ;;  %v3255_v6 = vrot.slane %v3083_v21, 5  ;;  %v4159_v51 = vrot.slane %v3242_v42, 9 }
 0x1fd   : > { %v3093_v58 = vrot.slane %v3091_v53, 4  ;;  %v2902_v54 = vunpack.c.l.b16 %v2882_v11 }
 0x1fe   : > { %2680 = vmatpush.bf16.msrb.mxu1 %v4310_v22  ;;  %v2779_v22 = vunpack.c.l.b16 %v2759_v13  ;;  %v3256_v32 = vsel %vm4828_vm15, %v4158_v2, %v3255_v6  ;;  %v3260_v37 = vsel %vm4828_vm15, %v4159_v51, %v3259_v7 }
 0x1ff   : > { %2839 = vmatpush.bf16.msrb.mxu2 %v4318_v18  ;;  %v2778_v18 = vunpack.c.l.b16 %v2745_v1  ;;  %v3097_v34 = vor.u32 %v3096_v24, %v3093_v58  ;;  %v2904_v41 = vpack.c.b16 %v2902_v54, %v2901_v20  ;;  %v3130_v1 = vrot.slane %v3128_v45, 5  ;;  %v3243_v58 = vld [vmem:[#allocation4 + $0x20] sm:$0xe]  ;;  %v3244_v24 = vld [vmem:[#allocation4 + $0x28] sm:$0xe] }
 0x200   : > { %2962 = vmatpush.bf16.msrb.mxu3 %v4326_v23  ;;  %v4309_v23 = vld [vmem:[#allocation4 + $0x1c] sm:$0xf0]  ;;  %v3285_v5 = vunpack.c.l.b16 %v3256_v32  ;;  %v3286_v15 = vunpack.c.l.b16 %v3260_v37  ;;  %v3267_v20 = vrot.slane %v5399_v33, 5 }
 0x201   : > { %2681 = vmatmul.bf16.vlgmr.msrb.gmra.mxu1 %v3981_v36  ;;  %v3985_v62 = vor.u32 %v4309_v23, %v3984_v17  ;;  %v2781_v4 = vpack.c.b16 %v2779_v22, %v2778_v18  ;;  %v3111_v36 = vor.u32 %v3110_v27, %v3107_v26  ;;  %v3098_v3 = vrot.slane %v3097_v34, 4 }
 0x202   : > { %3218 = vmatpush.bf16.msra.mxu1 %v4351_v28  ;;  %2840 = vmatmul.bf16.vlgmr.msrb.gmra.mxu2 %v2780_v40  ;;  %v3114_v40 = vshll.u32 %v3085_v0, 16  ;;  %v3289_v22 = vpack.c.b16 %v3286_v15, %v3285_v5  ;;  %v4160_v26 = vrot.slane %v3243_v58, 9  ;;  %v4161_v27 = vrot.slane %v3244_v24, 9  ;;  %v4422_v5 = vld [vmem:[%s5463_s4] ss:$0 sm:$0xff] }
 0x203   : > { %3341 = vmatpush.bf16.msra.mxu2 %v4359_v25  ;;  %2963 = vmatmul.bf16.vlgmr.msrb.gmra.mxu3 %v2903_v43  ;;  %v4347_v25 = vld [vmem:[%s5462_s3 + $0x1d8] sm:$0xff]  ;;  %v4346_v43 = vld [vmem:[%s5462_s3 + $0x1d0] sm:$0xff]  ;;  %v3112_v56 = vrot.slane %v3111_v36, 4  ;;  %v3103_v53 = vsel %vm4858_vm0, %v3098_v3, %v3102_v49 }
 0x204   : > { %4371 = vmatpush.bf16.msra.mxu3 %v4351_v28  ;;  %v3121_v28 = vrot.slane %v3119_v14, 4  ;;  %v3264_v54 = vsel %vm4828_vm15, %v4160_v26, %v3263_v39 }
 0x205   : > { %v3287_v21 = vunpack.c.l.b16 %v3264_v54 }
 0x206   : > { %3219 = vmatpush.bf16.msra.mxu1 %v4350_v46 }
 0x207   : > { %3342 = vmatpush.bf16.msra.mxu2 %v4358_v44  ;;  %v3125_v44 = vor.u32 %v3124_v29, %v3121_v28 }
 0x208   : > { %4372 = vmatpush.bf16.msra.mxu3 %v4350_v46  ;;  %v3139_v46 = vor.u32 %v3138_v31, %v3135_v30 }
 0x20a   : > { %3220 = vmatpush.bf16.msra.mxu1 %v4349_v9  ;;  %v3140_v13 = vrot.slane %v3139_v46, 4 }
 0x20b   : > { %3343 = vmatpush.bf16.msra.mxu2 %v4357_v61  ;;  %v3116_v61 = vrot.slane %v3114_v40, 5 }
 0x20c   : > { %4373 = vmatpush.bf16.msra.mxu3 %v4349_v9  ;;  %v3126_v9 = vrot.slane %v3125_v44, 4  ;;  %v3145_v11 = vsel %vm4858_vm0, %v3140_v13, %v3144_v38 }
 0x20d   : > { %v3117_v47 = vsel %vm4858_vm0, %v3112_v56, %v3116_v61  ;;  %v3165_v17 = vunpack.c.l.b16 %v3145_v11 }
 0x20e   : > { %3221 = vmatpush.bf16.msra.mxu1 %v4348_v12  ;;  %v3131_v55 = vsel %vm4858_vm0, %v3126_v9, %v3130_v1  ;;  %v3163_v14 = vunpack.c.l.b16 %v3117_v47 }
 0x20f   : > { %3344 = vmatpush.bf16.msra.mxu2 %v4356_v57  ;;  %v4344_v57 = vld [vmem:[%s5462_s3 + $0x1c0] sm:$0xff]  ;;  %v3164_v16 = vunpack.c.l.b16 %v3131_v55 }
 0x210   : > { %4374 = vmatpush.bf16.msra.mxu3 %v4348_v12  ;;  %v3162_v12 = vunpack.c.l.b16 %v3103_v53 }
 0x211   : > { %2686 = vmatmul.bf16.gmra.mxu1 %v3985_v62  ;;  %v3167_v23 = vpack.c.b16 %v3165_v17, %v3164_v16 }
 0x212   : > { %3222 = vmatpush.bf16.msra.mxu1 %v4347_v25  ;;  %2845 = vmatmul.bf16.gmra.mxu2 %v2781_v4  ;;  %v3166_v18 = vpack.c.b16 %v3163_v14, %v3162_v12 }
 0x213   : > { %3345 = vmatpush.bf16.msra.mxu2 %v4355_v60  ;;  %2968 = vmatmul.bf16.gmra.mxu3 %v2904_v41  ;;  %v3268_v60 = vsel %vm4828_vm15, %v4161_v27, %v3267_v20 }
 0x214   : > { %4375 = vmatpush.bf16.msra.mxu3 %v4347_v25  ;;  %v3288_v0 = vunpack.c.l.b16 %v3268_v60 }
 0x216   : > { %3223 = vmatpush.bf16.msra.mxu1 %v4346_v43  ;;  %v3290_v25 = vpack.c.b16 %v3288_v0, %v3287_v21 }
 0x217   : > { %3346 = vmatpush.bf16.msra.mxu2 %v4354_v19 }
 0x218   : > { %4376 = vmatpush.bf16.msra.mxu3 %v4346_v43 }
 0x21a   : > { %3224 = vmatpush.bf16.msra.mxu1 %v4345_v8 }
 0x21b   : > { %3347 = vmatpush.bf16.msra.mxu2 %v4353_v59 }
 0x21c   : > { %4377 = vmatpush.bf16.msra.mxu3 %v4345_v8 }
 0x21e   : > { %3225 = vmatpush.bf16.msra.mxu1 %v4344_v57 }
 0x21f   : > { %3348 = vmatpush.bf16.msra.mxu2 %v4352_v52 }
 0x220   : > { %4378 = vmatpush.bf16.msra.mxu3 %v4344_v57 }
 0x221   : > { %3226 = vmatmul.bf16.vlgmr.msra.gmra.mxu1 %v3166_v18 }
 0x222   : > { %3349 = vmatmul.bf16.vlgmr.msra.gmra.mxu2 %v3289_v22 }
 0x223   : > { %3231 = vmatmul.bf16.vlgmr.msra.gmra.mxu3 %v3167_v23 }
 0x232   : > { %3354 = vmatmul.bf16.gmra.mxu2 %v3290_v25 }
 0x25e   : > { %v2380_v28 = vpop.f32.mrf.mxu1 }
 0x265   : > { %v2459_v29 = vpop.f32.mrf.mxu2  ;;  %v3068_v3 = vpop.f32.mrf.mxu0 }
 0x266   : > { %v2578_v30 = vpop.f32.mrf.mxu3  ;;  %v2382_v31 = vpop.f32.mrf.mxu1  ;;  %v2460_v50 = vadd.f32 %v2459_v29, %v2380_v28 }
 0x268   : > { %v2588_v49 = vadd.f32 %v2578_v30, %v2460_v50 }
 0x26d   : > { %v2461_v62 = vpop.f32.mrf.mxu2  ;;  %v3070_v13 = vpop.f32.mrf.mxu0 }
 0x26e   : > { %v2580_v4 = vpop.f32.mrf.mxu3  ;;  %v2385_v10 = vpop.f32.mrf.mxu1  ;;  %v2462_v56 = vadd.f32 %v2461_v62, %v2382_v31 }
 0x270   : > { %v2589_v6 = vadd.f32 %v2580_v4, %v2462_v56 }
 0x275   : > { %v2464_v34 = vpop.f32.mrf.mxu2  ;;  %v3073_v17 = vpop.f32.mrf.mxu0 }
 0x276   : > { %v2583_v35 = vpop.f32.mrf.mxu3  ;;  %v2387_v33 = vpop.f32.mrf.mxu1  ;;  %v2465_v53 = vadd.f32 %v2464_v34, %v2385_v10 }
 0x278   : > { %v2590_v55 = vadd.f32 %v2583_v35, %v2465_v53 }
 0x27d   : > { %v2466_v36 = vpop.f32.mrf.mxu2  ;;  %v3075_v30 = vpop.f32.mrf.mxu0 }
 0x27e   : > { %v2585_v40 = vpop.f32.mrf.mxu3  ;;  %v2682_v41 = vpop.f32.mrf.mxu1  ;;  %v2467_v11 = vadd.f32 %v2466_v36, %v2387_v33 }
 0x27f   : > { %v2692_v59 = vadd.f32 %v2682_v41, %v2588_v49 }
 0x280   : > { %v2591_v22 = vadd.f32 %v2585_v40, %v2467_v11 }
 0x285   : > { %v2841_v19 = vpop.f32.mrf.mxu2 }
 0x286   : > { %v2964_v63 = vpop.f32.mrf.mxu3  ;;  %v2684_v43 = vpop.f32.mrf.mxu1  ;;  %v2851_v51 = vadd.f32 %v2841_v19, %v2692_v59 }
 0x287   : > { %v2693_v8 = vadd.f32 %v2684_v43, %v2589_v6 }
 0x288   : > { %v2974_v9 = vadd.f32 %v2964_v63, %v2851_v51 }
 0x28a   : > { %v3078_v47 = vadd.f32 %v3068_v3, %v2974_v9 }
 0x28d   : > { %v2843_v44 = vpop.f32.mrf.mxu2 }
 0x28e   : > { %v2687_v45 = vpop.f32.mrf.mxu1  ;;  %v2966_v46 = vpop.f32.mrf.mxu3  ;;  %v2852_v1 = vadd.f32 %v2843_v44, %v2693_v8 }
 0x28f   : > { %v2694_v15 = vadd.f32 %v2687_v45, %v2590_v55 }
 0x290   : > { %v2975_v32 = vadd.f32 %v2966_v46, %v2852_v1 }
 0x292   : > { %v3079_v12 = vadd.f32 %v3070_v13, %v2975_v32 }
 0x295   : > { %v2846_v48 = vpop.f32.mrf.mxu2 }
 0x296   : > { %v2689_v42 = vpop.f32.mrf.mxu1  ;;  %v2969_v61 = vpop.f32.mrf.mxu3  ;;  %v2853_v23 = vadd.f32 %v2846_v48, %v2694_v15 }
 0x297   : > { %v2695_v39 = vadd.f32 %v2689_v42, %v2591_v22 }
 0x298   : > { %v2976_v20 = vadd.f32 %v2969_v61, %v2853_v23 }
 0x29a   : > { %v3080_v28 = vadd.f32 %v3073_v17, %v2976_v20 }
 0x29d   : > { %v2848_v2 = vpop.f32.mrf.mxu2 }
 0x29e   : > { %v3227_v7 = vpop.f32.mrf.mxu1  ;;  %v2971_v38 = vpop.f32.mrf.mxu3  ;;  %v2854_v54 = vadd.f32 %v2848_v2, %v2695_v39 }
 0x29f   : > { %v3237_v37 = vadd.f32 %v3227_v7, %v3078_v47 }
 0x2a0   : > { %v2977_v29 = vadd.f32 %v2971_v38, %v2854_v54 }
 0x2a2   : > { %v3081_v4 = vadd.f32 %v3075_v30, %v2977_v29 }
 0x2a5   : > { %v3350_v52 = vpop.f32.mrf.mxu2 }
 0x2a6   : > { %v3229_v57 = vpop.f32.mrf.mxu1  ;;  %v3360_v14 = vadd.f32 %v3350_v52, %v3237_v37  ;;  %v3232_v26 = vpop.f32.mrf.mxu3 }
 0x2a7   : > { %v3238_v16 = vadd.f32 %v3229_v57, %v3079_v12  ;;  %v3239_v31 = vadd.f32 %v3232_v26, %v3080_v28 }
 0x2a8   : > { %v3368_v58 = vadd.f32 %v4422_v5, %v3360_v14 }
 0x2aa   : > { %v3372_v60 = vmax.f32 %v3368_v58, 0.0 }
 0x2ad   : > { %v3352_v18 = vpop.f32.mrf.mxu2 }
 0x2ae   : > { %v3361_v24 = vadd.f32 %v3352_v18, %v3238_v16  ;;  %v3234_v62 = vpop.f32.mrf.mxu3 }
 0x2af   : > { %v3240_v34 = vadd.f32 %v3234_v62, %v3081_v4 }
 0x2b0   : > { %v3369_v27 = vadd.f32 %v4422_v5, %v3361_v24 }
 0x2b2   : > { %v3373_v21 = vmax.f32 %v3369_v27, 0.0 }
 0x2b4   : > { %v4363_v0 = vpack.c.bf16 %v3373_v21, %v3372_v60 }
 0x2b5   : > { %v3355_v25 = vpop.f32.mrf.mxu2 }
 0x2b6   : > { %4364 = vst [vmem:[%s4540_s10] sm:$0xff] %v4363_v0   ;;  %v3362_v10 = vadd.f32 %v3355_v25, %v3239_v31 }
 0x2b8   : > { %v3370_v33 = vadd.f32 %v4422_v5, %v3362_v10 }
 0x2ba   : > { %v3374_v41 = vmax.f32 %v3370_v33, 0.0 }
 0x2bd   : > { %v3357_v35 = vpop.f32.mrf.mxu2 }
 0x2be   : > { %v3363_v36 = vadd.f32 %v3357_v35, %v3240_v34 }
 0x2c0   : > { %v3371_v40 = vadd.f32 %v4422_v5, %v3363_v36 }
 0x2c2   : > { %v3375_v19 = vmax.f32 %v3371_v40, 0.0 }
 0x2c4   : > { %v4368_v63 = vpack.c.bf16 %v3375_v19, %v3374_v41 }
 0x2c6   : > { %4370 = vst [vmem:[%s4540_s10 + $0x8] sm:$0xff] %v4368_v63  }
 0x2c7 PF: > { %s15_s22 = sadd.s32 1, %s4463_s22   ;;  %s5477_s18 = smov %s4455_s20 }
 0x2c8   : > { %p12_p12 = scmp.ge.s32.totalorder %s15_s22, 6   ;;  %s5478_s19 = smov %s4459_s21 }
 0x2c9   : > { %s5479_s20 = smov %s5482_s23  ;;  %s5480_s21 = smov %s5486_s24 }
 0x2ca   :  { %14 = sbr.rel (!%p12_p12) target bundleno = 3 (0x3), region = 137 }
 0x2cf   :  { %3414 = vsyncmov [#allocation5] }
 0x2d2   :  { %s3415_s10 = vpop.sfrf %3414 }
 0x2d3   :  { %p4196_p13 = scmp.ne.s32.totalorder %s3415_s10, 0 }
 0x2d5   :  { %3419 = shalt.err (%p4196_p13)  }
 0x2d6   :  { %3421 = vsyncmov [#allocation5 + $0x1] }
 0x2d9   :  { %s3422_s26 = vpop.sfrf %3421 }
 0x2da   :  { %p4197_p0 = scmp.ne.s32.totalorder %s3422_s26, 0 }
 0x2dc   :  { %3426 = shalt.err (%p4197_p0)  }

</bundles_post_ra>
